<compile_context>
chip_gen: v5e
topology: v5e:2x2
jax: 0.10.0
libtpu: 0.0.40
codegen_flags: <defaults>
</compile_context>

<pallas_src>
import functools

import jax
import jax.numpy as jnp
from jax.experimental import pallas as pl
from jax.experimental.pallas import tpu as pltpu

# ---------------- config (bert-base-uncased geometry, synthetic weights) ------
HIDDEN = 768
NUM_LAYERS = 12
NUM_HEADS = 12
HEAD_DIM = HIDDEN // NUM_HEADS          # 64
FFN = 3072
VOCAB = 1000                            # synthetic (see TODO above)
MAX_POS = 512
N_CLASS = 4
NCP = 128                               # classifier width padded to one lane tile
LN_EPS = 1e-12                          # HF BertModel default

# matmul tiling (bf16 inputs; per-step footprint ~0.4 MiB -> fits v5e/v6e/v7x budgets)
TM = 128
TN = 256
TK = 256


# ---------------------------- matmul + bias (+gelu) ---------------------------
def _matmul_bias_kernel(x_ref, w_ref, b_ref, o_ref, acc_ref, *, activation):
    """o = act(x @ w + b); bf16 operands, f32 accumulation over grid axis 2."""
    k = pl.program_id(2)

    @pl.when(k == 0)
    def _():
        acc_ref[...] = jnp.zeros_like(acc_ref)

    acc_ref[...] += jnp.dot(
        x_ref[...], w_ref[...], preferred_element_type=jnp.float32
    )

    @pl.when(k == pl.num_programs(2) - 1)
    def _():
        y = acc_ref[...] + b_ref[...]          # f32 epilogue (v5e has no bf16 VPU)
        if activation == "gelu":
            y = jax.nn.gelu(y, approximate=True)
        o_ref[...] = y.astype(o_ref.dtype)


def matmul_bias(x, w, b, activation=None, out_dtype=jnp.bfloat16):
    """x: (M, K) bf16, w: (K, N) bf16, b: (N,) f32 -> (M, N)."""
    M, K = x.shape
    K2, N = w.shape
    assert K == K2 and K % TK == 0 and N % TN == 0, (M, K, N)
    tm = min(TM, M)
    assert M % tm == 0 and (tm % 8 == 0 or tm == M), (M, tm)

    kernel = functools.partial(_matmul_bias_kernel, activation=activation)
    return pl.pallas_call(
        kernel,
        out_shape=jax.ShapeDtypeStruct((M, N), out_dtype),
        grid=(M // tm, N // TN, K // TK),
        in_specs=[
            pl.BlockSpec((tm, TK), lambda i, j, k: (i, k)),
            pl.BlockSpec((TK, TN), lambda i, j, k: (k, j)),
            pl.BlockSpec((1, TN), lambda i, j, k: (0, j)),
        ],
        out_specs=pl.BlockSpec((tm, TN), lambda i, j, k: (i, j)),
        scratch_shapes=[pltpu.VMEM((tm, TN), jnp.float32)],
        compiler_params=pltpu.CompilerParams(
            dimension_semantics=("parallel", "parallel", "arbitrary")
        ),
    )(x, w, b.reshape(1, N))


# ---------------------------- (residual +) layernorm --------------------------
def _layernorm_kernel(*refs, has_residual):
    if has_residual:
        x_ref, r_ref, g_ref, b_ref, o_ref = refs
        x = x_ref[...].astype(jnp.float32) + r_ref[...].astype(jnp.float32)
    else:
        x_ref, g_ref, b_ref, o_ref = refs
        x = x_ref[...].astype(jnp.float32)
    mu = jnp.mean(x, axis=-1, keepdims=True)
    var = jnp.mean((x - mu) ** 2, axis=-1, keepdims=True)
    y = (x - mu) * jax.lax.rsqrt(var + LN_EPS)
    o_ref[...] = (y * g_ref[...] + b_ref[...]).astype(o_ref.dtype)


def layernorm(x, gamma, beta, residual=None, out_dtype=jnp.bfloat16):
    """Row-wise layernorm over (M, H); optional fused residual add."""
    M, H = x.shape
    tm = min(256, M)
    assert M % tm == 0 and (tm % 8 == 0 or tm == M), (M, tm)
    has_res = residual is not None

    row_spec = pl.BlockSpec((tm, H), lambda i: (i, 0))
    vec_spec = pl.BlockSpec((1, H), lambda i: (0, 0))
    in_specs = [row_spec] + ([row_spec] if has_res else []) + [vec_spec, vec_spec]
    args = (x,) + ((residual,) if has_res else ()) + (
        gamma.reshape(1, H), beta.reshape(1, H))

    kernel = functools.partial(_layernorm_kernel, has_residual=has_res)
    return pl.pallas_call(
        kernel,
        out_shape=jax.ShapeDtypeStruct((M, H), out_dtype),
        grid=(M // tm,),
        in_specs=in_specs,
        out_specs=row_spec,
        compiler_params=pltpu.CompilerParams(dimension_semantics=("parallel",)),
    )(*args)


# ---------------------------- multi-head self-attention -----------------------
def _attention_kernel(qkv_ref, o_ref, *, scale):
    """qkv block: (1, S, 3H).  All heads handled in one step; heads are sliced
    out of the fused QKV projection (no head transpose needed); output is one
    lane-dense (S, H) store."""
    qkv = qkv_ref[0]                                            # (S, 3H) bf16
    ctxs = []
    for h in range(NUM_HEADS):
        q = qkv[:, h * HEAD_DIM:(h + 1) * HEAD_DIM]
        k = qkv[:, HIDDEN + h * HEAD_DIM:HIDDEN + (h + 1) * HEAD_DIM]
        v = qkv[:, 2 * HIDDEN + h * HEAD_DIM:2 * HIDDEN + (h + 1) * HEAD_DIM]
        s = jnp.einsum("qd,kd->qk", q, k,
                       preferred_element_type=jnp.float32) * scale
        s = s - jnp.max(s, axis=-1, keepdims=True)
        p = jnp.exp(s)
        p = p * pl.reciprocal(jnp.sum(p, axis=-1, keepdims=True), approx=True)
        ctx = jnp.dot(p.astype(qkv.dtype), v,
                      preferred_element_type=jnp.float32)       # (S, DH) f32
        ctxs.append(ctx)
    o_ref[0] = jnp.concatenate(ctxs, axis=-1).astype(o_ref.dtype)


def attention(qkv):
    """qkv: (B, S, 3H) bf16 -> context (B, S, H) bf16.  No masking (HF BertModel
    defaults attention_mask to all-ones when only ids are given)."""
    B, S, H3 = qkv.shape
    kernel = functools.partial(_attention_kernel, scale=1.0 / (HEAD_DIM ** 0.5))
    return pl.pallas_call(
        kernel,
        out_shape=jax.ShapeDtypeStruct((B, S, HIDDEN), qkv.dtype),
        grid=(B,),
        in_specs=[pl.BlockSpec((1, S, H3), lambda i: (i, 0, 0))],
        out_specs=pl.BlockSpec((1, S, HIDDEN), lambda i: (i, 0, 0)),
        compiler_params=pltpu.CompilerParams(dimension_semantics=("parallel",)),
    )(qkv)


# ---------------------------- mean pool + classifier --------------------------
def _pool_classify_kernel(x_ref, w_ref, b_ref, o_ref, *, seq_len):
    x = x_ref[...].astype(jnp.float32)                          # (B, S, H)
    pooled = jnp.sum(x, axis=1) * (1.0 / seq_len)               # torch.mean(x, 1)
    logits = jnp.dot(pooled.astype(w_ref.dtype), w_ref[...],
                     preferred_element_type=jnp.float32)
    o_ref[...] = (logits + b_ref[...]).astype(o_ref.dtype)


def pool_and_classify(h, w_pad, b_pad):
    """h: (B, S, H) bf16, w_pad: (H, NCP) bf16, b_pad: (NCP,) f32 -> (B, NCP) f32."""
    B, S, H = h.shape
    kernel = functools.partial(_pool_classify_kernel, seq_len=S)
    return pl.pallas_call(
        kernel,
        out_shape=jax.ShapeDtypeStruct((B, NCP), jnp.float32),
        grid=(1,),
        in_specs=[
            pl.BlockSpec((B, S, H), lambda i: (0, 0, 0)),
            pl.BlockSpec((H, NCP), lambda i: (0, 0)),
            pl.BlockSpec((1, NCP), lambda i: (0, 0)),
        ],
        out_specs=pl.BlockSpec((B, NCP), lambda i: (0, 0)),
    )(h, w_pad, b_pad.reshape(1, NCP))


# ---------------------------- parameter init ----------------------------------
def init_params(key):
    def nrm(k, shape):
        return jax.random.normal(k, shape, jnp.float32) * 0.02

    keys = iter(jax.random.split(key, 8 + NUM_LAYERS * 8))
    p = {
        "word_emb": nrm(next(keys), (VOCAB, HIDDEN)),
        "pos_emb": nrm(next(keys), (MAX_POS, HIDDEN)),
        "type_emb": nrm(next(keys), (2, HIDDEN)),
        "emb_ln_g": jnp.ones((HIDDEN,), jnp.float32),
        "emb_ln_b": jnp.zeros((HIDDEN,), jnp.float32),
        "layers": [],
    }
    for _ in range(NUM_LAYERS):
        wq = nrm(next(keys), (HIDDEN, HIDDEN))
        wk = nrm(next(keys), (HIDDEN, HIDDEN))
        wv = nrm(next(keys), (HIDDEN, HIDDEN))
        p["layers"].append(dict(
            # fused QKV projection: one (H, 3H) bf16 weight, one (3H,) f32 bias
            wqkv=jnp.concatenate([wq, wk, wv], axis=1).astype(jnp.bfloat16),
            bqkv=jnp.zeros((3 * HIDDEN,), jnp.float32),
            wo=nrm(next(keys), (HIDDEN, HIDDEN)).astype(jnp.bfloat16),
            bo=jnp.zeros((HIDDEN,), jnp.float32),
            ln1_g=jnp.ones((HIDDEN,), jnp.float32),
            ln1_b=jnp.zeros((HIDDEN,), jnp.float32),
            w1=nrm(next(keys), (HIDDEN, FFN)).astype(jnp.bfloat16),
            b1=jnp.zeros((FFN,), jnp.float32),
            w2=nrm(next(keys), (FFN, HIDDEN)).astype(jnp.bfloat16),
            b2=jnp.zeros((HIDDEN,), jnp.float32),
            ln2_g=jnp.ones((HIDDEN,), jnp.float32),
            ln2_b=jnp.zeros((HIDDEN,), jnp.float32),
        ))
    # classifier: Linear(768, n_class), zero-padded to a lane-friendly width.
    wc = nrm(next(keys), (HIDDEN, N_CLASS))
    bc = jnp.zeros((N_CLASS,), jnp.float32)
    p["wc_pad"] = (jnp.zeros((HIDDEN, NCP), jnp.float32)
                   .at[:, :N_CLASS].set(wc).astype(jnp.bfloat16))
    p["bc_pad"] = jnp.zeros((NCP,), jnp.float32).at[:N_CLASS].set(bc)
    return p


# ---------------------------- model forward -----------------------------------
def encoder_layer(h2d, lp, B, S):
    """h2d: (B*S, H) bf16 -> (B*S, H) bf16."""
    qkv = matmul_bias(h2d, lp["wqkv"], lp["bqkv"])          # (B*S, 3H) bf16
    ctx = attention(qkv.reshape(B, S, 3 * HIDDEN))          # (B, S, H) bf16
    ctx2d = ctx.reshape(B * S, HIDDEN)                      # free reshape (row-major)
    attn_out = matmul_bias(ctx2d, lp["wo"], lp["bo"])
    h1 = layernorm(attn_out, lp["ln1_g"], lp["ln1_b"], residual=h2d)

    ff = matmul_bias(h1, lp["w1"], lp["b1"], activation="gelu")
    ff = matmul_bias(ff, lp["w2"], lp["b2"])
    h2 = layernorm(ff, lp["ln2_g"], lp["ln2_b"], residual=h1)
    return h2


def base_model_forward(params, input_ids):
    """BaseModel.forward: x,_ = bert(x); x = mean(x, 1); logits = classifier(x)."""
    B, S = input_ids.shape
    # embeddings (glue: table lookups in plain JAX, layernorm in Pallas)
    emb = (jnp.take(params["word_emb"], input_ids, axis=0)
           + params["pos_emb"][:S][None, :, :]
           + params["type_emb"][0][None, None, :])                 # f32 (B, S, H)
    h = layernorm(emb.reshape(B * S, HIDDEN),
                  params["emb_ln_g"], params["emb_ln_b"])          # bf16 (B*S, H)
    # encoder
    for lp in params["layers"]:
        h = encoder_layer(h, lp, B, S)
    # mean over seq + classifier, fused in one Pallas kernel
    logits_pad = pool_and_classify(h.reshape(B, S, HIDDEN),
                                   params["wc_pad"], params["bc_pad"])
    return logits_pad[:, :N_CLASS]


# ---------------------------------- main --------------------------------------
if __name__ == "__main__":
    key = jax.random.PRNGKey(0)
    k_param, k_ids = jax.random.split(key)
    params = init_params(k_param)

    B, S = 2, 8
    input_ids = jax.random.randint(k_ids, (B, S), 0, VOCAB, dtype=jnp.int32)

    fwd = jax.jit(base_model_forward)
    logits = fwd(params, input_ids)
    jax.block_until_ready(logits)

    assert logits.shape == (B, N_CLASS), logits.shape
    assert logits.dtype == jnp.float32
    assert bool(jnp.all(jnp.isfinite(logits)))
    print("KERNEL_OK")
</pallas_src>

<mosaic_0001>
module attributes {stable_mosaic.version = 11 : i64} {
  func.func @_matmul_bias_kernel(%arg0: i32, %arg1: i32, %arg2: i32, %arg3: memref<16x256xbf16, #tpu.memory_space<vmem>>, %arg4: memref<256x256xbf16, #tpu.memory_space<vmem>>, %arg5: memref<1x256xf32, #tpu.memory_space<vmem>>, %arg6: memref<16x256xbf16, #tpu.memory_space<vmem>>, %arg7: memref<16x256xf32, #tpu.memory_space<vmem>>) attributes {dimension_semantics = [#tpu.dimension_semantics<parallel>, #tpu.dimension_semantics<parallel>, #tpu.dimension_semantics<arbitrary>], iteration_bounds = array<i64: 1, 3, 3>, scalar_prefetch = 0 : i64, scratch_operands = 1 : i64, tpu.core_type = #tpu.core_type<tc>, window_params = [{transform_indices = @transform_0, window_bounds = array<i64: 16, 256>}, {transform_indices = @transform_1, window_bounds = array<i64: 256, 256>}, {transform_indices = @transform_2, window_bounds = array<i64: 1, 256>}, {transform_indices = @transform_3, window_bounds = array<i64: 16, 256>}]} {
    %c0_i32 = arith.constant 0 : i32
    %0 = arith.cmpi eq, %arg2, %c0_i32 : i32
    %1 = arith.extui %0 : i1 to i32
    %c0_i32_0 = arith.constant 0 : i32
    %2 = arith.cmpi ne, %1, %c0_i32_0 : i32
    scf.if %2 {
      %cst_9 = arith.constant 0.000000e+00 : f32
      %12 = vector.broadcast %cst_9 : f32 to vector<16x256xf32>
      %c0_10 = arith.constant 0 : index
      %c0_11 = arith.constant 0 : index
      %13 = vector.load %arg7[%c0_10, %c0_11] : memref<16x256xf32, #tpu.memory_space<vmem>>, vector<16x256xf32>
      tpu.vector_store %arg7[%c0_10, %c0_11], %12 {strides = array<i32>} : memref<16x256xf32, #tpu.memory_space<vmem>>, vector<16x256xf32>,
    } else {
    }
    %c0 = arith.constant 0 : index
    %c0_1 = arith.constant 0 : index
    %3 = vector.load %arg7[%c0, %c0_1] : memref<16x256xf32, #tpu.memory_space<vmem>>, vector<16x256xf32>
    %c0_2 = arith.constant 0 : index
    %c0_3 = arith.constant 0 : index
    %4 = vector.load %arg3[%c0_2, %c0_3] : memref<16x256xbf16, #tpu.memory_space<vmem>>, vector<16x256xbf16>
    %c0_4 = arith.constant 0 : index
    %c0_5 = arith.constant 0 : index
    %5 = vector.load %arg4[%c0_4, %c0_5] : memref<256x256xbf16, #tpu.memory_space<vmem>>, vector<256x256xbf16>
    %cst = arith.constant dense<0.000000e+00> : vector<16x256xf32>
    %6 = tpu.matmul %4, %5, %cst {dimension_numbers = #tpu.dot_dimension_numbers<[1], [0], [0], [1], [0, 0, 1, 1], [], []>} : vector<16x256xbf16>, vector<256x256xbf16>, vector<16x256xf32> -> vector<16x256xf32>
    %7 = arith.addf %3, %6 : vector<16x256xf32>
    %c0_6 = arith.constant 0 : index
    %c0_7 = arith.constant 0 : index
    %8 = vector.load %arg7[%c0_6, %c0_7] : memref<16x256xf32, #tpu.memory_space<vmem>>, vector<16x256xf32>
    tpu.vector_store %arg7[%c0_6, %c0_7], %7 {strides = array<i32>} : memref<16x256xf32, #tpu.memory_space<vmem>>, vector<16x256xf32>,
    %c2_i32 = arith.constant 2 : i32
    %9 = arith.cmpi eq, %arg2, %c2_i32 : i32
    %10 = arith.extui %9 : i1 to i32
    %c0_i32_8 = arith.constant 0 : i32
    %11 = arith.cmpi ne, %10, %c0_i32_8 : i32
    scf.if %11 {
      %c0_9 = arith.constant 0 : index
      %c0_10 = arith.constant 0 : index
      %12 = vector.load %arg7[%c0_9, %c0_10] : memref<16x256xf32, #tpu.memory_space<vmem>>, vector<16x256xf32>
      %c0_11 = arith.constant 0 : index
      %c0_12 = arith.constant 0 : index
      %13 = vector.load %arg5[%c0_11, %c0_12] : memref<1x256xf32, #tpu.memory_space<vmem>>, vector<1x256xf32>
      %14 = vector.broadcast %13 : vector<1x256xf32> to vector<16x256xf32>
      %15 = arith.addf %12, %14 : vector<16x256xf32>
      %16 = arith.truncf %15 : vector<16x256xf32> to vector<16x256xbf16>
      %c0_13 = arith.constant 0 : index
      %c0_14 = arith.constant 0 : index
      %17 = vector.load %arg6[%c0_13, %c0_14] : memref<16x256xbf16, #tpu.memory_space<vmem>>, vector<16x256xbf16>
      tpu.vector_store %arg6[%c0_13, %c0_14], %16 {strides = array<i32>} : memref<16x256xbf16, #tpu.memory_space<vmem>>, vector<16x256xbf16>,
    } else {
    }
    return
  }
  func.func @transform_0(%arg0: i32, %arg1: i32, %arg2: i32) -> (i32, i32) {
    %c0_i32 = arith.constant 0 : i32
    return %arg0, %arg2 : i32, i32
  }
  func.func @transform_1(%arg0: i32, %arg1: i32, %arg2: i32) -> (i32, i32) {
    %c0_i32 = arith.constant 0 : i32
    return %arg2, %arg1 : i32, i32
  }
  func.func @transform_2(%arg0: i32, %arg1: i32, %arg2: i32) -> (i32, i32) {
    %c0_i32 = arith.constant 0 : i32
    %c0_i32_0 = arith.constant 0 : i32
    return %c0_i32, %arg1 : i32, i32
  }
  func.func @transform_3(%arg0: i32, %arg1: i32, %arg2: i32) -> (i32, i32) {
    %c0_i32 = arith.constant 0 : i32
    return %arg0, %arg1 : i32, i32
  }
}

module attributes {stable_mosaic.version = 11 : i64} {
  func.func @_matmul_bias_kernel(%arg0: i32, %arg1: i32, %arg2: i32, %arg3: memref<16x256xbf16, #tpu.memory_space<vmem>>, %arg4: memref<256x256xbf16, #tpu.memory_space<vmem>>, %arg5: memref<1x256xf32, #tpu.memory_space<vmem>>, %arg6: memref<16x256xbf16, #tpu.memory_space<vmem>>, %arg7: memref<16x256xf32, #tpu.memory_space<vmem>>) attributes {dimension_semantics = [#tpu.dimension_semantics<parallel>, #tpu.dimension_semantics<parallel>, #tpu.dimension_semantics<arbitrary>], iteration_bounds = array<i64: 1, 9, 3>, scalar_prefetch = 0 : i64, scratch_operands = 1 : i64, tpu.core_type = #tpu.core_type<tc>, window_params = [{transform_indices = @transform_0, window_bounds = array<i64: 16, 256>}, {transform_indices = @transform_1, window_bounds = array<i64: 256, 256>}, {transform_indices = @transform_2, window_bounds = array<i64: 1, 256>}, {transform_indices = @transform_3, window_bounds = array<i64: 16, 256>}]} {
    %c0_i32 = arith.constant 0 : i32
    %0 = arith.cmpi eq, %arg2, %c0_i32 : i32
    %1 = arith.extui %0 : i1 to i32
    %c0_i32_0 = arith.constant 0 : i32
    %2 = arith.cmpi ne, %1, %c0_i32_0 : i32
    scf.if %2 {
      %cst_9 = arith.constant 0.000000e+00 : f32
      %12 = vector.broadcast %cst_9 : f32 to vector<16x256xf32>
      %c0_10 = arith.constant 0 : index
      %c0_11 = arith.constant 0 : index
      %13 = vector.load %arg7[%c0_10, %c0_11] : memref<16x256xf32, #tpu.memory_space<vmem>>, vector<16x256xf32>
      tpu.vector_store %arg7[%c0_10, %c0_11], %12 {strides = array<i32>} : memref<16x256xf32, #tpu.memory_space<vmem>>, vector<16x256xf32>,
    } else {
    }
    %c0 = arith.constant 0 : index
    %c0_1 = arith.constant 0 : index
    %3 = vector.load %arg7[%c0, %c0_1] : memref<16x256xf32, #tpu.memory_space<vmem>>, vector<16x256xf32>
    %c0_2 = arith.constant 0 : index
    %c0_3 = arith.constant 0 : index
    %4 = vector.load %arg3[%c0_2, %c0_3] : memref<16x256xbf16, #tpu.memory_space<vmem>>, vector<16x256xbf16>
    %c0_4 = arith.constant 0 : index
    %c0_5 = arith.constant 0 : index
    %5 = vector.load %arg4[%c0_4, %c0_5] : memref<256x256xbf16, #tpu.memory_space<vmem>>, vector<256x256xbf16>
    %cst = arith.constant dense<0.000000e+00> : vector<16x256xf32>
    %6 = tpu.matmul %4, %5, %cst {dimension_numbers = #tpu.dot_dimension_numbers<[1], [0], [0], [1], [0, 0, 1, 1], [], []>} : vector<16x256xbf16>, vector<256x256xbf16>, vector<16x256xf32> -> vector<16x256xf32>
    %7 = arith.addf %3, %6 : vector<16x256xf32>
    %c0_6 = arith.constant 0 : index
    %c0_7 = arith.constant 0 : index
    %8 = vector.load %arg7[%c0_6, %c0_7] : memref<16x256xf32, #tpu.memory_space<vmem>>, vector<16x256xf32>
    tpu.vector_store %arg7[%c0_6, %c0_7], %7 {strides = array<i32>} : memref<16x256xf32, #tpu.memory_space<vmem>>, vector<16x256xf32>,
    %c2_i32 = arith.constant 2 : i32
    %9 = arith.cmpi eq, %arg2, %c2_i32 : i32
    %10 = arith.extui %9 : i1 to i32
    %c0_i32_8 = arith.constant 0 : i32
    %11 = arith.cmpi ne, %10, %c0_i32_8 : i32
    scf.if %11 {
      %c0_9 = arith.constant 0 : index
      %c0_10 = arith.constant 0 : index
      %12 = vector.load %arg7[%c0_9, %c0_10] : memref<16x256xf32, #tpu.memory_space<vmem>>, vector<16x256xf32>
      %c0_11 = arith.constant 0 : index
      %c0_12 = arith.constant 0 : index
      %13 = vector.load %arg5[%c0_11, %c0_12] : memref<1x256xf32, #tpu.memory_space<vmem>>, vector<1x256xf32>
      %14 = vector.broadcast %13 : vector<1x256xf32> to vector<16x256xf32>
      %15 = arith.addf %12, %14 : vector<16x256xf32>
      %16 = arith.truncf %15 : vector<16x256xf32> to vector<16x256xbf16>
      %c0_13 = arith.constant 0 : index
      %c0_14 = arith.constant 0 : index
      %17 = vector.load %arg6[%c0_13, %c0_14] : memref<16x256xbf16, #tpu.memory_space<vmem>>, vector<16x256xbf16>
      tpu.vector_store %arg6[%c0_13, %c0_14], %16 {strides = array<i32>} : memref<16x256xbf16, #tpu.memory_space<vmem>>, vector<16x256xbf16>,
    } else {
    }
    return
  }
  func.func @transform_0(%arg0: i32, %arg1: i32, %arg2: i32) -> (i32, i32) {
    %c0_i32 = arith.constant 0 : i32
    return %arg0, %arg2 : i32, i32
  }
  func.func @transform_1(%arg0: i32, %arg1: i32, %arg2: i32) -> (i32, i32) {
    %c0_i32 = arith.constant 0 : i32
    return %arg2, %arg1 : i32, i32
  }
  func.func @transform_2(%arg0: i32, %arg1: i32, %arg2: i32) -> (i32, i32) {
    %c0_i32 = arith.constant 0 : i32
    %c0_i32_0 = arith.constant 0 : i32
    return %c0_i32, %arg1 : i32, i32
  }
  func.func @transform_3(%arg0: i32, %arg1: i32, %arg2: i32) -> (i32, i32) {
    %c0_i32 = arith.constant 0 : i32
    return %arg0, %arg1 : i32, i32
  }
}

module attributes {stable_mosaic.version = 11 : i64} {
  func.func @_attention_kernel(%arg0: i32, %arg1: memref<1x8x2304xbf16, #tpu.memory_space<vmem>>, %arg2: memref<1x8x768xbf16, #tpu.memory_space<vmem>>) attributes {dimension_semantics = [#tpu.dimension_semantics<parallel>], iteration_bounds = array<i64: 2>, scalar_prefetch = 0 : i64, scratch_operands = 0 : i64, tpu.core_type = #tpu.core_type<tc>, window_params = [{transform_indices = @transform_0, window_bounds = array<i64: 1, 8, 2304>}, {transform_indices = @transform_1, window_bounds = array<i64: 1, 8, 768>}]} {
    %c0 = arith.constant 0 : index
    %c0_0 = arith.constant 0 : index
    %c0_1 = arith.constant 0 : index
    %0 = vector.load %arg1[%c0, %c0_0, %c0_1] : memref<1x8x2304xbf16, #tpu.memory_space<vmem>>, vector<1x8x2304xbf16>
    %1 = vector.shape_cast %0 : vector<1x8x2304xbf16> to vector<8x2304xbf16>
    %2 = vector.extract_strided_slice %1 {offsets = [0, 0], sizes = [8, 64], strides = [1, 1]} : vector<8x2304xbf16> to vector<8x64xbf16>
    %3 = vector.extract_strided_slice %1 {offsets = [0, 768], sizes = [8, 64], strides = [1, 1]} : vector<8x2304xbf16> to vector<8x64xbf16>
    %4 = vector.extract_strided_slice %1 {offsets = [0, 1536], sizes = [8, 64], strides = [1, 1]} : vector<8x2304xbf16> to vector<8x64xbf16>
    "tpu.trace_start"() <{level = 10 : i32, message = "qd,kd->qk"}> : () -> ()
    %cst = arith.constant dense<0.000000e+00> : vector<8x8xf32>
    %5 = tpu.matmul %2, %3, %cst {dimension_numbers = #tpu.dot_dimension_numbers<[1], [1], [0], [0], [0, 0, 1, 0], [], []>} : vector<8x64xbf16>, vector<8x64xbf16>, vector<8x8xf32> -> vector<8x8xf32>
    "tpu.trace_stop"() : () -> ()
    %cst_2 = arith.constant 1.250000e-01 : f32
    %6 = vector.broadcast %cst_2 : f32 to vector<8x8xf32>
    %7 = arith.mulf %5, %6 : vector<8x8xf32>
    %cst_3 = arith.constant dense<0xFF800000> : vector<8xf32>
    %8 = vector.multi_reduction <maximumf>, %7, %cst_3 [1] : vector<8x8xf32> to vector<8xf32>
    %9 = vector.shape_cast %8 : vector<8xf32> to vector<8x1xf32>
    %10 = vector.broadcast %9 : vector<8x1xf32> to vector<8x8xf32>
    %11 = arith.subf %7, %10 : vector<8x8xf32>
    %12 = math.exp %11 : vector<8x8xf32>
    %cst_4 = arith.constant dense<0.000000e+00> : vector<8xf32>
    %13 = vector.multi_reduction <add>, %12, %cst_4 [1] : vector<8x8xf32> to vector<8xf32>
    %14 = vector.shape_cast %13 : vector<8xf32> to vector<8x1xf32>
    %15 = tpu.reciprocal %14 {approx = true} : vector<8x1xf32> -> vector<8x1xf32>
    %16 = vector.broadcast %15 : vector<8x1xf32> to vector<8x8xf32>
    %17 = arith.mulf %12, %16 : vector<8x8xf32>
    %18 = arith.truncf %17 : vector<8x8xf32> to vector<8x8xbf16>
    %cst_5 = arith.constant dense<0.000000e+00> : vector<8x64xf32>
    %19 = tpu.matmul %18, %4, %cst_5 {dimension_numbers = #tpu.dot_dimension_numbers<[1], [0], [0], [1], [0, 0, 1, 1], [], []>} : vector<8x8xbf16>, vector<8x64xbf16>, vector<8x64xf32> -> vector<8x64xf32>
    %20 = vector.extract_strided_slice %1 {offsets = [0, 64], sizes = [8, 64], strides = [1, 1]} : vector<8x2304xbf16> to vector<8x64xbf16>
    %21 = vector.extract_strided_slice %1 {offsets = [0, 832], sizes = [8, 64], strides = [1, 1]} : vector<8x2304xbf16> to vector<8x64xbf16>
    %22 = vector.extract_strided_slice %1 {offsets = [0, 1600], sizes = [8, 64], strides = [1, 1]} : vector<8x2304xbf16> to vector<8x64xbf16>
    "tpu.trace_start"() <{level = 10 : i32, message = "qd,kd->qk"}> : () -> ()
    %cst_6 = arith.constant dense<0.000000e+00> : vector<8x8xf32>
    %23 = tpu.matmul %20, %21, %cst_6 {dimension_numbers = #tpu.dot_dimension_numbers<[1], [1], [0], [0], [0, 0, 1, 0], [], []>} : vector<8x64xbf16>, vector<8x64xbf16>, vector<8x8xf32> -> vector<8x8xf32>
    "tpu.trace_stop"() : () -> ()
    %cst_7 = arith.constant 1.250000e-01 : f32
    %24 = vector.broadcast %cst_7 : f32 to vector<8x8xf32>
    %25 = arith.mulf %23, %24 : vector<8x8xf32>
    %cst_8 = arith.constant dense<0xFF800000> : vector<8xf32>
    %26 = vector.multi_reduction <maximumf>, %25, %cst_8 [1] : vector<8x8xf32> to vector<8xf32>
    %27 = vector.shape_cast %26 : vector<8xf32> to vector<8x1xf32>
    %28 = vector.broadcast %27 : vector<8x1xf32> to vector<8x8xf32>
    %29 = arith.subf %25, %28 : vector<8x8xf32>
    %30 = math.exp %29 : vector<8x8xf32>
    %cst_9 = arith.constant dense<0.000000e+00> : vector<8xf32>
    %31 = vector.multi_reduction <add>, %30, %cst_9 [1] : vector<8x8xf32> to vector<8xf32>
    %32 = vector.shape_cast %31 : vector<8xf32> to vector<8x1xf32>
    %33 = tpu.reciprocal %32 {approx = true} : vector<8x1xf32> -> vector<8x1xf32>
    %34 = vector.broadcast %33 : vector<8x1xf32> to vector<8x8xf32>
    %35 = arith.mulf %30, %34 : vector<8x8xf32>
    %36 = arith.truncf %35 : vector<8x8xf32> to vector<8x8xbf16>
    %cst_10 = arith.constant dense<0.000000e+00> : vector<8x64xf32>
    %37 = tpu.matmul %36, %22, %cst_10 {dimension_numbers = #tpu.dot_dimension_numbers<[1], [0], [0], [1], [0, 0, 1, 1], [], []>} : vector<8x8xbf16>, vector<8x64xbf16>, vector<8x64xf32> -> vector<8x64xf32>
    %38 = vector.extract_strided_slice %1 {offsets = [0, 128], sizes = [8, 64], strides = [1, 1]} : vector<8x2304xbf16> to vector<8x64xbf16>
    %39 = vector.extract_strided_slice %1 {offsets = [0, 896], sizes = [8, 64], strides = [1, 1]} : vector<8x2304xbf16> to vector<8x64xbf16>
    %40 = vector.extract_strided_slice %1 {offsets = [0, 1664], sizes = [8, 64], strides = [1, 1]} : vector<8x2304xbf16> to vector<8x64xbf16>
    "tpu.trace_start"() <{level = 10 : i32, message = "qd,kd->qk"}> : () -> ()
    %cst_11 = arith.constant dense<0.000000e+00> : vector<8x8xf32>
    %41 = tpu.matmul %38, %39, %cst_11 {dimension_numbers = #tpu.dot_dimension_numbers<[1], [1], [0], [0], [0, 0, 1, 0], [], []>} : vector<8x64xbf16>, vector<8x64xbf16>, vector<8x8xf32> -> vector<8x8xf32>
    "tpu.trace_stop"() : () -> ()
    %cst_12 = arith.constant 1.250000e-01 : f32
    %42 = vector.broadcast %cst_12 : f32 to vector<8x8xf32>
    %43 = arith.mulf %41, %42 : vector<8x8xf32>
    %cst_13 = arith.constant dense<0xFF800000> : vector<8xf32>
    %44 = vector.multi_reduction <maximumf>, %43, %cst_13 [1] : vector<8x8xf32> to vector<8xf32>
    %45 = vector.shape_cast %44 : vector<8xf32> to vector<8x1xf32>
    %46 = vector.broadcast %45 : vector<8x1xf32> to vector<8x8xf32>
    %47 = arith.subf %43, %46 : vector<8x8xf32>
    %48 = math.exp %47 : vector<8x8xf32>
    %cst_14 = arith.constant dense<0.000000e+00> : vector<8xf32>
    %49 = vector.multi_reduction <add>, %48, %cst_14 [1] : vector<8x8xf32> to vector<8xf32>
    %50 = vector.shape_cast %49 : vector<8xf32> to vector<8x1xf32>
    %51 = tpu.reciprocal %50 {approx = true} : vector<8x1xf32> -> vector<8x1xf32>
    %52 = vector.broadcast %51 : vector<8x1xf32> to vector<8x8xf32>
    %53 = arith.mulf %48, %52 : vector<8x8xf32>
    %54 = arith.truncf %53 : vector<8x8xf32> to vector<8x8xbf16>
    %cst_15 = arith.constant dense<0.000000e+00> : vector<8x64xf32>
    %55 = tpu.matmul %54, %40, %cst_15 {dimension_numbers = #tpu.dot_dimension_numbers<[1], [0], [0], [1], [0, 0, 1, 1], [], []>} : vector<8x8xbf16>, vector<8x64xbf16>, vector<8x64xf32> -> vector<8x64xf32>
    %56 = vector.extract_strided_slice %1 {offsets = [0, 192], sizes = [8, 64], strides = [1, 1]} : vector<8x2304xbf16> to vector<8x64xbf16>
    %57 = vector.extract_strided_slice %1 {offsets = [0, 960], sizes = [8, 64], strides = [1, 1]} : vector<8x2304xbf16> to vector<8x64xbf16>
    %58 = vector.extract_strided_slice %1 {offsets = [0, 1728], sizes = [8, 64], strides = [1, 1]} : vector<8x2304xbf16> to vector<8x64xbf16>
    "tpu.trace_start"() <{level = 10 : i32, message = "qd,kd->qk"}> : () -> ()
    %cst_16 = arith.constant dense<0.000000e+00> : vector<8x8xf32>
    %59 = tpu.matmul %56, %57, %cst_16 {dimension_numbers = #tpu.dot_dimension_numbers<[1], [1], [0], [0], [0, 0, 1, 0], [], []>} : vector<8x64xbf16>, vector<8x64xbf16>, vector<8x8xf32> -> vector<8x8xf32>
    "tpu.trace_stop"() : () -> ()
    %cst_17 = arith.constant 1.250000e-01 : f32
    %60 = vector.broadcast %cst_17 : f32 to vector<8x8xf32>
    %61 = arith.mulf %59, %60 : vector<8x8xf32>
    %cst_18 = arith.constant dense<0xFF800000> : vector<8xf32>
    %62 = vector.multi_reduction <maximumf>, %61, %cst_18 [1] : vector<8x8xf32> to vector<8xf32>
    %63 = vector.shape_cast %62 : vector<8xf32> to vector<8x1xf32>
    %64 = vector.broadcast %63 : vector<8x1xf32> to vector<8x8xf32>
    %65 = arith.subf %61, %64 : vector<8x8xf32>
    %66 = math.exp %65 : vector<8x8xf32>
    %cst_19 = arith.constant dense<0.000000e+00> : vector<8xf32>
    %67 = vector.multi_reduction <add>, %66, %cst_19 [1] : vector<8x8xf32> to vector<8xf32>
    %68 = vector.shape_cast %67 : vector<8xf32> to vector<8x1xf32>
    %69 = tpu.reciprocal %68 {approx = true} : vector<8x1xf32> -> vector<8x1xf32>
    %70 = vector.broadcast %69 : vector<8x1xf32> to vector<8x8xf32>
    %71 = arith.mulf %66, %70 : vector<8x8xf32>
    %72 = arith.truncf %71 : vector<8x8xf32> to vector<8x8xbf16>
    %cst_20 = arith.constant dense<0.000000e+00> : vector<8x64xf32>
    %73 = tpu.matmul %72, %58, %cst_20 {dimension_numbers = #tpu.dot_dimension_numbers<[1], [0], [0], [1], [0, 0, 1, 1], [], []>} : vector<8x8xbf16>, vector<8x64xbf16>, vector<8x64xf32> -> vector<8x64xf32>
    %74 = vector.extract_strided_slice %1 {offsets = [0, 256], sizes = [8, 64], strides = [1, 1]} : vector<8x2304xbf16> to vector<8x64xbf16>
    %75 = vector.extract_strided_slice %1 {offsets = [0, 1024], sizes = [8, 64], strides = [1, 1]} : vector<8x2304xbf16> to vector<8x64xbf16>
    %76 = vector.extract_strided_slice %1 {offsets = [0, 1792], sizes = [8, 64], strides = [1, 1]} : vector<8x2304xbf16> to vector<8x64xbf16>
    "tpu.trace_start"() <{level = 10 : i32, message = "qd,kd->qk"}> : () -> ()
    %cst_21 = arith.constant dense<0.000000e+00> : vector<8x8xf32>
    %77 = tpu.matmul %74, %75, %cst_21 {dimension_numbers = #tpu.dot_dimension_numbers<[1], [1], [0], [0], [0, 0, 1, 0], [], []>} : vector<8x64xbf16>, vector<8x64xbf16>, vector<8x8xf32> -> vector<8x8xf32>
    "tpu.trace_stop"() : () -> ()
    %cst_22 = arith.constant 1.250000e-01 : f32
    %78 = vector.broadcast %cst_22 : f32 to vector<8x8xf32>
    %79 = arith.mulf %77, %78 : vector<8x8xf32>
    %cst_23 = arith.constant dense<0xFF800000> : vector<8xf32>
    %80 = vector.multi_reduction <maximumf>, %79, %cst_23 [1] : vector<8x8xf32> to vector<8xf32>
    %81 = vector.shape_cast %80 : vector<8xf32> to vector<8x1xf32>
    %82 = vector.broadcast %81 : vector<8x1xf32> to vector<8x8xf32>
    %83 = arith.subf %79, %82 : vector<8x8xf32>
    %84 = math.exp %83 : vector<8x8xf32>
    %cst_24 = arith.constant dense<0.000000e+00> : vector<8xf32>
    %85 = vector.multi_reduction <add>, %84, %cst_24 [1] : vector<8x8xf32> to vector<8xf32>
    %86 = vector.shape_cast %85 : vector<8xf32> to vector<8x1xf32>
    %87 = tpu.reciprocal %86 {approx = true} : vector<8x1xf32> -> vector<8x1xf32>
    %88 = vector.broadcast %87 : vector<8x1xf32> to vector<8x8xf32>
    %89 = arith.mulf %84, %88 : vector<8x8xf32>
    %90 = arith.truncf %89 : vector<8x8xf32> to vector<8x8xbf16>
    %cst_25 = arith.constant dense<0.000000e+00> : vector<8x64xf32>
    %91 = tpu.matmul %90, %76, %cst_25 {dimension_numbers = #tpu.dot_dimension_numbers<[1], [0], [0], [1], [0, 0, 1, 1], [], []>} : vector<8x8xbf16>, vector<8x64xbf16>, vector<8x64xf32> -> vector<8x64xf32>
    %92 = vector.extract_strided_slice %1 {offsets = [0, 320], sizes = [8, 64], strides = [1, 1]} : vector<8x2304xbf16> to vector<8x64xbf16>
    %93 = vector.extract_strided_slice %1 {offsets = [0, 1088], sizes = [8, 64], strides = [1, 1]} : vector<8x2304xbf16> to vector<8x64xbf16>
    %94 = vector.extract_strided_slice %1 {offsets = [0, 1856], sizes = [8, 64], strides = [1, 1]} : vector<8x2304xbf16> to vector<8x64xbf16>
    "tpu.trace_start"() <{level = 10 : i32, message = "qd,kd->qk"}> : () -> ()
    %cst_26 = arith.constant dense<0.000000e+00> : vector<8x8xf32>
    %95 = tpu.matmul %92, %93, %cst_26 {dimension_numbers = #tpu.dot_dimension_numbers<[1], [1], [0], [0], [0, 0, 1, 0], [], []>} : vector<8x64xbf16>, vector<8x64xbf16>, vector<8x8xf32> -> vector<8x8xf32>
    "tpu.trace_stop"() : () -> ()
    %cst_27 = arith.constant 1.250000e-01 : f32
    %96 = vector.broadcast %cst_27 : f32 to vector<8x8xf32>
    %97 = arith.mulf %95, %96 : vector<8x8xf32>
    %cst_28 = arith.constant dense<0xFF800000> : vector<8xf32>
    %98 = vector.multi_reduction <maximumf>, %97, %cst_28 [1] : vector<8x8xf32> to vector<8xf32>
    %99 = vector.shape_cast %98 : vector<8xf32> to vector<8x1xf32>
    %100 = vector.broadcast %99 : vector<8x1xf32> to vector<8x8xf32>
    %101 = arith.subf %97, %100 : vector<8x8xf32>
    %102 = math.exp %101 : vector<8x8xf32>
    %cst_29 = arith.constant dense<0.000000e+00> : vector<8xf32>
    %103 = vector.multi_reduction <add>, %102, %cst_29 [1] : vector<8x8xf32> to vector<8xf32>
    %104 = vector.shape_cast %103 : vector<8xf32> to vector<8x1xf32>
    %105 = tpu.reciprocal %104 {approx = true} : vector<8x1xf32> -> vector<8x1xf32>
    %106 = vector.broadcast %105 : vector<8x1xf32> to vector<8x8xf32>
    %107 = arith.mulf %102, %106 : vector<8x8xf32>
    %108 = arith.truncf %107 : vector<8x8xf32> to vector<8x8xbf16>
    %cst_30 = arith.constant dense<0.000000e+00> : vector<8x64xf32>
    %109 = tpu.matmul %108, %94, %cst_30 {dimension_numbers = #tpu.dot_dimension_numbers<[1], [0], [0], [1], [0, 0, 1, 1], [], []>} : vector<8x8xbf16>, vector<8x64xbf16>, vector<8x64xf32> -> vector<8x64xf32>
    %110 = vector.extract_strided_slice %1 {offsets = [0, 384], sizes = [8, 64], strides = [1, 1]} : vector<8x2304xbf16> to vector<8x64xbf16>
    %111 = vector.extract_strided_slice %1 {offsets = [0, 1152], sizes = [8, 64], strides = [1, 1]} : vector<8x2304xbf16> to vector<8x64xbf16>
    %112 = vector.extract_strided_slice %1 {offsets = [0, 1920], sizes = [8, 64], strides = [1, 1]} : vector<8x2304xbf16> to vector<8x64xbf16>
    "tpu.trace_start"() <{level = 10 : i32, message = "qd,kd->qk"}> : () -> ()
    %cst_31 = arith.constant dense<0.000000e+00> : vector<8x8xf32>
    %113 = tpu.matmul %110, %111, %cst_31 {dimension_numbers = #tpu.dot_dimension_numbers<[1], [1], [0], [0], [0, 0, 1, 0], [], []>} : vector<8x64xbf16>, vector<8x64xbf16>, vector<8x8xf32> -> vector<8x8xf32>
    "tpu.trace_stop"() : () -> ()
    %cst_32 = arith.constant 1.250000e-01 : f32
    %114 = vector.broadcast %cst_32 : f32 to vector<8x8xf32>
    %115 = arith.mulf %113, %114 : vector<8x8xf32>
    %cst_33 = arith.constant dense<0xFF800000> : vector<8xf32>
    %116 = vector.multi_reduction <maximumf>, %115, %cst_33 [1] : vector<8x8xf32> to vector<8xf32>
    %117 = vector.shape_cast %116 : vector<8xf32> to vector<8x1xf32>
    %118 = vector.broadcast %117 : vector<8x1xf32> to vector<8x8xf32>
    %119 = arith.subf %115, %118 : vector<8x8xf32>
    %120 = math.exp %119 : vector<8x8xf32>
    %cst_34 = arith.constant dense<0.000000e+00> : vector<8xf32>
    %121 = vector.multi_reduction <add>, %120, %cst_34 [1] : vector<8x8xf32> to vector<8xf32>
    %122 = vector.shape_cast %121 : vector<8xf32> to vector<8x1xf32>
    %123 = tpu.reciprocal %122 {approx = true} : vector<8x1xf32> -> vector<8x1xf32>
    %124 = vector.broadcast %123 : vector<8x1xf32> to vector<8x8xf32>
    %125 = arith.mulf %120, %124 : vector<8x8xf32>
    %126 = arith.truncf %125 : vector<8x8xf32> to vector<8x8xbf16>
    %cst_35 = arith.constant dense<0.000000e+00> : vector<8x64xf32>
    %127 = tpu.matmul %126, %112, %cst_35 {dimension_numbers = #tpu.dot_dimension_numbers<[1], [0], [0], [1], [0, 0, 1, 1], [], []>} : vector<8x8xbf16>, vector<8x64xbf16>, vector<8x64xf32> -> vector<8x64xf32>
    %128 = vector.extract_strided_slice %1 {offsets = [0, 448], sizes = [8, 64], strides = [1, 1]} : vector<8x2304xbf16> to vector<8x64xbf16>
    %129 = vector.extract_strided_slice %1 {offsets = [0, 1216], sizes = [8, 64], strides = [1, 1]} : vector<8x2304xbf16> to vector<8x64xbf16>
    %130 = vector.extract_strided_slice %1 {offsets = [0, 1984], sizes = [8, 64], strides = [1, 1]} : vector<8x2304xbf16> to vector<8x64xbf16>
    "tpu.trace_start"() <{level = 10 : i32, message = "qd,kd->qk"}> : () -> ()
    %cst_36 = arith.constant dense<0.000000e+00> : vector<8x8xf32>
    %131 = tpu.matmul %128, %129, %cst_36 {dimension_numbers = #tpu.dot_dimension_numbers<[1], [1], [0], [0], [0, 0, 1, 0], [], []>} : vector<8x64xbf16>, vector<8x64xbf16>, vector<8x8xf32> -> vector<8x8xf32>
    "tpu.trace_stop"() : () -> ()
    %cst_37 = arith.constant 1.250000e-01 : f32
    %132 = vector.broadcast %cst_37 : f32 to vector<8x8xf32>
    %133 = arith.mulf %131, %132 : vector<8x8xf32>
    %cst_38 = arith.constant dense<0xFF800000> : vector<8xf32>
    %134 = vector.multi_reduction <maximumf>, %133, %cst_38 [1] : vector<8x8xf32> to vector<8xf32>
    %135 = vector.shape_cast %134 : vector<8xf32> to vector<8x1xf32>
    %136 = vector.broadcast %135 : vector<8x1xf32> to vector<8x8xf32>
    %137 = arith.subf %133, %136 : vector<8x8xf32>
    %138 = math.exp %137 : vector<8x8xf32>
    %cst_39 = arith.constant dense<0.000000e+00> : vector<8xf32>
    %139 = vector.multi_reduction <add>, %138, %cst_39 [1] : vector<8x8xf32> to vector<8xf32>
    %140 = vector.shape_cast %139 : vector<8xf32> to vector<8x1xf32>
    %141 = tpu.reciprocal %140 {approx = true} : vector<8x1xf32> -> vector<8x1xf32>
    %142 = vector.broadcast %141 : vector<8x1xf32> to vector<8x8xf32>
    %143 = arith.mulf %138, %142 : vector<8x8xf32>
    %144 = arith.truncf %143 : vector<8x8xf32> to vector<8x8xbf16>
    %cst_40 = arith.constant dense<0.000000e+00> : vector<8x64xf32>
    %145 = tpu.matmul %144, %130, %cst_40 {dimension_numbers = #tpu.dot_dimension_numbers<[1], [0], [0], [1], [0, 0, 1, 1], [], []>} : vector<8x8xbf16>, vector<8x64xbf16>, vector<8x64xf32> -> vector<8x64xf32>
    %146 = vector.extract_strided_slice %1 {offsets = [0, 512], sizes = [8, 64], strides = [1, 1]} : vector<8x2304xbf16> to vector<8x64xbf16>
    %147 = vector.extract_strided_slice %1 {offsets = [0, 1280], sizes = [8, 64], strides = [1, 1]} : vector<8x2304xbf16> to vector<8x64xbf16>
    %148 = vector.extract_strided_slice %1 {offsets = [0, 2048], sizes = [8, 64], strides = [1, 1]} : vector<8x2304xbf16> to vector<8x64xbf16>
    "tpu.trace_start"() <{level = 10 : i32, message = "qd,kd->qk"}> : () -> ()
    %cst_41 = arith.constant dense<0.000000e+00> : vector<8x8xf32>
    %149 = tpu.matmul %146, %147, %cst_41 {dimension_numbers = #tpu.dot_dimension_numbers<[1], [1], [0], [0], [0, 0, 1, 0], [], []>} : vector<8x64xbf16>, vector<8x64xbf16>, vector<8x8xf32> -> vector<8x8xf32>
    "tpu.trace_stop"() : () -> ()
    %cst_42 = arith.constant 1.250000e-01 : f32
    %150 = vector.broadcast %cst_42 : f32 to vector<8x8xf32>
    %151 = arith.mulf %149, %150 : vector<8x8xf32>
    %cst_43 = arith.constant dense<0xFF800000> : vector<8xf32>
    %152 = vector.multi_reduction <maximumf>, %151, %cst_43 [1] : vector<8x8xf32> to vector<8xf32>
    %153 = vector.shape_cast %152 : vector<8xf32> to vector<8x1xf32>
    %154 = vector.broadcast %153 : vector<8x1xf32> to vector<8x8xf32>
    %155 = arith.subf %151, %154 : vector<8x8xf32>
    %156 = math.exp %155 : vector<8x8xf32>
    %cst_44 = arith.constant dense<0.000000e+00> : vector<8xf32>
    %157 = vector.multi_reduction <add>, %156, %cst_44 [1] : vector<8x8xf32> to vector<8xf32>
    %158 = vector.shape_cast %157 : vector<8xf32> to vector<8x1xf32>
    %159 = tpu.reciprocal %158 {approx = true} : vector<8x1xf32> -> vector<8x1xf32>
    %160 = vector.broadcast %159 : vector<8x1xf32> to vector<8x8xf32>
    %161 = arith.mulf %156, %160 : vector<8x8xf32>
    %162 = arith.truncf %161 : vector<8x8xf32> to vector<8x8xbf16>
    %cst_45 = arith.constant dense<0.000000e+00> : vector<8x64xf32>
    %163 = tpu.matmul %162, %148, %cst_45 {dimension_numbers = #tpu.dot_dimension_numbers<[1], [0], [0], [1], [0, 0, 1, 1], [], []>} : vector<8x8xbf16>, vector<8x64xbf16>, vector<8x64xf32> -> vector<8x64xf32>
    %164 = vector.extract_strided_slice %1 {offsets = [0, 576], sizes = [8, 64], strides = [1, 1]} : vector<8x2304xbf16> to vector<8x64xbf16>
    %165 = vector.extract_strided_slice %1 {offsets = [0, 1344], sizes = [8, 64], strides = [1, 1]} : vector<8x2304xbf16> to vector<8x64xbf16>
    %166 = vector.extract_strided_slice %1 {offsets = [0, 2112], sizes = [8, 64], strides = [1, 1]} : vector<8x2304xbf16> to vector<8x64xbf16>
    "tpu.trace_start"() <{level = 10 : i32, message = "qd,kd->qk"}> : () -> ()
    %cst_46 = arith.constant dense<0.000000e+00> : vector<8x8xf32>
    %167 = tpu.matmul %164, %165, %cst_46 {dimension_numbers = #tpu.dot_dimension_numbers<[1], [1], [0], [0], [0, 0, 1, 0], [], []>} : vector<8x64xbf16>, vector<8x64xbf16>, vector<8x8xf32> -> vector<8x8xf32>
    "tpu.trace_stop"() : () -> ()
    %cst_47 = arith.constant 1.250000e-01 : f32
    %168 = vector.broadcast %cst_47 : f32 to vector<8x8xf32>
    %169 = arith.mulf %167, %168 : vector<8x8xf32>
    %cst_48 = arith.constant dense<0xFF800000> : vector<8xf32>
    %170 = vector.multi_reduction <maximumf>, %169, %cst_48 [1] : vector<8x8xf32> to vector<8xf32>
    %171 = vector.shape_cast %170 : vector<8xf32> to vector<8x1xf32>
    %172 = vector.broadcast %171 : vector<8x1xf32> to vector<8x8xf32>
    %173 = arith.subf %169, %172 : vector<8x8xf32>
    %174 = math.exp %173 : vector<8x8xf32>
    %cst_49 = arith.constant dense<0.000000e+00> : vector<8xf32>
    %175 = vector.multi_reduction <add>, %174, %cst_49 [1] : vector<8x8xf32> to vector<8xf32>
    %176 = vector.shape_cast %175 : vector<8xf32> to vector<8x1xf32>
    %177 = tpu.reciprocal %176 {approx = true} : vector<8x1xf32> -> vector<8x1xf32>
    %178 = vector.broadcast %177 : vector<8x1xf32> to vector<8x8xf32>
    %179 = arith.mulf %174, %178 : vector<8x8xf32>
    %180 = arith.truncf %179 : vector<8x8xf32> to vector<8x8xbf16>
    %cst_50 = arith.constant dense<0.000000e+00> : vector<8x64xf32>
    %181 = tpu.matmul %180, %166, %cst_50 {dimension_numbers = #tpu.dot_dimension_numbers<[1], [0], [0], [1], [0, 0, 1, 1], [], []>} : vector<8x8xbf16>, vector<8x64xbf16>, vector<8x64xf32> -> vector<8x64xf32>
    %182 = vector.extract_strided_slice %1 {offsets = [0, 640], sizes = [8, 64], strides = [1, 1]} : vector<8x2304xbf16> to vector<8x64xbf16>
    %183 = vector.extract_strided_slice %1 {offsets = [0, 1408], sizes = [8, 64], strides = [1, 1]} : vector<8x2304xbf16> to vector<8x64xbf16>
    %184 = vector.extract_strided_slice %1 {offsets = [0, 2176], sizes = [8, 64], strides = [1, 1]} : vector<8x2304xbf16> to vector<8x64xbf16>
    "tpu.trace_start"() <{level = 10 : i32, message = "qd,kd->qk"}> : () -> ()
    %cst_51 = arith.constant dense<0.000000e+00> : vector<8x8xf32>
    %185 = tpu.matmul %182, %183, %cst_51 {dimension_numbers = #tpu.dot_dimension_numbers<[1], [1], [0], [0], [0, 0, 1, 0], [], []>} : vector<8x64xbf16>, vector<8x64xbf16>, vector<8x8xf32> -> vector<8x8xf32>
    "tpu.trace_stop"() : () -> ()
    %cst_52 = arith.constant 1.250000e-01 : f32
    %186 = vector.broadcast %cst_52 : f32 to vector<8x8xf32>
    %187 = arith.mulf %185, %186 : vector<8x8xf32>
    %cst_53 = arith.constant dense<0xFF800000> : vector<8xf32>
    %188 = vector.multi_reduction <maximumf>, %187, %cst_53 [1] : vector<8x8xf32> to vector<8xf32>
    %189 = vector.shape_cast %188 : vector<8xf32> to vector<8x1xf32>
    %190 = vector.broadcast %189 : vector<8x1xf32> to vector<8x8xf32>
    %191 = arith.subf %187, %190 : vector<8x8xf32>
    %192 = math.exp %191 : vector<8x8xf32>
    %cst_54 = arith.constant dense<0.000000e+00> : vector<8xf32>
    %193 = vector.multi_reduction <add>, %192, %cst_54 [1] : vector<8x8xf32> to vector<8xf32>
    %194 = vector.shape_cast %193 : vector<8xf32> to vector<8x1xf32>
    %195 = tpu.reciprocal %194 {approx = true} : vector<8x1xf32> -> vector<8x1xf32>
    %196 = vector.broadcast %195 : vector<8x1xf32> to vector<8x8xf32>
    %197 = arith.mulf %192, %196 : vector<8x8xf32>
    %198 = arith.truncf %197 : vector<8x8xf32> to vector<8x8xbf16>
    %cst_55 = arith.constant dense<0.000000e+00> : vector<8x64xf32>
    %199 = tpu.matmul %198, %184, %cst_55 {dimension_numbers = #tpu.dot_dimension_numbers<[1], [0], [0], [1], [0, 0, 1, 1], [], []>} : vector<8x8xbf16>, vector<8x64xbf16>, vector<8x64xf32> -> vector<8x64xf32>
    %200 = vector.extract_strided_slice %1 {offsets = [0, 704], sizes = [8, 64], strides = [1, 1]} : vector<8x2304xbf16> to vector<8x64xbf16>
    %201 = vector.extract_strided_slice %1 {offsets = [0, 1472], sizes = [8, 64], strides = [1, 1]} : vector<8x2304xbf16> to vector<8x64xbf16>
    %202 = vector.extract_strided_slice %1 {offsets = [0, 2240], sizes = [8, 64], strides = [1, 1]} : vector<8x2304xbf16> to vector<8x64xbf16>
    "tpu.trace_start"() <{level = 10 : i32, message = "qd,kd->qk"}> : () -> ()
    %cst_56 = arith.constant dense<0.000000e+00> : vector<8x8xf32>
    %203 = tpu.matmul %200, %201, %cst_56 {dimension_numbers = #tpu.dot_dimension_numbers<[1], [1], [0], [0], [0, 0, 1, 0], [], []>} : vector<8x64xbf16>, vector<8x64xbf16>, vector<8x8xf32> -> vector<8x8xf32>
    "tpu.trace_stop"() : () -> ()
    %cst_57 = arith.constant 1.250000e-01 : f32
    %204 = vector.broadcast %cst_57 : f32 to vector<8x8xf32>
    %205 = arith.mulf %203, %204 : vector<8x8xf32>
    %cst_58 = arith.constant dense<0xFF800000> : vector<8xf32>
    %206 = vector.multi_reduction <maximumf>, %205, %cst_58 [1] : vector<8x8xf32> to vector<8xf32>
    %207 = vector.shape_cast %206 : vector<8xf32> to vector<8x1xf32>
    %208 = vector.broadcast %207 : vector<8x1xf32> to vector<8x8xf32>
    %209 = arith.subf %205, %208 : vector<8x8xf32>
    %210 = math.exp %209 : vector<8x8xf32>
    %cst_59 = arith.constant dense<0.000000e+00> : vector<8xf32>
    %211 = vector.multi_reduction <add>, %210, %cst_59 [1] : vector<8x8xf32> to vector<8xf32>
    %212 = vector.shape_cast %211 : vector<8xf32> to vector<8x1xf32>
    %213 = tpu.reciprocal %212 {approx = true} : vector<8x1xf32> -> vector<8x1xf32>
    %214 = vector.broadcast %213 : vector<8x1xf32> to vector<8x8xf32>
    %215 = arith.mulf %210, %214 : vector<8x8xf32>
    %216 = arith.truncf %215 : vector<8x8xf32> to vector<8x8xbf16>
    %cst_60 = arith.constant dense<0.000000e+00> : vector<8x64xf32>
    %217 = tpu.matmul %216, %202, %cst_60 {dimension_numbers = #tpu.dot_dimension_numbers<[1], [0], [0], [1], [0, 0, 1, 1], [], []>} : vector<8x8xbf16>, vector<8x64xbf16>, vector<8x64xf32> -> vector<8x64xf32>
    %218 = tpu.concatenate %19, %37, %55, %73, %91, %109, %127, %145, %163, %181, %199, %217 in 1 : vector<8x64xf32>, vector<8x64xf32>, vector<8x64xf32>, vector<8x64xf32>, vector<8x64xf32>, vector<8x64xf32>, vector<8x64xf32>, vector<8x64xf32>, vector<8x64xf32>, vector<8x64xf32>, vector<8x64xf32>, vector<8x64xf32> -> vector<8x768xf32>
    %219 = arith.truncf %218 : vector<8x768xf32> to vector<8x768xbf16>
    %c0_61 = arith.constant 0 : index
    %c0_62 = arith.constant 0 : index
    %c0_63 = arith.constant 0 : index
    %220 = vector.load %arg2[%c0_61, %c0_62, %c0_63] : memref<1x8x768xbf16, #tpu.memory_space<vmem>>, vector<1x8x768xbf16>
    %221 = vector.shape_cast %220 : vector<1x8x768xbf16> to vector<8x768xbf16>
    %222 = vector.shape_cast %219 : vector<8x768xbf16> to vector<1x8x768xbf16>
    tpu.vector_store %arg2[%c0_61, %c0_62, %c0_63], %222 {strides = array<i32>} : memref<1x8x768xbf16, #tpu.memory_space<vmem>>, vector<1x8x768xbf16>,
    return
  }
  func.func @transform_0(%arg0: i32) -> (i32, i32, i32) {
    %c0_i32 = arith.constant 0 : i32
    %c0_i32_0 = arith.constant 0 : i32
    %c0_i32_1 = arith.constant 0 : i32
    return %arg0, %c0_i32, %c0_i32_0 : i32, i32, i32
  }
  func.func @transform_1(%arg0: i32) -> (i32, i32, i32) {
    %c0_i32 = arith.constant 0 : i32
    %c0_i32_0 = arith.constant 0 : i32
    %c0_i32_1 = arith.constant 0 : i32
    return %arg0, %c0_i32, %c0_i32_0 : i32, i32, i32
  }
}

module attributes {stable_mosaic.version = 11 : i64} {
  func.func @_layernorm_kernel(%arg0: i32, %arg1: memref<16x768xf32, #tpu.memory_space<vmem>>, %arg2: memref<1x768xf32, #tpu.memory_space<vmem>>, %arg3: memref<1x768xf32, #tpu.memory_space<vmem>>, %arg4: memref<16x768xbf16, #tpu.memory_space<vmem>>) attributes {dimension_semantics = [#tpu.dimension_semantics<parallel>], iteration_bounds = array<i64: 1>, scalar_prefetch = 0 : i64, scratch_operands = 0 : i64, tpu.core_type = #tpu.core_type<tc>, window_params = [{transform_indices = @transform_0, window_bounds = array<i64: 16, 768>}, {pipeline_mode = #tpu.pipeline_mode<synchronous>, transform_indices = @transform_1, window_bounds = array<i64: 1, 768>}, {pipeline_mode = #tpu.pipeline_mode<synchronous>, transform_indices = @transform_2, window_bounds = array<i64: 1, 768>}, {transform_indices = @transform_3, window_bounds = array<i64: 16, 768>}]} {
    %c0 = arith.constant 0 : index
    %c0_0 = arith.constant 0 : index
    %0 = vector.load %arg1[%c0, %c0_0] : memref<16x768xf32, #tpu.memory_space<vmem>>, vector<16x768xf32>
    %cst = arith.constant dense<0.000000e+00> : vector<16xf32>
    %1 = vector.multi_reduction <add>, %0, %cst [1] : vector<16x768xf32> to vector<16xf32>
    %2 = vector.shape_cast %1 : vector<16xf32> to vector<16x1xf32>
    %cst_1 = arith.constant 7.680000e+02 : f32
    %3 = vector.broadcast %cst_1 : f32 to vector<16x1xf32>
    %4 = arith.divf %2, %3 : vector<16x1xf32>
    %5 = vector.broadcast %4 : vector<16x1xf32> to vector<16x768xf32>
    %6 = arith.subf %0, %5 : vector<16x768xf32>
    %7 = arith.mulf %6, %6 : vector<16x768xf32>
    %cst_2 = arith.constant dense<0.000000e+00> : vector<16xf32>
    %8 = vector.multi_reduction <add>, %7, %cst_2 [1] : vector<16x768xf32> to vector<16xf32>
    %9 = vector.shape_cast %8 : vector<16xf32> to vector<16x1xf32>
    %cst_3 = arith.constant 7.680000e+02 : f32
    %10 = vector.broadcast %cst_3 : f32 to vector<16x1xf32>
    %11 = arith.divf %9, %10 : vector<16x1xf32>
    %12 = vector.broadcast %4 : vector<16x1xf32> to vector<16x768xf32>
    %13 = arith.subf %0, %12 : vector<16x768xf32>
    %cst_4 = arith.constant 9.99999996E-13 : f32
    %14 = vector.broadcast %cst_4 : f32 to vector<16x1xf32>
    %15 = arith.addf %11, %14 : vector<16x1xf32>
    %16 = math.rsqrt %15 : vector<16x1xf32>
    %17 = vector.broadcast %16 : vector<16x1xf32> to vector<16x768xf32>
    %18 = arith.mulf %13, %17 : vector<16x768xf32>
    %c0_5 = arith.constant 0 : index
    %c0_6 = arith.constant 0 : index
    %19 = vector.load %arg2[%c0_5, %c0_6] : memref<1x768xf32, #tpu.memory_space<vmem>>, vector<1x768xf32>
    %20 = vector.broadcast %19 : vector<1x768xf32> to vector<16x768xf32>
    %21 = arith.mulf %18, %20 : vector<16x768xf32>
    %c0_7 = arith.constant 0 : index
    %c0_8 = arith.constant 0 : index
    %22 = vector.load %arg3[%c0_7, %c0_8] : memref<1x768xf32, #tpu.memory_space<vmem>>, vector<1x768xf32>
    %23 = vector.broadcast %22 : vector<1x768xf32> to vector<16x768xf32>
    %24 = arith.addf %21, %23 : vector<16x768xf32>
    %25 = arith.truncf %24 : vector<16x768xf32> to vector<16x768xbf16>
    %c0_9 = arith.constant 0 : index
    %c0_10 = arith.constant 0 : index
    %26 = vector.load %arg4[%c0_9, %c0_10] : memref<16x768xbf16, #tpu.memory_space<vmem>>, vector<16x768xbf16>
    tpu.vector_store %arg4[%c0_9, %c0_10], %25 {strides = array<i32>} : memref<16x768xbf16, #tpu.memory_space<vmem>>, vector<16x768xbf16>,
    return
  }
  func.func @transform_0(%arg0: i32) -> (i32, i32) {
    %c0_i32 = arith.constant 0 : i32
    %c0_i32_0 = arith.constant 0 : i32
    return %arg0, %c0_i32 : i32, i32
  }
  func.func @transform_1(%arg0: i32) -> (i32, i32) {
    %c0_i32 = arith.constant 0 : i32
    %c0_i32_0 = arith.constant 0 : i32
    %c0_i32_1 = arith.constant 0 : i32
    return %c0_i32, %c0_i32_0 : i32, i32
  }
  func.func @transform_2(%arg0: i32) -> (i32, i32) {
    %c0_i32 = arith.constant 0 : i32
    %c0_i32_0 = arith.constant 0 : i32
    %c0_i32_1 = arith.constant 0 : i32
    return %c0_i32, %c0_i32_0 : i32, i32
  }
  func.func @transform_3(%arg0: i32) -> (i32, i32) {
    %c0_i32 = arith.constant 0 : i32
    %c0_i32_0 = arith.constant 0 : i32
    return %arg0, %c0_i32 : i32, i32
  }
}

module attributes {stable_mosaic.version = 11 : i64} {
  func.func @_layernorm_kernel(%arg0: i32, %arg1: memref<16x768xbf16, #tpu.memory_space<vmem>>, %arg2: memref<16x768xbf16, #tpu.memory_space<vmem>>, %arg3: memref<1x768xf32, #tpu.memory_space<vmem>>, %arg4: memref<1x768xf32, #tpu.memory_space<vmem>>, %arg5: memref<16x768xbf16, #tpu.memory_space<vmem>>) attributes {dimension_semantics = [#tpu.dimension_semantics<parallel>], iteration_bounds = array<i64: 1>, scalar_prefetch = 0 : i64, scratch_operands = 0 : i64, tpu.core_type = #tpu.core_type<tc>, window_params = [{transform_indices = @transform_0, window_bounds = array<i64: 16, 768>}, {transform_indices = @transform_1, window_bounds = array<i64: 16, 768>}, {pipeline_mode = #tpu.pipeline_mode<synchronous>, transform_indices = @transform_2, window_bounds = array<i64: 1, 768>}, {pipeline_mode = #tpu.pipeline_mode<synchronous>, transform_indices = @transform_3, window_bounds = array<i64: 1, 768>}, {transform_indices = @transform_4, window_bounds = array<i64: 16, 768>}]} {
    %c0 = arith.constant 0 : index
    %c0_0 = arith.constant 0 : index
    %0 = vector.load %arg1[%c0, %c0_0] : memref<16x768xbf16, #tpu.memory_space<vmem>>, vector<16x768xbf16>
    %1 = arith.extf %0 : vector<16x768xbf16> to vector<16x768xf32>
    %c0_1 = arith.constant 0 : index
    %c0_2 = arith.constant 0 : index
    %2 = vector.load %arg2[%c0_1, %c0_2] : memref<16x768xbf16, #tpu.memory_space<vmem>>, vector<16x768xbf16>
    %3 = arith.extf %2 : vector<16x768xbf16> to vector<16x768xf32>
    %4 = arith.addf %1, %3 : vector<16x768xf32>
    %cst = arith.constant dense<0.000000e+00> : vector<16xf32>
    %5 = vector.multi_reduction <add>, %4, %cst [1] : vector<16x768xf32> to vector<16xf32>
    %6 = vector.shape_cast %5 : vector<16xf32> to vector<16x1xf32>
    %cst_3 = arith.constant 7.680000e+02 : f32
    %7 = vector.broadcast %cst_3 : f32 to vector<16x1xf32>
    %8 = arith.divf %6, %7 : vector<16x1xf32>
    %9 = vector.broadcast %8 : vector<16x1xf32> to vector<16x768xf32>
    %10 = arith.subf %4, %9 : vector<16x768xf32>
    %11 = arith.mulf %10, %10 : vector<16x768xf32>
    %cst_4 = arith.constant dense<0.000000e+00> : vector<16xf32>
    %12 = vector.multi_reduction <add>, %11, %cst_4 [1] : vector<16x768xf32> to vector<16xf32>
    %13 = vector.shape_cast %12 : vector<16xf32> to vector<16x1xf32>
    %cst_5 = arith.constant 7.680000e+02 : f32
    %14 = vector.broadcast %cst_5 : f32 to vector<16x1xf32>
    %15 = arith.divf %13, %14 : vector<16x1xf32>
    %16 = vector.broadcast %8 : vector<16x1xf32> to vector<16x768xf32>
    %17 = arith.subf %4, %16 : vector<16x768xf32>
    %cst_6 = arith.constant 9.99999996E-13 : f32
    %18 = vector.broadcast %cst_6 : f32 to vector<16x1xf32>
    %19 = arith.addf %15, %18 : vector<16x1xf32>
    %20 = math.rsqrt %19 : vector<16x1xf32>
    %21 = vector.broadcast %20 : vector<16x1xf32> to vector<16x768xf32>
    %22 = arith.mulf %17, %21 : vector<16x768xf32>
    %c0_7 = arith.constant 0 : index
    %c0_8 = arith.constant 0 : index
    %23 = vector.load %arg3[%c0_7, %c0_8] : memref<1x768xf32, #tpu.memory_space<vmem>>, vector<1x768xf32>
    %24 = vector.broadcast %23 : vector<1x768xf32> to vector<16x768xf32>
    %25 = arith.mulf %22, %24 : vector<16x768xf32>
    %c0_9 = arith.constant 0 : index
    %c0_10 = arith.constant 0 : index
    %26 = vector.load %arg4[%c0_9, %c0_10] : memref<1x768xf32, #tpu.memory_space<vmem>>, vector<1x768xf32>
    %27 = vector.broadcast %26 : vector<1x768xf32> to vector<16x768xf32>
    %28 = arith.addf %25, %27 : vector<16x768xf32>
    %29 = arith.truncf %28 : vector<16x768xf32> to vector<16x768xbf16>
    %c0_11 = arith.constant 0 : index
    %c0_12 = arith.constant 0 : index
    %30 = vector.load %arg5[%c0_11, %c0_12] : memref<16x768xbf16, #tpu.memory_space<vmem>>, vector<16x768xbf16>
    tpu.vector_store %arg5[%c0_11, %c0_12], %29 {strides = array<i32>} : memref<16x768xbf16, #tpu.memory_space<vmem>>, vector<16x768xbf16>,
    return
  }
  func.func @transform_0(%arg0: i32) -> (i32, i32) {
    %c0_i32 = arith.constant 0 : i32
    %c0_i32_0 = arith.constant 0 : i32
    return %arg0, %c0_i32 : i32, i32
  }
  func.func @transform_1(%arg0: i32) -> (i32, i32) {
    %c0_i32 = arith.constant 0 : i32
    %c0_i32_0 = arith.constant 0 : i32
    return %arg0, %c0_i32 : i32, i32
  }
  func.func @transform_2(%arg0: i32) -> (i32, i32) {
    %c0_i32 = arith.constant 0 : i32
    %c0_i32_0 = arith.constant 0 : i32
    %c0_i32_1 = arith.constant 0 : i32
    return %c0_i32, %c0_i32_0 : i32, i32
  }
  func.func @transform_3(%arg0: i32) -> (i32, i32) {
    %c0_i32 = arith.constant 0 : i32
    %c0_i32_0 = arith.constant 0 : i32
    %c0_i32_1 = arith.constant 0 : i32
    return %c0_i32, %c0_i32_0 : i32, i32
  }
  func.func @transform_4(%arg0: i32) -> (i32, i32) {
    %c0_i32 = arith.constant 0 : i32
    %c0_i32_0 = arith.constant 0 : i32
    return %arg0, %c0_i32 : i32, i32
  }
}

module attributes {stable_mosaic.version = 11 : i64} {
  func.func @_matmul_bias_kernel(%arg0: i32, %arg1: i32, %arg2: i32, %arg3: memref<16x256xbf16, #tpu.memory_space<vmem>>, %arg4: memref<256x256xbf16, #tpu.memory_space<vmem>>, %arg5: memref<1x256xf32, #tpu.memory_space<vmem>>, %arg6: memref<16x256xbf16, #tpu.memory_space<vmem>>, %arg7: memref<16x256xf32, #tpu.memory_space<vmem>>) attributes {dimension_semantics = [#tpu.dimension_semantics<parallel>, #tpu.dimension_semantics<parallel>, #tpu.dimension_semantics<arbitrary>], iteration_bounds = array<i64: 1, 3, 12>, scalar_prefetch = 0 : i64, scratch_operands = 1 : i64, tpu.core_type = #tpu.core_type<tc>, window_params = [{transform_indices = @transform_0, window_bounds = array<i64: 16, 256>}, {transform_indices = @transform_1, window_bounds = array<i64: 256, 256>}, {transform_indices = @transform_2, window_bounds = array<i64: 1, 256>}, {transform_indices = @transform_3, window_bounds = array<i64: 16, 256>}]} {
    %c0_i32 = arith.constant 0 : i32
    %0 = arith.cmpi eq, %arg2, %c0_i32 : i32
    %1 = arith.extui %0 : i1 to i32
    %c0_i32_0 = arith.constant 0 : i32
    %2 = arith.cmpi ne, %1, %c0_i32_0 : i32
    scf.if %2 {
      %cst_9 = arith.constant 0.000000e+00 : f32
      %12 = vector.broadcast %cst_9 : f32 to vector<16x256xf32>
      %c0_10 = arith.constant 0 : index
      %c0_11 = arith.constant 0 : index
      %13 = vector.load %arg7[%c0_10, %c0_11] : memref<16x256xf32, #tpu.memory_space<vmem>>, vector<16x256xf32>
      tpu.vector_store %arg7[%c0_10, %c0_11], %12 {strides = array<i32>} : memref<16x256xf32, #tpu.memory_space<vmem>>, vector<16x256xf32>,
    } else {
    }
    %c0 = arith.constant 0 : index
    %c0_1 = arith.constant 0 : index
    %3 = vector.load %arg7[%c0, %c0_1] : memref<16x256xf32, #tpu.memory_space<vmem>>, vector<16x256xf32>
    %c0_2 = arith.constant 0 : index
    %c0_3 = arith.constant 0 : index
    %4 = vector.load %arg3[%c0_2, %c0_3] : memref<16x256xbf16, #tpu.memory_space<vmem>>, vector<16x256xbf16>
    %c0_4 = arith.constant 0 : index
    %c0_5 = arith.constant 0 : index
    %5 = vector.load %arg4[%c0_4, %c0_5] : memref<256x256xbf16, #tpu.memory_space<vmem>>, vector<256x256xbf16>
    %cst = arith.constant dense<0.000000e+00> : vector<16x256xf32>
    %6 = tpu.matmul %4, %5, %cst {dimension_numbers = #tpu.dot_dimension_numbers<[1], [0], [0], [1], [0, 0, 1, 1], [], []>} : vector<16x256xbf16>, vector<256x256xbf16>, vector<16x256xf32> -> vector<16x256xf32>
    %7 = arith.addf %3, %6 : vector<16x256xf32>
    %c0_6 = arith.constant 0 : index
    %c0_7 = arith.constant 0 : index
    %8 = vector.load %arg7[%c0_6, %c0_7] : memref<16x256xf32, #tpu.memory_space<vmem>>, vector<16x256xf32>
    tpu.vector_store %arg7[%c0_6, %c0_7], %7 {strides = array<i32>} : memref<16x256xf32, #tpu.memory_space<vmem>>, vector<16x256xf32>,
    %c11_i32 = arith.constant 11 : i32
    %9 = arith.cmpi eq, %arg2, %c11_i32 : i32
    %10 = arith.extui %9 : i1 to i32
    %c0_i32_8 = arith.constant 0 : i32
    %11 = arith.cmpi ne, %10, %c0_i32_8 : i32
    scf.if %11 {
      %c0_9 = arith.constant 0 : index
      %c0_10 = arith.constant 0 : index
      %12 = vector.load %arg7[%c0_9, %c0_10] : memref<16x256xf32, #tpu.memory_space<vmem>>, vector<16x256xf32>
      %c0_11 = arith.constant 0 : index
      %c0_12 = arith.constant 0 : index
      %13 = vector.load %arg5[%c0_11, %c0_12] : memref<1x256xf32, #tpu.memory_space<vmem>>, vector<1x256xf32>
      %14 = vector.broadcast %13 : vector<1x256xf32> to vector<16x256xf32>
      %15 = arith.addf %12, %14 : vector<16x256xf32>
      %16 = arith.truncf %15 : vector<16x256xf32> to vector<16x256xbf16>
      %c0_13 = arith.constant 0 : index
      %c0_14 = arith.constant 0 : index
      %17 = vector.load %arg6[%c0_13, %c0_14] : memref<16x256xbf16, #tpu.memory_space<vmem>>, vector<16x256xbf16>
      tpu.vector_store %arg6[%c0_13, %c0_14], %16 {strides = array<i32>} : memref<16x256xbf16, #tpu.memory_space<vmem>>, vector<16x256xbf16>,
    } else {
    }
    return
  }
  func.func @transform_0(%arg0: i32, %arg1: i32, %arg2: i32) -> (i32, i32) {
    %c0_i32 = arith.constant 0 : i32
    return %arg0, %arg2 : i32, i32
  }
  func.func @transform_1(%arg0: i32, %arg1: i32, %arg2: i32) -> (i32, i32) {
    %c0_i32 = arith.constant 0 : i32
    return %arg2, %arg1 : i32, i32
  }
  func.func @transform_2(%arg0: i32, %arg1: i32, %arg2: i32) -> (i32, i32) {
    %c0_i32 = arith.constant 0 : i32
    %c0_i32_0 = arith.constant 0 : i32
    return %c0_i32, %arg1 : i32, i32
  }
  func.func @transform_3(%arg0: i32, %arg1: i32, %arg2: i32) -> (i32, i32) {
    %c0_i32 = arith.constant 0 : i32
    return %arg0, %arg1 : i32, i32
  }
}

module attributes {stable_mosaic.version = 11 : i64} {
  func.func @_matmul_bias_kernel(%arg0: i32, %arg1: i32, %arg2: i32, %arg3: memref<16x256xbf16, #tpu.memory_space<vmem>>, %arg4: memref<256x256xbf16, #tpu.memory_space<vmem>>, %arg5: memref<1x256xf32, #tpu.memory_space<vmem>>, %arg6: memref<16x256xbf16, #tpu.memory_space<vmem>>, %arg7: memref<16x256xf32, #tpu.memory_space<vmem>>) attributes {dimension_semantics = [#tpu.dimension_semantics<parallel>, #tpu.dimension_semantics<parallel>, #tpu.dimension_semantics<arbitrary>], iteration_bounds = array<i64: 1, 12, 3>, scalar_prefetch = 0 : i64, scratch_operands = 1 : i64, tpu.core_type = #tpu.core_type<tc>, window_params = [{transform_indices = @transform_0, window_bounds = array<i64: 16, 256>}, {transform_indices = @transform_1, window_bounds = array<i64: 256, 256>}, {transform_indices = @transform_2, window_bounds = array<i64: 1, 256>}, {transform_indices = @transform_3, window_bounds = array<i64: 16, 256>}]} {
    %c0_i32 = arith.constant 0 : i32
    %0 = arith.cmpi eq, %arg2, %c0_i32 : i32
    %1 = arith.extui %0 : i1 to i32
    %c0_i32_0 = arith.constant 0 : i32
    %2 = arith.cmpi ne, %1, %c0_i32_0 : i32
    scf.if %2 {
      %cst_9 = arith.constant 0.000000e+00 : f32
      %12 = vector.broadcast %cst_9 : f32 to vector<16x256xf32>
      %c0_10 = arith.constant 0 : index
      %c0_11 = arith.constant 0 : index
      %13 = vector.load %arg7[%c0_10, %c0_11] : memref<16x256xf32, #tpu.memory_space<vmem>>, vector<16x256xf32>
      tpu.vector_store %arg7[%c0_10, %c0_11], %12 {strides = array<i32>} : memref<16x256xf32, #tpu.memory_space<vmem>>, vector<16x256xf32>,
    } else {
    }
    %c0 = arith.constant 0 : index
    %c0_1 = arith.constant 0 : index
    %3 = vector.load %arg7[%c0, %c0_1] : memref<16x256xf32, #tpu.memory_space<vmem>>, vector<16x256xf32>
    %c0_2 = arith.constant 0 : index
    %c0_3 = arith.constant 0 : index
    %4 = vector.load %arg3[%c0_2, %c0_3] : memref<16x256xbf16, #tpu.memory_space<vmem>>, vector<16x256xbf16>
    %c0_4 = arith.constant 0 : index
    %c0_5 = arith.constant 0 : index
    %5 = vector.load %arg4[%c0_4, %c0_5] : memref<256x256xbf16, #tpu.memory_space<vmem>>, vector<256x256xbf16>
    %cst = arith.constant dense<0.000000e+00> : vector<16x256xf32>
    %6 = tpu.matmul %4, %5, %cst {dimension_numbers = #tpu.dot_dimension_numbers<[1], [0], [0], [1], [0, 0, 1, 1], [], []>} : vector<16x256xbf16>, vector<256x256xbf16>, vector<16x256xf32> -> vector<16x256xf32>
    %7 = arith.addf %3, %6 : vector<16x256xf32>
    %c0_6 = arith.constant 0 : index
    %c0_7 = arith.constant 0 : index
    %8 = vector.load %arg7[%c0_6, %c0_7] : memref<16x256xf32, #tpu.memory_space<vmem>>, vector<16x256xf32>
    tpu.vector_store %arg7[%c0_6, %c0_7], %7 {strides = array<i32>} : memref<16x256xf32, #tpu.memory_space<vmem>>, vector<16x256xf32>,
    %c2_i32 = arith.constant 2 : i32
    %9 = arith.cmpi eq, %arg2, %c2_i32 : i32
    %10 = arith.extui %9 : i1 to i32
    %c0_i32_8 = arith.constant 0 : i32
    %11 = arith.cmpi ne, %10, %c0_i32_8 : i32
    scf.if %11 {
      %c0_9 = arith.constant 0 : index
      %c0_10 = arith.constant 0 : index
      %12 = vector.load %arg7[%c0_9, %c0_10] : memref<16x256xf32, #tpu.memory_space<vmem>>, vector<16x256xf32>
      %c0_11 = arith.constant 0 : index
      %c0_12 = arith.constant 0 : index
      %13 = vector.load %arg5[%c0_11, %c0_12] : memref<1x256xf32, #tpu.memory_space<vmem>>, vector<1x256xf32>
      %14 = vector.broadcast %13 : vector<1x256xf32> to vector<16x256xf32>
      %15 = arith.addf %12, %14 : vector<16x256xf32>
      %16 = arith.mulf %15, %15 : vector<16x256xf32>
      %17 = arith.mulf %15, %16 : vector<16x256xf32>
      %cst_13 = arith.constant 4.471500e-02 : f32
      %18 = vector.broadcast %cst_13 : f32 to vector<16x256xf32>
      %19 = arith.mulf %18, %17 : vector<16x256xf32>
      %20 = arith.addf %15, %19 : vector<16x256xf32>
      %cst_14 = arith.constant 0.797884583 : f32
      %21 = vector.broadcast %cst_14 : f32 to vector<16x256xf32>
      %22 = arith.mulf %21, %20 : vector<16x256xf32>
      %23 = math.tanh %22 : vector<16x256xf32>
      %cst_15 = arith.constant 1.000000e+00 : f32
      %24 = vector.broadcast %cst_15 : f32 to vector<16x256xf32>
      %25 = arith.addf %24, %23 : vector<16x256xf32>
      %cst_16 = arith.constant 5.000000e-01 : f32
      %26 = vector.broadcast %cst_16 : f32 to vector<16x256xf32>
      %27 = arith.mulf %26, %25 : vector<16x256xf32>
      %28 = arith.mulf %15, %27 : vector<16x256xf32>
      %29 = arith.truncf %28 : vector<16x256xf32> to vector<16x256xbf16>
      %c0_17 = arith.constant 0 : index
      %c0_18 = arith.constant 0 : index
      %30 = vector.load %arg6[%c0_17, %c0_18] : memref<16x256xbf16, #tpu.memory_space<vmem>>, vector<16x256xbf16>
      tpu.vector_store %arg6[%c0_17, %c0_18], %29 {strides = array<i32>} : memref<16x256xbf16, #tpu.memory_space<vmem>>, vector<16x256xbf16>,
    } else {
    }
    return
  }
  func.func @transform_0(%arg0: i32, %arg1: i32, %arg2: i32) -> (i32, i32) {
    %c0_i32 = arith.constant 0 : i32
    return %arg0, %arg2 : i32, i32
  }
  func.func @transform_1(%arg0: i32, %arg1: i32, %arg2: i32) -> (i32, i32) {
    %c0_i32 = arith.constant 0 : i32
    return %arg2, %arg1 : i32, i32
  }
  func.func @transform_2(%arg0: i32, %arg1: i32, %arg2: i32) -> (i32, i32) {
    %c0_i32 = arith.constant 0 : i32
    %c0_i32_0 = arith.constant 0 : i32
    return %c0_i32, %arg1 : i32, i32
  }
  func.func @transform_3(%arg0: i32, %arg1: i32, %arg2: i32) -> (i32, i32) {
    %c0_i32 = arith.constant 0 : i32
    return %arg0, %arg1 : i32, i32
  }
}

module attributes {stable_mosaic.version = 11 : i64} {
  func.func @_pool_classify_kernel(%arg0: i32, %arg1: memref<2x8x768xbf16, #tpu.memory_space<vmem>>, %arg2: memref<768x128xbf16, #tpu.memory_space<vmem>>, %arg3: memref<1x128xf32, #tpu.memory_space<vmem>>, %arg4: memref<2x128xf32, #tpu.memory_space<vmem>>) attributes {dimension_semantics = [#tpu.dimension_semantics<arbitrary>], iteration_bounds = array<i64: 1>, scalar_prefetch = 0 : i64, scratch_operands = 0 : i64, tpu.core_type = #tpu.core_type<tc>, window_params = [{pipeline_mode = #tpu.pipeline_mode<synchronous>, transform_indices = @transform_0, window_bounds = array<i64: 2, 8, 768>}, {pipeline_mode = #tpu.pipeline_mode<synchronous>, transform_indices = @transform_1, window_bounds = array<i64: 768, 128>}, {pipeline_mode = #tpu.pipeline_mode<synchronous>, transform_indices = @transform_2, window_bounds = array<i64: 1, 128>}, {pipeline_mode = #tpu.pipeline_mode<synchronous>, transform_indices = @transform_3, window_bounds = array<i64: 2, 128>}]} {
    %c0 = arith.constant 0 : index
    %c0_0 = arith.constant 0 : index
    %c0_1 = arith.constant 0 : index
    %0 = vector.load %arg1[%c0, %c0_0, %c0_1] : memref<2x8x768xbf16, #tpu.memory_space<vmem>>, vector<2x8x768xbf16>
    %1 = arith.extf %0 : vector<2x8x768xbf16> to vector<2x8x768xf32>
    %cst = arith.constant dense<0.000000e+00> : vector<2x768xf32>
    %2 = vector.multi_reduction <add>, %1, %cst [1] : vector<2x8x768xf32> to vector<2x768xf32>
    %cst_2 = arith.constant 1.250000e-01 : f32
    %3 = vector.broadcast %cst_2 : f32 to vector<2x768xf32>
    %4 = arith.mulf %2, %3 : vector<2x768xf32>
    %5 = arith.truncf %4 : vector<2x768xf32> to vector<2x768xbf16>
    %c0_3 = arith.constant 0 : index
    %c0_4 = arith.constant 0 : index
    %6 = vector.load %arg2[%c0_3, %c0_4] : memref<768x128xbf16, #tpu.memory_space<vmem>>, vector<768x128xbf16>
    %cst_5 = arith.constant dense<0.000000e+00> : vector<2x128xf32>
    %7 = tpu.matmul %5, %6, %cst_5 {dimension_numbers = #tpu.dot_dimension_numbers<[1], [0], [0], [1], [0, 0, 1, 1], [], []>} : vector<2x768xbf16>, vector<768x128xbf16>, vector<2x128xf32> -> vector<2x128xf32>
    %c0_6 = arith.constant 0 : index
    %c0_7 = arith.constant 0 : index
    %8 = vector.load %arg3[%c0_6, %c0_7] : memref<1x128xf32, #tpu.memory_space<vmem>>, vector<1x128xf32>
    %9 = vector.broadcast %8 : vector<1x128xf32> to vector<2x128xf32>
    %10 = arith.addf %7, %9 : vector<2x128xf32>
    %c0_8 = arith.constant 0 : index
    %c0_9 = arith.constant 0 : index
    %11 = vector.load %arg4[%c0_8, %c0_9] : memref<2x128xf32, #tpu.memory_space<vmem>>, vector<2x128xf32>
    tpu.vector_store %arg4[%c0_8, %c0_9], %10 {strides = array<i32>} : memref<2x128xf32, #tpu.memory_space<vmem>>, vector<2x128xf32>,
    return
  }
  func.func @transform_0(%arg0: i32) -> (i32, i32, i32) {
    %c0_i32 = arith.constant 0 : i32
    %c0_i32_0 = arith.constant 0 : i32
    %c0_i32_1 = arith.constant 0 : i32
    %c0_i32_2 = arith.constant 0 : i32
    return %c0_i32, %c0_i32_0, %c0_i32_1 : i32, i32, i32
  }
  func.func @transform_1(%arg0: i32) -> (i32, i32) {
    %c0_i32 = arith.constant 0 : i32
    %c0_i32_0 = arith.constant 0 : i32
    %c0_i32_1 = arith.constant 0 : i32
    return %c0_i32, %c0_i32_0 : i32, i32
  }
  func.func @transform_2(%arg0: i32) -> (i32, i32) {
    %c0_i32 = arith.constant 0 : i32
    %c0_i32_0 = arith.constant 0 : i32
    %c0_i32_1 = arith.constant 0 : i32
    return %c0_i32, %c0_i32_0 : i32, i32
  }
  func.func @transform_3(%arg0: i32) -> (i32, i32) {
    %c0_i32 = arith.constant 0 : i32
    %c0_i32_0 = arith.constant 0 : i32
    %c0_i32_1 = arith.constant 0 : i32
    return %c0_i32, %c0_i32_0 : i32, i32
  }
}

</mosaic_0001>

<bundles_post_ra>
// kernel: base_model_forward.88
= control target key start
LH: loop header
LB: loop body
LE: loop exit
PB: predicated region body
PF: predicated region fallthrough
CT: control target
= control target key end

     0   :  { %s1040_s6 = smov 0   ;;  %s1322_s0 = inlined_call_operand.vmem [shape: bf16[2,8,2304], index: 0, kind: input, shape index: {}]   ;;  %s1323_s1 = inlined_call_operand.vmem [shape: bf16[2,8,768], index: 1, kind: output, shape index: {}]  }
   0x1 LB: > { %s914_s7 = sadd.s32 4294967295, %s1027_s6   ;;  %p918_p0 = scmp.ge.s32.totalorder %s1027_s6, 1  ;;  %s1027_s6 = sphi %s1040_s6, %s11_s6  }
   0x2   : > { %p87_p1 = scmp.lt.s32.totalorder %s1027_s6, 3 }
   0x4   : > { %p88_p2 = pnand %p918_p0, %p87_p1 }
   0x5   : > { %p107_p3 = scmp.lt.s32.totalorder (!%p88_p2), %s914_s7, 1  ;;  %s1029_s12 = smov (!%p88_p2), 64  }
   0x6   : > { %91 = sbr.rel (%p88_p2) target bundleno = 1103 (0x44f), region = 24 }
   0xb   : > { %s1325_s7 = smov (!%p107_p3, %s914_s7), 1  ;;  %vm127_vm0 = vcmask 523264   ;;  %vm148_vm1 = vcmask 64512   ;;  %vm164_vm2 = vcmask 1043456  }
   0xc   : > { %s947_s8 = smul.u32 72, %s1325_s7 }
   0xd   : > { %s948_s13 = smul.u32 24, %s1325_s7 }
   0xe   : > { %s1054_s11 = scalar_lea.vmem %s1322_s0, %s947_s8 }
   0xf   : > { %v121_v0 = vld [vmem:[%s1054_s11 + $0x18] sm:$0xff]  ;;  %v118_v2 = vld [vmem:[%s1054_s11] sm:$0xff]  ;;  %v1067_v9 = vld [vmem:[%s1054_s11 + $0x8] sm:$0xff]  ;;  %s1306_s16 = scalar_lea.vmem %s1323_s1, %s948_s13 }
  0x10   : > { %v132_v1 = vsel %vm127_vm0, %v121_v0, 0  ;;  %v247_v3 = vunpack.c.h.b16 %v118_v2  ;;  %v187_v5 = vunpack.c.l.b16 %v121_v0  ;;  %v182_v7 = vunpack.c.l.b16 %v118_v2  ;;  %v1072_v13 = vld [vmem:[%s1054_s11 + $0x20] sm:$0xff]  ;;  %v1091_v29 = vld [vmem:[%s1054_s11 + $0x10] sm:$0xff]  ;;  %v1096_v32 = vld [vmem:[%s1054_s11 + $0x28] sm:$0xff] }
  0x11   : > { %141 = vmatpush.bf16.xpose.msra.mxu0 %v132_v1  ;;  %v413_v11 = vunpack.c.l.b16 %v1067_v9  ;;  %v418_v16 = vunpack.c.l.b16 %v1072_v13  ;;  %v478_v17 = vunpack.c.h.b16 %v1067_v9  ;;  %v249_v25 = vunpack.c.h.b16 %v121_v0  ;;  %v1119_v56 = vld [vmem:[%s1054_s11 + $0x30] sm:$0xff] }
  0x12   : > { %v1059_v4 = vpack.c.b16 %v247_v3, %v247_v3  ;;  %v188_v6 = vpack.c.b16 %v187_v5, %v187_v5  ;;  %v183_v8 = vpack.c.b16 %v182_v7, %v182_v7  ;;  %v480_v27 = vunpack.c.h.b16 %v1072_v13 }
  0x13   : > { %v414_v12 = vpack.c.b16 %v413_v11, %v413_v11  ;;  %v419_v20 = vpack.c.b16 %v418_v16, %v418_v16  ;;  %v1077_v21 = vpack.c.b16 %v478_v17, %v478_v17  ;;  %v250_v26 = vpack.c.b16 %v249_v25, %v249_v25 }
  0x14   : > { %304 = vrot.lane.b32.xlu1 %v1059_v4, %s1029_s12  ;;  %v1086_v28 = vpack.c.b16 %v480_v27, %v480_v27  ;;  %v644_v30 = vunpack.c.l.b16 %v1091_v29  ;;  %v711_v35 = vunpack.c.h.b16 %v1096_v32  ;;  %v649_v47 = vunpack.c.l.b16 %v1096_v32 }
  0x15   : > { %420 = vrot.lane.b32.xlu2 %v419_v20, %s1029_s12  ;;  %v709_v50 = vunpack.c.h.b16 %v1091_v29  ;;  %v166_v57 = vsel %vm164_vm2, %v1119_v56, 0  ;;  %v255_v58 = vsel %vm127_vm0, %v250_v26, 0  ;;  %v365_v3 = vsel %vm127_vm0, %v1072_v13, 0 }
  0x16   : > { %v645_v31 = vpack.c.b16 %v644_v30, %v644_v30  ;;  %v1099_v37 = vpack.c.b16 %v711_v35, %v711_v35  ;;  %v650_v48 = vpack.c.b16 %v649_v47, %v649_v47  ;;  %175 = vmatpush.bf16.msra.mxu1 %v166_v57 }
  0x17   : > { %v710_v52 = vpack.c.b16 %v709_v50, %v709_v50 }
  0x18   : > { %921 = vmatmul.msk.bf16.vlgmr.msra.gmra.mxu0 %vm127_vm0, %v118_v2 }
  0x1a   : > { %264 = vmatpush.bf16.xpose.msrb.mxu1 %v255_v58 }
  0x1c   : > { %189 = vrot.lane.b32.xlu1 %v188_v6, %s1029_s12 }
  0x24   : > { %184 = vrot.lane.b32.xlu1 %v183_v8, %s1029_s12  ;;  %v486_v8 = vsel %vm127_vm0, %v1086_v28, 0 }
  0x2c   : > { %415 = vrot.lane.b32.xlu1 %v414_v12, %s1029_s12 }
  0x34   : > { %535 = vrot.lane.b32.xlu1 %v1077_v21, %s1029_s12 }
  0x3c   : > { %768 = vrot.lane.b32.xlu1 %v1099_v37, %s1029_s12 }
  0x6f   : > { %v421_v40 = vpop.permute.xlu2 %420 }
  0x70   : > { %v426_v42 = vsel %vm127_vm0, %v421_v40, 0 }
  0x86   : > { %v305_v10 = vpop.permute.xlu1 %304 }
  0x8e   : > { %v190_v15 = vpop.permute.xlu1 %189 }
  0x8f   : > { %v195_v19 = vsel %vm127_vm0, %v190_v15, 0  ;;  %v596_v15 = vsel %vm127_vm0, %v1096_v32, 0 }
  0x90   : > { %204 = vmatpush.bf16.xpose.msra.mxu2 %v195_v19  ;;  %v717_v19 = vsel %vm127_vm0, %v1099_v37, 0 }
  0x95   : > { %v143_v14 = vpop.f32.mrf.mxu0 }
  0x96   : > { %v147_v18 = vmul.f32 0.125, %v143_v14  ;;  %v185_v24 = vpop.permute.xlu1 %184 }
  0x97   : > { %923 = vmatmul.msk.bf16.vlgmr.msra.gmra.mxu2 %vm127_vm0, %v185_v24 }
  0x98   : > { %v149_v22 = vsel %vm148_vm1, %v147_v18, -inf }
  0x99   : > { %150 = vmax.xlane.f32.xlu0 %v149_v22 }
  0x9d   : > { %v145_v23 = vpop.f32.mrf.mxu0 }
  0x9e   : > { %v416_v51 = vpop.permute.xlu1 %415 }
  0xa6   : > { %v536_v53 = vpop.permute.xlu1 %535 }
  0xad   : > { %306 = vrot.lane.b32.xlu0 %v250_v26, %s1029_s12 }
  0xae   : > { %v769_v60 = vpop.permute.xlu1 %768 }
  0xaf   : > { %v774_v0 = vsel %vm127_vm0, %v769_v60, 0  ;;  %v1193_v60 = vld [vmem:[%s1054_s11 + $0x38] sm:$0xff] }
  0xb5   : > { %537 = vrot.lane.b32.xlu0 %v1086_v28, %s1029_s12 }
  0xbd   : > { %646 = vrot.lane.b32.xlu0 %v645_v31, %s1029_s12 }
 0x10c   : > { %v151_v33 = vpop.xlane.xlu0 %150 }
 0x10d   : > { %v152_v34 = vsub.f32 %v147_v18, %v151_v33 }
 0x10f   : > { %v153_v36 = vmul.f32 1.442695, %v152_v34 }
 0x111   : > { %973 = vpow2.f32 %v153_v36 }
 0x117   : > { %v974_v38 = vpop.eup %973 }
 0x118   : > { %v155_v39 = vsel %vm148_vm1, %v974_v38, 0.0 }
 0x119   : > { %156 = vadd.xlane.f32.xlu2 %v155_v39 }
 0x11a   : > { %v206_v46 = vpop.f32.mrf.mxu2 }
 0x11b   : > { %v1114_v54 = vmul.f32 0.125, %v206_v46 }
 0x11d   : > { %v211_v55 = vsel %vm148_vm1, %v1114_v54, -inf }
 0x11f   : > { %v307_v41 = vpop.permute.xlu0 %306 }
 0x120   : > { %v312_v43 = vsel %vm127_vm0, %v307_v41, 0 }
 0x121   : > { %321 = vmatpush.bf16.xpose.msrb.mxu0 %v312_v43 }
 0x122   : > { %v208_v49 = vpop.f32.mrf.mxu2 }
 0x127   : > { %v538_v44 = vpop.permute.xlu0 %537 }
 0x128   : > { %927 = vmatmul.msk.bf16.vlgmr.msrb.gmra.mxu0 %vm127_vm0, %v305_v10  ;;  %v543_v45 = vsel %vm127_vm0, %v538_v44, 0 }
 0x129   : > { %435 = vmatpush.bf16.xpose.msra.mxu0 %v426_v42 }
 0x12f   : > { %v647_v5 = vpop.permute.xlu0 %646 }
 0x131   : > { %552 = vmatpush.bf16.xpose.msrb.mxu0 %v543_v45  ;;  %651 = vrot.lane.b32.xlu2 %v650_v48, %s1029_s12 }
 0x138   : > { %931 = vmatmul.msk.bf16.vlgmr.msra.gmra.mxu0 %vm127_vm0, %v416_v51 }
 0x139   : > { %766 = vrot.lane.b32.xlu2 %v710_v52, %s1029_s12 }
 0x148   : > { %935 = vmatmul.msk.bf16.vlgmr.msrb.gmra.mxu0 %vm127_vm0, %v536_v53 }
 0x162   : > { %212 = vmax.xlane.f32.xlu2 %v211_v55 }
 0x18c   : > { %v157_v59 = vpop.xlane.xlu2 %156 }
 0x18d   : > { %975 = vrcp.f32 %v157_v59 }
 0x193   : > { %v976_v61 = vpop.eup %975 }
 0x194   : > { %v652_v62 = vpop.permute.xlu2 %651  ;;  %v159_v63 = vmul.f32 %v976_v61, %v974_v38 }
 0x195   : > { %v657_v1 = vsel %vm127_vm0, %v652_v62, 0  ;;  %v455_v62 = vunpack.c.l.b16 %v1193_v60 }
 0x196   : > { %666 = vmatpush.bf16.xpose.msra.mxu0 %v657_v1  ;;  %v160_v2 = vpack.c.bf16 %v159_v63, %v159_v63 }
 0x197   : > { %v456_v63 = vpack.c.b16 %v455_v62, %v455_v62 }
 0x198   : > { %922 = vmatmul.msk.bf16.vlgmr.msra.gmra.mxu1 %vm148_vm1, %v160_v2 }
 0x199   : > { %374 = vmatpush.bf16.xpose.msra.mxu1 %v365_v3  ;;  %v224_v3 = vunpack.c.l.b16 %v1119_v56 }
 0x19c   : > { %v767_v11 = vpop.permute.xlu2 %766 }
 0x19d   : > { %939 = vmatmul.msk.bf16.vlgmr.msra.gmra.mxu0 %vm127_vm0, %v647_v5  ;;  %v225_v5 = vpack.c.b16 %v224_v3, %v224_v3 }
 0x19e   : > { %783 = vmatpush.bf16.xpose.msrb.mxu0 %v774_v0 }
 0x1a5   : > { %v323_v6 = vpop.f32.mrf.mxu0 }
 0x1a6   : > { %v327_v7 = vmul.f32 0.125, %v323_v6 }
 0x1a8   : > { %925 = vmatmul.msk.bf16.vlgmr.msrb.gmra.mxu1 %vm127_vm0, %v1059_v4  ;;  %v328_v10 = vsel %vm148_vm1, %v327_v7, -inf }
 0x1a9   : > { %329 = vmax.xlane.f32.xlu0 %v328_v10  ;;  %495 = vmatpush.bf16.xpose.msrb.mxu1 %v486_v8 }
 0x1ad   : > { %v325_v12 = vpop.f32.mrf.mxu0  ;;  %943 = vmatmul.msk.bf16.vlgmr.msrb.gmra.mxu0 %vm127_vm0, %v767_v11  ;;  %v514_v11 = vunpack.c.h.b16 %v1193_v60 }
 0x1b5   : > { %v437_v13 = vpop.f32.mrf.mxu0 }
 0x1b6   : > { %v441_v14 = vmul.f32 0.125, %v437_v13 }
 0x1b8   : > { %929 = vmatmul.msk.bf16.vlgmr.msra.gmra.mxu1 %vm127_vm0, %v1067_v9  ;;  %v442_v16 = vsel %vm148_vm1, %v441_v14, -inf  ;;  %v283_v9 = vunpack.c.h.b16 %v1119_v56 }
 0x1b9   : > { %443 = vmax.xlane.f32.xlu1 %v442_v16  ;;  %605 = vmatpush.bf16.xpose.msra.mxu1 %v596_v15  ;;  %v1206_v15 = vpack.c.b16 %v514_v11, %v514_v11 }
 0x1ba   : > { %v1150_v23 = vpack.c.b16 %v283_v9, %v283_v9 }
 0x1bd   : > { %v439_v4 = vpop.f32.mrf.mxu0 }
 0x1c5   : > { %v554_v17 = vpop.f32.mrf.mxu0 }
 0x1c6   : > { %v1141_v18 = vmul.f32 0.125, %v554_v17 }
 0x1c8   : > { %933 = vmatmul.msk.bf16.vlgmr.msrb.gmra.mxu1 %vm127_vm0, %v1077_v21  ;;  %v559_v20 = vsel %vm148_vm1, %v1141_v18, -inf }
 0x1c9   : > { %560 = vmax.xlane.f32.xlu0 %v559_v20  ;;  %726 = vmatpush.bf16.xpose.msrb.mxu1 %v717_v19 }
 0x1cd   : > { %v556_v22 = vpop.f32.mrf.mxu0 }
 0x1d2   : > { %340 = vrot.lane.b32.xlu1 %v1150_v23, %s1029_s12 }
 0x1d5   : > { %v213_v26 = vpop.xlane.xlu2 %212 }
 0x1d6   : > { %v214_v32 = vsub.f32 %v1114_v54, %v213_v26  ;;  %v1220_v26 = vld [vmem:[%s1054_s11 + $0x40] sm:$0xff] }
 0x1d8   : > { %937 = vmatmul.msk.bf16.vlgmr.msra.gmra.mxu1 %vm127_vm0, %v1091_v29  ;;  %v215_v34 = vmul.f32 1.442695, %v214_v32 }
 0x1e8   : > { %941 = vmatmul.msk.bf16.vlgmr.msrb.gmra.mxu1 %vm127_vm0, %v710_v52 }
 0x215   : > { %v1157_v24 = vpop.f32.mrf.mxu1 }
 0x21a   : > { %v668_v21 = vpop.f32.mrf.mxu0 }
 0x21b   : > { %v1159_v25 = vmul.f32 0.125, %v668_v21 }
 0x21c   : > { %v330_v27 = vpop.xlane.xlu0 %329 }
 0x21d   : > { %v331_v28 = vsub.f32 %v327_v7, %v330_v27  ;;  %v179_v30 = vpop.f32.mrf.mxu1  ;;  %v673_v31 = vsel %vm148_vm1, %v1159_v25, -inf  ;;  %v686_v27 = vunpack.c.l.b16 %v1220_v26 }
 0x21e   : > { %674 = vmax.xlane.f32.xlu1 %v673_v31 }
 0x21f   : > { %v332_v33 = vmul.f32 1.442695, %v331_v28  ;;  %v687_v30 = vpack.c.b16 %v686_v27, %v686_v27 }
 0x221   : > { %977 = vpow2.f32 %v332_v33 }
 0x222   : > { %v670_v29 = vpop.f32.mrf.mxu0  ;;  %979 = vpow2.f32 %v215_v34 }
 0x225   : > { %v266_v35 = vpop.f32.mrf.mxu1 }
 0x226   : > { %v1176_v47 = vmul.f32 0.125, %v266_v35 }
 0x227   : > { %v1164_v36 = vpop.eup %977 }
 0x228   : > { %v334_v37 = vsel %vm148_vm1, %v1164_v36, 0.0  ;;  %v1170_v41 = vpop.eup %979  ;;  %v271_v50 = vsel %vm148_vm1, %v1176_v47, -inf }
 0x229   : > { %335 = vadd.xlane.f32.xlu2 %v334_v37  ;;  %v217_v46 = vsel %vm148_vm1, %v1170_v41, 0.0 }
 0x22a   : > { %v785_v38 = vpop.f32.mrf.mxu0 }
 0x22b   : > { %v1168_v39 = vmul.f32 0.125, %v785_v38 }
 0x22c   : > { %v444_v40 = vpop.xlane.xlu1 %443 }
 0x22d   : > { %v445_v42 = vsub.f32 %v441_v14, %v444_v40  ;;  %v268_v43 = vpop.f32.mrf.mxu1  ;;  %v790_v44 = vsel %vm148_vm1, %v1168_v39, -inf }
 0x22e   : > { %791 = vmax.xlane.f32.xlu0 %v790_v44 }
 0x22f   : > { %v446_v45 = vmul.f32 1.442695, %v445_v42 }
 0x231   : > { %981 = vpow2.f32 %v446_v45  ;;  %218 = vadd.xlane.f32.xlu2 %v217_v46 }
 0x232   : > { %v787_v48 = vpop.f32.mrf.mxu0 }
 0x235   : > { %v376_v49 = vpop.f32.mrf.mxu1 }
 0x236   : > { %v1184_v53 = vmul.f32 0.125, %v376_v49 }
 0x237   : > { %v1180_v51 = vpop.eup %981 }
 0x238   : > { %v448_v52 = vsel %vm148_vm1, %v1180_v51, 0.0  ;;  %v381_v55 = vsel %vm148_vm1, %v1184_v53, -inf }
 0x239   : > { %272 = vmax.xlane.f32.xlu2 %v271_v50  ;;  %449 = vadd.xlane.f32.xlu0 %v448_v52 }
 0x23c   : > { %v561_v10 = vpop.xlane.xlu0 %560 }
 0x23d   : > { %v378_v54 = vpop.f32.mrf.mxu1  ;;  %v562_v13 = vsub.f32 %v1141_v18, %v561_v10 }
 0x23f   : > { %v563_v56 = vmul.f32 1.442695, %v562_v13 }
 0x241   : > { %382 = vmax.xlane.f32.xlu0 %v381_v55  ;;  %983 = vpow2.f32 %v563_v56 }
 0x244   : > { %v341_v8 = vpop.permute.xlu1 %340 }
 0x245   : > { %v497_v57 = vpop.f32.mrf.mxu1  ;;  %v346_v12 = vsel %vm164_vm2, %v341_v8, 0 }
 0x246   : > { %v1188_v58 = vmul.f32 0.125, %v497_v57  ;;  %355 = vmatpush.bf16.msrb.mxu2 %v346_v12 }
 0x247   : > { %v1210_v16 = vpop.eup %983 }
 0x248   : > { %v502_v59 = vsel %vm148_vm1, %v1188_v58, -inf  ;;  %v565_v4 = vsel %vm148_vm1, %v1210_v16, 0.0 }
 0x249   : > { %503 = vmax.xlane.f32.xlu2 %v502_v59 }
 0x24d   : > { %v499_v61 = vpop.f32.mrf.mxu1 }
 0x255   : > { %v607_v0 = vpop.f32.mrf.mxu1  ;;  %457 = vrot.lane.b32.xlu0 %v456_v63, %s1029_s12 }
 0x256   : > { %v1197_v1 = vmul.f32 0.125, %v607_v0 }
 0x258   : > { %v612_v2 = vsel %vm148_vm1, %v1197_v1, -inf }
 0x259   : > { %613 = vmax.xlane.f32.xlu1 %v612_v2 }
 0x25d   : > { %v609_v6 = vpop.f32.mrf.mxu1 }
 0x261   : > { %226 = vrot.lane.b32.xlu2 %v225_v5, %s1029_s12 }
 0x265   : > { %v728_v7 = vpop.f32.mrf.mxu1 }
 0x266   : > { %v1214_v17 = vmul.f32 0.125, %v728_v7 }
 0x268   : > { %v733_v18 = vsel %vm148_vm1, %v1214_v17, -inf }
 0x26d   : > { %v730_v14 = vpop.f32.mrf.mxu1 }
 0x272   : > { %571 = vrot.lane.b32.xlu1 %v1206_v15, %s1029_s12 }
 0x27a   : > { %688 = vrot.lane.b32.xlu1 %v687_v30, %s1029_s12 }
 0x27f   : > { %566 = vadd.xlane.f32.xlu0 %v565_v4 }
 0x287   : > { %734 = vmax.xlane.f32.xlu0 %v733_v18 }
 0x291   : > { %v675_v31 = vpop.xlane.xlu1 %674 }
 0x292   : > { %v676_v34 = vsub.f32 %v1159_v25, %v675_v31 }
 0x294   : > { %v677_v37 = vmul.f32 1.442695, %v676_v34 }
 0x29c   : > { %v336_v19 = vpop.xlane.xlu2 %335 }
 0x29d   : > { %985 = vrcp.f32 %v336_v19 }
 0x2a1   : > { %v792_v22 = vpop.xlane.xlu0 %791 }
 0x2a2   : > { %v793_v44 = vsub.f32 %v1168_v39, %v792_v22 }
 0x2a3   : > { %v986_v20 = vpop.eup %985 }
 0x2a4   : > { %v338_v9 = vmul.f32 %v986_v20, %v1164_v36  ;;  %v219_v21 = vpop.xlane.xlu2 %218  ;;  %v745_v36 = vunpack.c.h.b16 %v1220_v26  ;;  %v794_v46 = vmul.f32 1.442695, %v793_v44 }
 0x2a6   : > { %v339_v28 = vpack.c.bf16 %v338_v9, %v338_v9  ;;  %v1228_v38 = vpack.c.b16 %v745_v36, %v745_v36 }
 0x2a8   : > { %928 = vmatmul.msk.bf16.vlgmr.msrb.gmra.mxu2 %vm148_vm1, %v339_v28  ;;  %802 = vrot.lane.b32.xlu1 %v1228_v38, %s1029_s12 }
 0x2ac   : > { %v273_v32 = vpop.xlane.xlu2 %272  ;;  %v450_v33 = vpop.xlane.xlu0 %449 }
 0x2ad   : > { %v274_v29 = vsub.f32 %v1176_v47, %v273_v32 }
 0x2af   : > { %v275_v35 = vmul.f32 1.442695, %v274_v29 }
 0x2b1   : > { %987 = vpow2.f32 %v275_v35 }
 0x2b2   : > { %989 = vpow2.f32 %v677_v37  ;;  %v520_v37 = vsel %vm164_vm2, %v1206_v15, 0  ;;  %v628_v15 = vsel %vm164_vm2, %v1220_v26, 0 }
 0x2b4   : > { %v383_v40 = vpop.xlane.xlu0 %382 }
 0x2b5   : > { %v384_v42 = vsub.f32 %v1184_v53, %v383_v40 }
 0x2b7   : > { %v1233_v43 = vpop.eup %987  ;;  %v385_v45 = vmul.f32 1.442695, %v384_v42 }
 0x2b8   : > { %v277_v25 = vsel %vm148_vm1, %v1233_v43, 0.0  ;;  %v1238_v48 = vpop.eup %989 }
 0x2b9   : > { %991 = vpow2.f32 %v385_v45  ;;  %278 = vadd.xlane.f32.xlu2 %v277_v25  ;;  %v679_v39 = vsel %vm148_vm1, %v1238_v48, 0.0 }
 0x2ba   : > { %993 = vrcp.f32 %v219_v21  ;;  %v289_v21 = vsel %vm164_vm2, %v1150_v23, 0 }
 0x2bb   : > { %995 = vrcp.f32 %v450_v33 }
 0x2bc   : > { %v504_v47 = vpop.xlane.xlu2 %503  ;;  %997 = vpow2.f32 %v794_v46 }
 0x2bd   : > { %v505_v49 = vsub.f32 %v1188_v58, %v504_v47 }
 0x2bf   : > { %v1241_v50 = vpop.eup %991  ;;  %v506_v52 = vmul.f32 1.442695, %v505_v49 }
 0x2c0   : > { %v994_v53 = vpop.eup %993  ;;  %v387_v54 = vsel %vm148_vm1, %v1241_v50, 0.0 }
 0x2c1   : > { %999 = vpow2.f32 %v506_v52  ;;  %680 = vadd.xlane.f32.xlu2 %v679_v39  ;;  %388 = vadd.xlane.f32.xlu0 %v387_v54  ;;  %v221_v55 = vmul.f32 %v994_v53, %v1170_v41  ;;  %v996_v57 = vpop.eup %995 }
 0x2c2   : > { %v1248_v58 = vpop.eup %997  ;;  %v452_v63 = vmul.f32 %v996_v57, %v1180_v51 }
 0x2c3   : > { %v222_v2 = vpack.c.bf16 %v221_v55, %v221_v55  ;;  %v796_v5 = vsel %vm148_vm1, %v1248_v58, 0.0 }
 0x2c4   : > { %v227_v59 = vpop.permute.xlu2 %226  ;;  %v453_v6 = vpack.c.bf16 %v452_v63, %v452_v63  ;;  %v751_v63 = vsel %vm164_vm2, %v1228_v38, 0 }
 0x2c5   : > { %v232_v61 = vsel %vm164_vm2, %v227_v59, 0 }
 0x2c6   : > { %241 = vmatpush.bf16.msra.mxu3 %v232_v61 }
 0x2c7   : > { %v1251_v62 = vpop.eup %999  ;;  %v458_v0 = vpop.permute.xlu0 %457 }
 0x2c8   : > { %v463_v3 = vsel %vm164_vm2, %v458_v0, 0  ;;  %v508_v41 = vsel %vm148_vm1, %v1251_v62, 0.0 }
 0x2c9   : > { %924 = vmatmul.msk.bf16.vlgmr.msra.gmra.mxu3 %vm148_vm1, %v222_v2  ;;  %797 = vadd.xlane.f32.xlu2 %v796_v5 }
 0x2ca   : > { %509 = vadd.xlane.f32.xlu0 %v508_v41  ;;  %472 = vmatpush.bf16.msra.mxu2 %v463_v3 }
 0x2cb   : > { %298 = vmatpush.bf16.msrb.mxu3 %v289_v21 }
 0x2cc   : > { %v614_v7 = vpop.xlane.xlu1 %613 }
 0x2cd   : > { %v615_v8 = vsub.f32 %v1197_v1, %v614_v7  ;;  %932 = vmatmul.msk.bf16.vlgmr.msra.gmra.mxu2 %vm148_vm1, %v453_v6 }
 0x2cf   : > { %v616_v51 = vmul.f32 1.442695, %v615_v8 }
 0x2d1   : > { %1001 = vpow2.f32 %v616_v51 }
 0x2d7   : > { %v1262_v10 = vpop.eup %1001 }
 0x2d8   : > { %v618_v11 = vsel %vm148_vm1, %v1262_v10, 0.0 }
 0x2d9   : > { %619 = vadd.xlane.f32.xlu2 %v618_v11 }
 0x2e4   : > { %v572_v12 = vpop.permute.xlu1 %571 }
 0x2e5   : > { %v577_v13 = vsel %vm164_vm2, %v572_v12, 0 }
 0x2e6   : > { %586 = vmatpush.bf16.msrb.mxu2 %v577_v13 }
 0x2ec   : > { %v689_v27 = vpop.permute.xlu1 %688 }
 0x2f2   : > { %v567_v14 = vpop.xlane.xlu0 %566 }
 0x2f3   : > { %1003 = vrcp.f32 %v567_v14 }
 0x2f9   : > { %v1004_v56 = vpop.eup %1003 }
 0x2fa   : > { %v569_v4 = vmul.f32 %v1004_v56, %v1210_v16  ;;  %v735_v1 = vpop.xlane.xlu0 %734  ;;  %v694_v16 = vsel %vm164_vm2, %v689_v27, 0 }
 0x2fb   : > { %v736_v18 = vsub.f32 %v1214_v17, %v735_v1  ;;  %703 = vmatpush.bf16.msra.mxu2 %v694_v16  ;;  %v397_v17 = vsel %vm164_vm2, %v1193_v60, 0 }
 0x2fc   : > { %v570_v19 = vpack.c.bf16 %v569_v4, %v569_v4  ;;  %406 = vmatpush.bf16.msra.mxu3 %v397_v17 }
 0x2fd   : > { %v737_v20 = vmul.f32 1.442695, %v736_v18 }
 0x2fe   : > { %936 = vmatmul.msk.bf16.vlgmr.msrb.gmra.mxu2 %vm148_vm1, %v570_v19 }
 0x2ff   : > { %1005 = vpow2.f32 %v737_v20 }
 0x305   : > { %v1270_v9 = vpop.eup %1005 }
 0x306   : > { %v739_v22 = vsel %vm148_vm1, %v1270_v9, 0.0 }
 0x307   : > { %740 = vadd.xlane.f32.xlu0 %v739_v22 }
 0x31a   : > { %v803_v28 = vpop.permute.xlu1 %802 }
 0x31b   : > { %v808_v30 = vsel %vm164_vm2, %v803_v28, 0 }
 0x31c   : > { %817 = vmatpush.bf16.msrb.mxu2 %v808_v30 }
 0x32b   : > { %v357_v31 = vpop.f32.mrf.mxu2 }
 0x32c   : > { %v279_v32 = vpop.xlane.xlu2 %278 }
 0x32d   : > { %1007 = vrcp.f32 %v279_v32 }
 0x333   : > { %v1008_v33 = vpop.eup %1007  ;;  %v359_v29 = vpop.f32.mrf.mxu2 }
 0x334   : > { %v281_v23 = vmul.f32 %v1008_v33, %v1233_v43  ;;  %v681_v34 = vpop.xlane.xlu2 %680  ;;  %v389_v35 = vpop.xlane.xlu0 %388 }
 0x335   : > { %1009 = vrcp.f32 %v681_v34 }
 0x336   : > { %v282_v36 = vpack.c.bf16 %v281_v23, %v281_v23  ;;  %1011 = vrcp.f32 %v389_v35 }
 0x338   : > { %926 = vmatmul.msk.bf16.vlgmr.msrb.gmra.mxu3 %vm148_vm1, %v282_v36 }
 0x339   : > { %529 = vmatpush.bf16.msrb.mxu3 %v520_v37 }
 0x33b   : > { %v1010_v60 = vpop.eup %1009 }
 0x33c   : > { %v683_v40 = vmul.f32 %v1010_v60, %v1238_v48  ;;  %v798_v44 = vpop.xlane.xlu2 %797  ;;  %v1012_v45 = vpop.eup %1011 }
 0x33d   : > { %1013 = vrcp.f32 %v798_v44  ;;  %v391_v43 = vmul.f32 %v1012_v45, %v1241_v50  ;;  %v510_v46 = vpop.xlane.xlu0 %509 }
 0x33e   : > { %v684_v42 = vpack.c.bf16 %v683_v40, %v683_v40  ;;  %1015 = vrcp.f32 %v510_v46 }
 0x33f   : > { %v392_v25 = vpack.c.bf16 %v391_v43, %v391_v43 }
 0x340   : > { %940 = vmatmul.msk.bf16.vlgmr.msra.gmra.mxu2 %vm148_vm1, %v684_v42 }
 0x343   : > { %v1014_v47 = vpop.eup %1013 }
 0x344   : > { %v800_v48 = vmul.f32 %v1014_v47, %v1248_v58  ;;  %v1016_v39 = vpop.eup %1015 }
 0x345   : > { %v512_v50 = vmul.f32 %v1016_v39, %v1251_v62 }
 0x346   : > { %v801_v53 = vpack.c.bf16 %v800_v48, %v800_v48 }
 0x347   : > { %v513_v26 = vpack.c.bf16 %v512_v50, %v512_v50 }
 0x348   : > { %930 = vmatmul.msk.bf16.vlgmr.msra.gmra.mxu3 %vm148_vm1, %v392_v25 }
 0x349   : > { %637 = vmatpush.bf16.msra.mxu3 %v628_v15 }
 0x34c   : > { %v243_v49 = vpop.f32.mrf.mxu3  ;;  %v620_v57 = vpop.xlane.xlu2 %619 }
 0x34d   : > { %v958_v52 = vpack.i.bf16 %v357_v31, %v243_v49  ;;  %1017 = vrcp.f32 %v620_v57 }
 0x34f   : > { %959 = vrot.lane.b32.xlu1 %v958_v52, %s1029_s12 }
 0x350   : > { %v474_v54 = vpop.f32.mrf.mxu2  ;;  %944 = vmatmul.msk.bf16.vlgmr.msrb.gmra.mxu2 %vm148_vm1, %v801_v53 }
 0x353   : > { %v1018_v61 = vpop.eup %1017 }
 0x354   : > { %v245_v55 = vpop.f32.mrf.mxu3  ;;  %v622_v58 = vmul.f32 %v1018_v61, %v1262_v10 }
 0x356   : > { %v623_v0 = vpack.c.bf16 %v622_v58, %v622_v58 }
 0x358   : > { %v476_v59 = vpop.f32.mrf.mxu2  ;;  %934 = vmatmul.msk.bf16.vlgmr.msrb.gmra.mxu3 %vm148_vm1, %v513_v26 }
 0x359   : > { %760 = vmatpush.bf16.msrb.mxu3 %v751_v63 }
 0x368   : > { %938 = vmatmul.msk.bf16.vlgmr.msra.gmra.mxu3 %vm148_vm1, %v623_v0 }
 0x37a   : > { %v741_v2 = vpop.xlane.xlu0 %740 }
 0x37b   : > { %1019 = vrcp.f32 %v741_v2 }
 0x381   : > { %v1020_v62 = vpop.eup %1019  ;;  %v588_v3 = vpop.f32.mrf.mxu2 }
 0x382   : > { %v743_v5 = vmul.f32 %v1020_v62, %v1270_v9  ;;  %v963_v41 = vpack.i.bf16 %v588_v3, %v474_v54 }
 0x384   : > { %v744_v6 = vpack.c.bf16 %v743_v5, %v743_v5  ;;  %964 = vrot.lane.b32.xlu2 %v963_v41, %s1029_s12 }
 0x386   : > { %942 = vmatmul.msk.bf16.vlgmr.msrb.gmra.mxu3 %vm148_vm1, %v744_v6 }
 0x389   : > { %v590_v7 = vpop.f32.mrf.mxu2 }
 0x3bb   : > { %v300_v8 = vpop.f32.mrf.mxu3 }
 0x3c1   : > { %v960_v38 = vpop.permute.xlu1 %959 }
 0x3c2   : > { %v962_v51 = vunpack.i.h.bf16 %v960_v38  ;;  %v961_v10 = vunpack.i.l.bf16 %v960_v38 }
 0x3c3   : > { %v302_v11 = vpop.f32.mrf.mxu3  ;;  %v705_v12 = vpop.f32.mrf.mxu2 }
 0x3c4   : > { %v848_v13 = vsel %vm127_vm0, %v300_v8, %v962_v51  ;;  %v847_v14 = vsel %vm127_vm0, %v1157_v24, %v961_v10 }
 0x3c5   : > { %v853_v56 = vpack.c.bf16 %v848_v13, %v847_v14 }
 0x3c7   : > { %856 = vst [vmem:[%s1306_s16] sm:$0xff] %v853_v56 }
 0x3cb   : > { %v408_v4 = vpop.f32.mrf.mxu3  ;;  %v707_v1 = vpop.f32.mrf.mxu2 }
 0x3d3   : > { %v410_v18 = vpop.f32.mrf.mxu3  ;;  %v819_v19 = vpop.f32.mrf.mxu2 }
 0x3d4   : > { %v968_v20 = vpack.i.bf16 %v819_v19, %v705_v12 }
 0x3d6   : > { %969 = vrot.lane.b32.xlu0 %v968_v20, %s1029_s12 }
 0x3db   : > { %v531_v9 = vpop.f32.mrf.mxu3  ;;  %v821_v22 = vpop.f32.mrf.mxu2 }
 0x3de   : > { %v965_v21 = vpop.permute.xlu2 %964 }
 0x3df   : > { %v967_v27 = vunpack.i.h.bf16 %v965_v21  ;;  %v966_v16 = vunpack.i.l.bf16 %v965_v21 }
 0x3e1   : > { %v849_v17 = vsel %vm127_vm0, %v408_v4, %v966_v16  ;;  %v850_v24 = vsel %vm127_vm0, %v531_v9, %v967_v27 }
 0x3e2   : > { %v854_v28 = vpack.c.bf16 %v850_v24, %v849_v17 }
 0x3e3   : > { %v533_v30 = vpop.f32.mrf.mxu3 }
 0x3e4   : > { %857 = vst [vmem:[%s1306_s16 + $0x8] sm:$0xff] %v854_v28 }
 0x3eb   : > { %v639_v31 = vpop.f32.mrf.mxu3 }
 0x3f3   : > { %v641_v32 = vpop.f32.mrf.mxu3 }
 0x409   : > { %v762_v33 = vpop.f32.mrf.mxu3 }
 0x411   : > { %v764_v29 = vpop.f32.mrf.mxu3 }
 0x448   : > { %v970_v23 = vpop.permute.xlu0 %969 }
 0x449   : > { %v972_v34 = vunpack.i.h.bf16 %v970_v23  ;;  %v971_v35 = vunpack.i.l.bf16 %v970_v23 }
 0x44b   : > { %v852_v36 = vsel %vm127_vm0, %v762_v33, %v972_v34  ;;  %v851_v37 = vsel %vm127_vm0, %v639_v31, %v971_v35 }
 0x44c   : > { %v855_v60 = vpack.c.bf16 %v852_v36, %v851_v37 }
 0x44e   : > { %858 = vst [vmem:[%s1306_s16 + $0x10] sm:$0xff] %v855_v60 }
 0x44f PF: > { %s11_s6 = sadd.s32 1, %s1027_s6  }
 0x450   : > { %p8_p4 = scmp.ge.s32.totalorder %s11_s6, 4  }
 0x452   :  { %10 = sbr.rel (!%p8_p4) target bundleno = 1 (0x1), region = 54 }

// kernel: base_model_forward.89
= control target key start
LH: loop header
LB: loop body
LE: loop exit
PB: predicated region body
PF: predicated region fallthrough
CT: control target
= control target key end

     0   :  { %s1490_s0 = inlined_call_operand.vmem [shape: bf16[16,768], index: 0, kind: input, shape index: {}]   ;;  %s1491_s1 = inlined_call_operand.hbm [shape: bf16[768,768], index: 1, kind: input, shape index: {}]   ;;  %s1492_s2 = inlined_call_operand.vmem [shape: f32[1,768], index: 2, kind: input, shape index: {}]   ;;  %s1493_s3 = inlined_call_operand.vmem [shape: bf16[16,768], index: 3, kind: output, shape index: {}]  }
   0x1   :  { %1498 = sst [smem:[#allocation15_spill]] %s1490_s0 }
   0x2   :  { %8 = vsyncpa [#allocation5], 0 }
   0x3   :  { %10 = vsyncpa [#allocation5 + $0x1], 0  ;;  %s1218_s12 = smov 0   ;;  %s1220_s13 = smov 0  }
   0x4   :  { %s1222_s14 = smov 0   ;;  %s1224_s15 = smov 0  }
   0x5   :  { %s1226_s16 = smov 0   ;;  %s1228_s17 = smov 0  }
   0x6   :  { %s1230_s18 = smov 0   ;;  %s1232_s19 = smov 0  }
   0x7   :  { %s1234_s20 = smov 0   ;;  %s1236_s21 = smov 0  }
   0x8   :  { %s1238_s22 = smov 0   ;;  %s1240_s23 = smov 0  }
   0x9 LB: > { %1499 = sst [smem:[#allocation8_spill]] %s1152_s13  ;;  %s767_s24 = sadd.s32 4294967295, %s1192_s23   ;;  %s1192_s23 = sphi %s1240_s23, %s16_s23   ;;  %s1188_s22 = sphi %s1238_s22, %s1524_s22   ;;  %s1184_s21 = sphi %s1236_s21, %s1523_s21   ;;  %s1180_s20 = sphi %s1234_s20, %s1522_s20   ;;  %s1176_s19 = sphi %s1232_s19, %s1521_s19   ;;  %s1172_s18 = sphi %s1230_s18, %s1515_s18   ;;  %s1168_s17 = sphi %s1228_s17, %s1514_s17   ;;  %s1164_s16 = sphi %s1226_s16, %s1520_s16   ;;  %s1160_s15 = sphi %s1224_s15, %s1519_s15   ;;  %s1156_s14 = sphi %s1222_s14, %s1518_s14   ;;  %s1152_s13 = sphi %s1220_s13, %s1512_s13   ;;  %s1148_s12 = sphi %s1218_s12, %s1511_s12  }
   0xa   : > { %1500 = sst [smem:[#allocation9_spill]] %s1172_s18  ;;  %s28_s25 = sadd.s32 1, %s1184_s21 }
   0xb   : > { %p29_p0 = scmp.ge.s32.totalorder %s28_s25, 3  ;;  %s31_s26 = sadd.s32 1, %s1188_s22 }
   0xc   : > { %s44_s27 = sadd.s32 1, %s1172_s18  ;;  %p51_p1 = scmp.ne.s32.totalorder %s1172_s18, %s1168_s17 }
   0xd   : > { %s1526_s25 = smov (%p29_p0, %s28_s25), 0  ;;  %s1528_s26 = smov (!%p29_p0, %s31_s26), %s1188_s22 }
   0xe   : > { %1501 = sst [smem:[#allocation10_spill]] %s1526_s25  ;;  %s40_s28 = ssub.s32 %s1184_s21, %s1526_s25 }
   0xf   : > { %p52_p2 = scmp.eq.s32.totalorder %s1192_s23, 0  ;;  %p33_p3 = scmp.ge.s32.totalorder %s1528_s26, 3 }
  0x10   : > { %p42_p4 = scmp.eq.s32.totalorder %s40_s28, 0  ;;  %s72_s30 = sadd.s32 1, %s1164_s16 }
  0x11   : > { %p1290_p5 = por %p52_p2, %p51_p1  ;;  %s1530_s26 = smov (%p33_p3, %s1528_s26), 0 }
  0x12   : > { %1503 = sst [smem:[#allocation11_spill]] %s1530_s26  ;;  %s68_s5 = ssub.s32 %s1188_s22, %s1530_s26 }
  0x13   : > { %s1298_s4 = scalar_select %p42_p4, %s1172_s18, %s44_s27  }
  0x14   : > { %p79_p6 = scmp.ne.s32.totalorder %s1164_s16, %s1160_s15  ;;  %s69_s6 = sor.u32 %s68_s5, %s40_s28 }
  0x15   : > { %1504 = sst [smem:[#allocation12_spill]] %s1298_s4  ;;  %p85_p7 = scmp.ne.s32.totalorder %s1160_s15, %s1156_s14 }
  0x16   : > { %p70_p8 = scmp.eq.s32.totalorder %s69_s6, 0  ;;  %p1306_p9 = por %p79_p6, %p52_p2 }
  0x17   : > { %p86_p10 = scmp.eq.s32.totalorder %s767_s24, 0  ;;  %p124_p11 = scmp.eq.s32.totalorder %s68_s5, 0 }
  0x18   : > { %s1313_s8 = scalar_select %p70_p8, %s1164_s16, %s72_s30  }
  0x19   : > { %p1315_p12 = por %p86_p10, %p85_p7  ;;  %s126_s10 = sadd.s32 1, %s1152_s13 }
  0x1a   : > { %1506 = sst [smem:[#allocation13_spill]] %s1313_s8  ;;  %p136_p13 = scmp.ne.s32.totalorder %s1152_s13, %s1148_s12 }
  0x1b   : > { %s1321_s11 = scalar_select %p124_p11, %s1152_s13, %s126_s10  }
  0x1c   : > { %p137_p0 = scmp.eq.s32.totalorder %s767_s24, 8  ;;  %p770_p2 = scmp.ge.s32.totalorder %s1192_s23, 9 }
  0x1d   : > { %1508 = sst [smem:[#allocation14_spill]] %s1321_s11 }
  0x1e   : > { %p1327_p1 = por %p137_p0, %p136_p13  ;;  %159 = sbr.rel (%p770_p2) target bundleno = 55 (0x37), region = 16 }
  0x23   : > { %162 = sbr.rel (!%p1290_p5) target bundleno = 47 (0x2f), region = 20  ;;  %s164_s27 = sand.u32 (%p1290_p5), 1, %s1172_s18  }
  0x24   : > { %s927_s28 = sshll.u32 (%p1290_p5), %s1184_s21, 3  ;;  %s771_s30 = sshll.u32 (%p1290_p5), %s164_s27, 4 }
  0x25   : > { %s1510_s0 = sld [smem:[#allocation15_spill]] (%p1290_p5)  ;;  %s166_s24 = scalar_lea.vmem (%p1290_p5), [#allocation3], %s771_s30 }
  0x2b   : > { %s172_s10 = scalar_lea.vmem %s1510_s0, %s927_s28 }
  0x2c   : > { %v203_v0 = vld [vmem:[%s172_s10] sm:$0xff]  ;;  %v205_v1 = vld [vmem:[%s172_s10 + $0x18] sm:$0xff] }
  0x2d   : > { %204 = vst [vmem:[%s166_s24] sm:$0xff] %v203_v0 }
  0x2e   : > { %206 = vst [vmem:[%s166_s24 + $0x8] sm:$0xff] %v205_v1 }
  0x2f PF: > { %s213_s29 = sand.u32 1, %s1164_s16   ;;  %s776_s26 = sshll.u32 %s1188_s22, 1 }
  0x30   : > { %s774_s25 = sshll.u32 %s213_s29, 8  ;;  %s963_s4 = smul.u32 192, %s1184_s21 }
  0x31   : > { %s217_s18 = scalar_lea.vmem [#allocation4], %s774_s25  ;;  %s214_s24 = scalar_lea.sflag [#allocation5], %s213_s29 }
  0x32   : > { %s228_s27 = sshll.u32 %s217_s18, 4  ;;  %s223_s8 = sadd.s32 %s963_s4, %s776_s26  ;;  %s229_s27 = int_to_ptr.vmem [resolvable:$true] %s228_s27 }
  0x33   : > { %s778_s5 = sshll.u32 %s223_s8, 2  ;;  %s1194_s0 = smov 384  }
  0x34   : > { %s225_s30 = scalar_lea.hbm %s1491_s1, %s778_s5  ;;  %s1195_s11 = smov 128  }
  0x35   : > { %s226_s10 = sshll.u32 %s225_s30, 4  ;;  %s1196_s13 = smov 8   ;;  %s227_s10 = int_to_ptr.hbm [resolvable:$true] %s226_s10 }
  0x36   : > { %964 = dma.hbm_to_vmem [thread:$0]  (%p1306_p9), %s227_s10, 4096, %s229_s27, %s214_s24, %s1194_s0, %s1195_s11, %s1196_s13  }
  0x37 PF: > { %p779_p3 = scmp.ge.s32.totalorder %s1192_s23, 1  ;;  %p244_p4 = scmp.lt.s32.totalorder %s1192_s23, 10 }
  0x39   : > { %p245_p5 = pnand %p779_p3, %p244_p4 }
  0x3a   : > { %s251_s18 = sand.u32 (!%p245_p5), 1, %s1168_s17   ;;  %s257_s25 = sand.u32 (!%p245_p5), 1, %s1160_s15  }
  0x3b   : > { %248 = sbr.rel (%p245_p5) target bundleno = 280 (0x118), region = 66  ;;  %s780_s26 = sshll.u32 (!%p245_p5), %s251_s18, 4 }
  0x3c   : > { %s781_s4 = sshll.u32 (!%p245_p5), %s257_s25, 8  ;;  %s1351_s8 = scalar_lea.vmem (!%p245_p5), [#allocation3], %s780_s26 }
  0x3d   : > { %s258_s29 = scalar_lea.sflag (!%p245_p5), [#allocation5], %s257_s25  ;;  %s1353_s5 = scalar_lea.vmem (!%p245_p5), [#allocation4], %s781_s4 }
  0x40   : > { %1143 = dma.done.wait (%p1315_p12), %s258_s29, 4096  }
  0x41   : > { %1145 = vsyncadd (%p1315_p12), %s258_s29, 4294963200  ;;  %s289_s0 = sand.u32 1, %s1148_s12   ;;  %s783_s13 = sshll.u32 %s1180_s20, 1 }
  0x42   : > { %s782_s7 = sshll.u32 %s289_s0, 4  ;;  %p297_p6 = scmp.lt.s32.totalorder %s783_s13, 5 }
  0x43   : > { %s1367_s28 = scalar_lea.vmem [#allocation6], %s782_s7  ;;  %p784_p7 = scmp.ne.s32.totalorder %s1176_s19, 0 }
  0x44   : > { %s1532_s13 = smov (!%p297_p6, %s783_s13), 5 }
  0x45   : > { %s299_s27 = scalar_lea.vmem %s1492_s2, %s1532_s13  ;;  %306 = sbr.rel (%p784_p7) target bundleno = 79 (0x4f), region = 78 }
  0x4a   : > { %v1197_v2 = vmov 0.0  }
  0x4b   : > { %307 = vst [vmem:[#allocation2 + $0x10] sm:$0xff] %v1197_v2 }
  0x4c   : > { %308 = vst [vmem:[#allocation2] sm:$0xff] %v1197_v2 }
  0x4d   : > { %309 = vst [vmem:[#allocation2 + $0x18] sm:$0xff] %v1197_v2 }
  0x4e   : > { %310 = vst [vmem:[#allocation2 + $0x8] sm:$0xff] %v1197_v2 }
  0x4f PF: > { %v851_v3 = vld [vmem:[%s1353_s5 + $0x70] sm:$0xf]  ;;  %v945_v4 = vld [vmem:[%s1353_s5 + $0x74] sm:$0xf0]  ;;  %v944_v8 = vld [vmem:[%s1353_s5 + $0x74] sm:$0xf] }
  0x50   : > { %v915_v5 = vld [vmem:[%s1353_s5 + $0xf0] sm:$0xf]  ;;  %v852_v6 = vor.u32 %v945_v4, %v851_v3  ;;  %v961_v7 = vld [vmem:[%s1353_s5 + $0xf4] sm:$0xf0]  ;;  %v853_v9 = vld [vmem:[%s1353_s5 + $0x78] sm:$0xf0] }
  0x51   : > { %v916_v10 = vor.u32 %v961_v7, %v915_v5  ;;  %v856_v11 = vor.u32 %v944_v8, %v853_v9  ;;  %v960_v12 = vld [vmem:[%s1353_s5 + $0xf4] sm:$0xf]  ;;  %v917_v13 = vld [vmem:[%s1353_s5 + $0xf8] sm:$0xf0]  ;;  %v843_v14 = vld [vmem:[%s1353_s5 + $0x60] sm:$0xf] }
  0x52   : > { %519 = vmatpush.bf16.msra.mxu0 %v852_v6  ;;  %v920_v15 = vor.u32 %v960_v12, %v917_v13  ;;  %v943_v16 = vld [vmem:[%s1353_s5 + $0x64] sm:$0xf0]  ;;  %v907_v17 = vld [vmem:[%s1353_s5 + $0xe0] sm:$0xf]  ;;  %v942_v21 = vld [vmem:[%s1353_s5 + $0x64] sm:$0xf] }
  0x53   : > { %v959_v18 = vld [vmem:[%s1353_s5 + $0xe4] sm:$0xf0]  ;;  %533 = vmatpush.bf16.msra.mxu1 %v916_v10  ;;  %547 = vmatpush.bf16.msra.mxu2 %v856_v11  ;;  %v844_v19 = vor.u32 %v943_v16, %v843_v14  ;;  %v845_v22 = vld [vmem:[%s1353_s5 + $0x68] sm:$0xf0]  ;;  %v958_v23 = vld [vmem:[%s1353_s5 + $0xe4] sm:$0xf] }
  0x54   : > { %v908_v20 = vor.u32 %v959_v18, %v907_v17  ;;  %561 = vmatpush.bf16.msra.mxu3 %v920_v15  ;;  %v848_v24 = vor.u32 %v942_v21, %v845_v22  ;;  %v909_v25 = vld [vmem:[%s1353_s5 + $0xe8] sm:$0xf0]  ;;  %v835_v26 = vld [vmem:[%s1353_s5 + $0x50] sm:$0xf]  ;;  %v941_v27 = vld [vmem:[%s1353_s5 + $0x54] sm:$0xf0] }
  0x55   : > { %v912_v28 = vor.u32 %v958_v23, %v909_v25  ;;  %v899_v29 = vld [vmem:[%s1353_s5 + $0xd0] sm:$0xf]  ;;  %v957_v30 = vld [vmem:[%s1353_s5 + $0xd4] sm:$0xf0]  ;;  %v940_v31 = vld [vmem:[%s1353_s5 + $0x54] sm:$0xf]  ;;  %v836_v32 = vor.u32 %v941_v27, %v835_v26 }
  0x56   : > { %520 = vmatpush.bf16.msra.mxu0 %v844_v19  ;;  %v837_v33 = vld [vmem:[%s1353_s5 + $0x58] sm:$0xf0]  ;;  %v956_v34 = vld [vmem:[%s1353_s5 + $0xd4] sm:$0xf]  ;;  %v900_v36 = vor.u32 %v957_v30, %v899_v29  ;;  %v827_v38 = vld [vmem:[%s1353_s5 + $0x40] sm:$0xf] }
  0x57   : > { %v901_v35 = vld [vmem:[%s1353_s5 + $0xd8] sm:$0xf0]  ;;  %534 = vmatpush.bf16.msra.mxu1 %v908_v20  ;;  %548 = vmatpush.bf16.msra.mxu2 %v848_v24  ;;  %v840_v37 = vor.u32 %v940_v31, %v837_v33  ;;  %v939_v39 = vld [vmem:[%s1353_s5 + $0x44] sm:$0xf0]  ;;  %v891_v40 = vld [vmem:[%s1353_s5 + $0xc0] sm:$0xf] }
  0x58   : > { %562 = vmatpush.bf16.msra.mxu3 %v912_v28  ;;  %v904_v41 = vor.u32 %v956_v34, %v901_v35  ;;  %v955_v42 = vld [vmem:[%s1353_s5 + $0xc4] sm:$0xf0]  ;;  %v938_v43 = vld [vmem:[%s1353_s5 + $0x44] sm:$0xf]  ;;  %v829_v44 = vld [vmem:[%s1353_s5 + $0x48] sm:$0xf0]  ;;  %v828_v47 = vor.u32 %v939_v39, %v827_v38 }
  0x59   : > { %v954_v45 = vld [vmem:[%s1353_s5 + $0xc4] sm:$0xf]  ;;  %v893_v46 = vld [vmem:[%s1353_s5 + $0xc8] sm:$0xf0]  ;;  %v892_v48 = vor.u32 %v955_v42, %v891_v40  ;;  %v832_v49 = vor.u32 %v938_v43, %v829_v44  ;;  %v819_v50 = vld [vmem:[%s1353_s5 + $0x30] sm:$0xf] }
  0x5a   : > { %521 = vmatpush.bf16.msra.mxu0 %v836_v32  ;;  %v937_v51 = vld [vmem:[%s1353_s5 + $0x34] sm:$0xf0]  ;;  %v883_v52 = vld [vmem:[%s1353_s5 + $0xb0] sm:$0xf]  ;;  %v896_v53 = vor.u32 %v954_v45, %v893_v46  ;;  %v936_v55 = vld [vmem:[%s1353_s5 + $0x34] sm:$0xf] }
  0x5b   : > { %535 = vmatpush.bf16.msra.mxu1 %v900_v36  ;;  %549 = vmatpush.bf16.msra.mxu2 %v840_v37  ;;  %v953_v54 = vld [vmem:[%s1353_s5 + $0xb4] sm:$0xf0]  ;;  %v821_v56 = vld [vmem:[%s1353_s5 + $0x38] sm:$0xf0]  ;;  %v952_v57 = vld [vmem:[%s1353_s5 + $0xb4] sm:$0xf]  ;;  %v820_v59 = vor.u32 %v937_v51, %v819_v50 }
  0x5c   : > { %563 = vmatpush.bf16.msra.mxu3 %v904_v41  ;;  %v885_v58 = vld [vmem:[%s1353_s5 + $0xb8] sm:$0xf0]  ;;  %v884_v60 = vor.u32 %v953_v54, %v883_v52  ;;  %v824_v61 = vor.u32 %v936_v55, %v821_v56  ;;  %v811_v62 = vld [vmem:[%s1353_s5 + $0x20] sm:$0xf]  ;;  %v935_v63 = vld [vmem:[%s1353_s5 + $0x24] sm:$0xf0] }
  0x5d   : > { %v875_v0 = vld [vmem:[%s1353_s5 + $0xa0] sm:$0xf]  ;;  %v888_v1 = vor.u32 %v952_v57, %v885_v58  ;;  %v951_v2 = vld [vmem:[%s1353_s5 + $0xa4] sm:$0xf0]  ;;  %v934_v3 = vld [vmem:[%s1353_s5 + $0x24] sm:$0xf]  ;;  %v812_v7 = vor.u32 %v935_v63, %v811_v62 }
  0x5e   : > { %522 = vmatpush.bf16.msra.mxu0 %v828_v47  ;;  %v813_v4 = vld [vmem:[%s1353_s5 + $0x28] sm:$0xf0]  ;;  %v950_v5 = vld [vmem:[%s1353_s5 + $0xa4] sm:$0xf]  ;;  %v876_v8 = vor.u32 %v951_v2, %v875_v0  ;;  %v803_v10 = vld [vmem:[%s1353_s5 + $0x10] sm:$0xf] }
  0x5f   : > { %536 = vmatpush.bf16.msra.mxu1 %v892_v48  ;;  %550 = vmatpush.bf16.msra.mxu2 %v832_v49  ;;  %v877_v6 = vld [vmem:[%s1353_s5 + $0xa8] sm:$0xf0]  ;;  %v816_v9 = vor.u32 %v934_v3, %v813_v4  ;;  %v933_v11 = vld [vmem:[%s1353_s5 + $0x14] sm:$0xf0]  ;;  %v867_v12 = vld [vmem:[%s1353_s5 + $0x90] sm:$0xf] }
  0x60   : > { %564 = vmatpush.bf16.msra.mxu3 %v896_v53  ;;  %v880_v13 = vor.u32 %v950_v5, %v877_v6  ;;  %v949_v14 = vld [vmem:[%s1353_s5 + $0x94] sm:$0xf0]  ;;  %v932_v15 = vld [vmem:[%s1353_s5 + $0x14] sm:$0xf]  ;;  %v805_v16 = vld [vmem:[%s1353_s5 + $0x18] sm:$0xf0]  ;;  %v804_v19 = vor.u32 %v933_v11, %v803_v10 }
  0x61   : > { %v948_v17 = vld [vmem:[%s1353_s5 + $0x94] sm:$0xf]  ;;  %v869_v18 = vld [vmem:[%s1353_s5 + $0x98] sm:$0xf0]  ;;  %v868_v20 = vor.u32 %v949_v14, %v867_v12  ;;  %v808_v21 = vor.u32 %v932_v15, %v805_v16  ;;  %v795_v22 = vld [vmem:[%s1353_s5] sm:$0xf] }
  0x62   : > { %523 = vmatpush.bf16.msra.mxu0 %v820_v59  ;;  %v931_v23 = vld [vmem:[%s1353_s5 + $0x4] sm:$0xf0]  ;;  %v859_v24 = vld [vmem:[%s1353_s5 + $0x80] sm:$0xf]  ;;  %v872_v25 = vor.u32 %v948_v17, %v869_v18  ;;  %v930_v27 = vld [vmem:[%s1353_s5 + $0x4] sm:$0xf] }
  0x63   : > { %537 = vmatpush.bf16.msra.mxu1 %v884_v60  ;;  %551 = vmatpush.bf16.msra.mxu2 %v824_v61  ;;  %v947_v26 = vld [vmem:[%s1353_s5 + $0x84] sm:$0xf0]  ;;  %v797_v28 = vld [vmem:[%s1353_s5 + $0x8] sm:$0xf0]  ;;  %v946_v29 = vld [vmem:[%s1353_s5 + $0x84] sm:$0xf]  ;;  %v796_v31 = vor.u32 %v931_v23, %v795_v22 }
  0x64   : > { %565 = vmatpush.bf16.msra.mxu3 %v888_v1  ;;  %v861_v30 = vld [vmem:[%s1353_s5 + $0x88] sm:$0xf0]  ;;  %v787_v32 = vld [vmem:[%s1351_s8] sm:$0xf]  ;;  %v929_v33 = vld [vmem:[%s1351_s8 + $0x4] sm:$0xf0]  ;;  %v860_v34 = vor.u32 %v947_v26, %v859_v24  ;;  %v800_v35 = vor.u32 %v930_v27, %v797_v28 }
  0x65   : > { %v928_v36 = vld [vmem:[%s1351_s8 + $0x4] sm:$0xf]  ;;  %v789_v37 = vld [vmem:[%s1351_s8 + $0x8] sm:$0xf0]  ;;  %v864_v38 = vor.u32 %v946_v29, %v861_v30  ;;  %v788_v39 = vor.u32 %v929_v33, %v787_v32  ;;  %p921_p8 = scmp.ne.s32.totalorder %s1176_s19, 2 }
  0x66   : > { %524 = vmatpush.bf16.msra.mxu0 %v812_v7  ;;  %v792_v40 = vor.u32 %v928_v36, %v789_v37  ;;  %v311_v42 = vld [vmem:[#allocation2 + $0x10] sm:$0xff]  ;;  %v312_v47 = vld [vmem:[#allocation2] sm:$0xff]  ;;  %v313_v51 = vld [vmem:[#allocation2 + $0x18] sm:$0xff] }
  0x67   : > { %538 = vmatpush.bf16.msra.mxu1 %v876_v8  ;;  %552 = vmatpush.bf16.msra.mxu2 %v816_v9  ;;  %v314_v57 = vld [vmem:[#allocation2 + $0x8] sm:$0xff] }
  0x68   : > { %566 = vmatpush.bf16.msra.mxu3 %v880_v13 }
  0x6a   : > { %525 = vmatpush.bf16.msra.mxu0 %v804_v19 }
  0x6b   : > { %539 = vmatpush.bf16.msra.mxu1 %v868_v20  ;;  %553 = vmatpush.bf16.msra.mxu2 %v808_v21 }
  0x6c   : > { %567 = vmatpush.bf16.msra.mxu3 %v872_v25 }
  0x6e   : > { %526 = vmatpush.bf16.msra.mxu0 %v796_v31 }
  0x6f   : > { %540 = vmatpush.bf16.msra.mxu1 %v860_v34  ;;  %554 = vmatpush.bf16.msra.mxu2 %v800_v35 }
  0x70   : > { %568 = vmatpush.bf16.msra.mxu3 %v864_v38 }
  0x71   : > { %527 = vmatmul.bf16.vlgmr.msra.gmra.mxu0 %v788_v39 }
  0x72   : > { %541 = vmatmul.bf16.vlgmr.msra.gmra.mxu1 %v792_v40  ;;  %555 = vmatmul.bf16.vlgmr.msra.gmra.mxu2 %v788_v39 }
  0x73   : > { %569 = vmatmul.bf16.vlgmr.msra.gmra.mxu3 %v792_v40 }
  0xee   : > { %v528_v41 = vpop.f32.mrf.mxu0 }
  0xef   : > { %v542_v43 = vpop.f32.mrf.mxu1 }
  0xf0   : > { %v543_v44 = vadd.f32 %v542_v43, %v528_v41 }
  0xf2   : > { %v575_v45 = vadd.f32 %v543_v44, %v311_v42 }
  0xf4   : > { %579 = vst [vmem:[#allocation2 + $0x10] sm:$0xff] %v575_v45 }
  0xf5   : > { %v556_v46 = vpop.f32.mrf.mxu2 }
  0xf6   : > { %v570_v48 = vpop.f32.mrf.mxu3  ;;  %v530_v49 = vpop.f32.mrf.mxu0 }
  0xf7   : > { %v571_v50 = vadd.f32 %v570_v48, %v556_v46  ;;  %v544_v52 = vpop.f32.mrf.mxu1 }
  0xf8   : > { %v545_v53 = vadd.f32 %v544_v52, %v530_v49 }
  0xf9   : > { %v576_v54 = vadd.f32 %v571_v50, %v312_v47 }
  0xfa   : > { %v577_v55 = vadd.f32 %v545_v53, %v313_v51 }
  0xfb   : > { %580 = vst [vmem:[#allocation2] sm:$0xff] %v576_v54 }
  0xfc   : > { %581 = vst [vmem:[#allocation2 + $0x18] sm:$0xff] %v577_v55 }
  0xfd   : > { %v558_v56 = vpop.f32.mrf.mxu2 }
  0xfe   : > { %v572_v58 = vpop.f32.mrf.mxu3 }
  0xff   : > { %v573_v59 = vadd.f32 %v572_v58, %v558_v56  ;;  %586 = sbr.rel (%p921_p8) target bundleno = 272 (0x110), region = 82 }
 0x101   : > { %v578_v60 = vadd.f32 %v573_v59, %v314_v57 }
 0x103   : > { %582 = vst [vmem:[#allocation2 + $0x8] sm:$0xff] %v578_v60 }
 0x104   : > { %v587_v61 = vld [vmem:[#allocation2 + $0x10] sm:$0xff]  ;;  %v588_v62 = vld [vmem:[#allocation2] sm:$0xff]  ;;  %v589_v2 = vld [vmem:[#allocation2 + $0x18] sm:$0xff] }
 0x105   : > { %v591_v63 = vld [vmem:[%s299_s27] sm:$0x3] }
 0x106   : > { %v593_v0 = vperm.slane %v591_v63, 0  ;;  %v594_v1 = vperm.slane %v591_v63, 1 }
 0x108   : > { %v597_v4 = vadd.f32 %v593_v0, %v587_v61  ;;  %v598_v5 = vadd.f32 %v594_v1, %v588_v62  ;;  %v599_v6 = vadd.f32 %v593_v0, %v589_v2 }
 0x10a   : > { %v590_v3 = vld [vmem:[#allocation2 + $0x8] sm:$0xff]  ;;  %v601_v8 = vpack.c.bf16 %v598_v5, %v597_v4 }
 0x10b   : > { %v600_v7 = vadd.f32 %v594_v1, %v590_v3 }
 0x10c   : > { %603 = vst [vmem:[%s1367_s28] sm:$0xff] %v601_v8 }
 0x10d   : > { %v602_v9 = vpack.c.bf16 %v600_v7, %v599_v6 }
 0x10f   : > { %604 = vst [vmem:[%s1367_s28 + $0x8] sm:$0xff] %v602_v9 }
 0x110 PF: > { %611 = sbr.rel (!%p1327_p1) target bundleno = 280 (0x118), region = 86  ;;  %s962_s19 = sshll.u32 (%p1327_p1), %s1180_s20, 3 }
 0x111   : > { %s617_s10 = scalar_lea.vmem (%p1327_p1), %s1493_s3, %s962_s19 }
 0x113   : > { %v648_v10 = vld [vmem:[%s1367_s28] sm:$0xff] (%p1327_p1) }
 0x114   : > { %649 = vst [vmem:[%s617_s10] sm:$0xff] (%p1327_p1), %v648_v10 }
 0x116   : > { %v650_v11 = vld [vmem:[%s1367_s28 + $0x8] sm:$0xff] }
 0x117   : > { %651 = vst [vmem:[%s617_s10 + $0x18] sm:$0xff] %v650_v11 }
 0x118 PF: > { %s16_s23 = sadd.s32 1, %s1192_s23   ;;  %s1511_s12 = sld [smem:[#allocation8_spill]] }
 0x119   : > { %p13_p9 = scmp.ge.s32.totalorder %s16_s23, 11   ;;  %s1512_s13 = sld [smem:[#allocation14_spill]] }
 0x11a   : > { %s1513_s24 = sld [smem:[#allocation13_spill]]  ;;  %s1518_s14 = smov %s1160_s15 }
 0x11b   : > { %s1514_s17 = sld [smem:[#allocation9_spill]]  ;;  %s1519_s15 = smov %s1164_s16 }
 0x11c   : > { %s1515_s18 = sld [smem:[#allocation12_spill]]  ;;  %s1521_s19 = smov %s1184_s21 }
 0x11d   : > { %s1516_s25 = sld [smem:[#allocation10_spill]]  ;;  %s1522_s20 = smov %s1188_s22 }
 0x11e   : > { %s1517_s26 = sld [smem:[#allocation11_spill]] }
 0x120   : > { %s1520_s16 = smov %s1513_s24  ;;  %15 = sbr.rel (!%p13_p9) target bundleno = 9 (0x9), region = 167 }
 0x123   : > { %s1523_s21 = smov %s1516_s25 }
 0x124   : > { %s1524_s22 = smov %s1517_s26 }
 0x125   :  { %667 = vsyncpa [#allocation5], 1 }
 0x126   :  { %669 = vsyncpa [#allocation5 + $0x1], 1 }

// kernel: base_model_forward.87
= control target key start
LH: loop header
LB: loop body
LE: loop exit
PB: predicated region body
PF: predicated region fallthrough
CT: control target
= control target key end

     0   :  { %s1490_s0 = inlined_call_operand.vmem [shape: bf16[16,768], index: 0, kind: input, shape index: {}]   ;;  %s1491_s1 = inlined_call_operand.hbm [shape: bf16[768,2304], index: 1, kind: input, shape index: {}]   ;;  %s1492_s2 = inlined_call_operand.vmem [shape: f32[1,2304], index: 2, kind: input, shape index: {}]   ;;  %s1493_s3 = inlined_call_operand.vmem [shape: bf16[16,2304], index: 3, kind: output, shape index: {}]  }
   0x1   :  { %1498 = sst [smem:[#allocation15_spill]] %s1490_s0 }
   0x2   :  { %8 = vsyncpa [#allocation5], 0 }
   0x3   :  { %10 = vsyncpa [#allocation5 + $0x1], 0  ;;  %s1218_s12 = smov 0   ;;  %s1220_s13 = smov 0  }
   0x4   :  { %s1222_s14 = smov 0   ;;  %s1224_s15 = smov 0  }
   0x5   :  { %s1226_s16 = smov 0   ;;  %s1228_s17 = smov 0  }
   0x6   :  { %s1230_s18 = smov 0   ;;  %s1232_s19 = smov 0  }
   0x7   :  { %s1234_s20 = smov 0   ;;  %s1236_s21 = smov 0  }
   0x8   :  { %s1238_s22 = smov 0   ;;  %s1240_s23 = smov 0  }
   0x9 LB: > { %1499 = sst [smem:[#allocation8_spill]] %s1152_s13  ;;  %s767_s24 = sadd.s32 4294967295, %s1192_s23   ;;  %s1192_s23 = sphi %s1240_s23, %s16_s23   ;;  %s1188_s22 = sphi %s1238_s22, %s1524_s22   ;;  %s1184_s21 = sphi %s1236_s21, %s1523_s21   ;;  %s1180_s20 = sphi %s1234_s20, %s1522_s20   ;;  %s1176_s19 = sphi %s1232_s19, %s1521_s19   ;;  %s1172_s18 = sphi %s1230_s18, %s1515_s18   ;;  %s1168_s17 = sphi %s1228_s17, %s1514_s17   ;;  %s1164_s16 = sphi %s1226_s16, %s1520_s16   ;;  %s1160_s15 = sphi %s1224_s15, %s1519_s15   ;;  %s1156_s14 = sphi %s1222_s14, %s1518_s14   ;;  %s1152_s13 = sphi %s1220_s13, %s1512_s13   ;;  %s1148_s12 = sphi %s1218_s12, %s1511_s12  }
   0xa   : > { %1500 = sst [smem:[#allocation9_spill]] %s1172_s18  ;;  %s28_s25 = sadd.s32 1, %s1184_s21 }
   0xb   : > { %p29_p0 = scmp.ge.s32.totalorder %s28_s25, 3  ;;  %s31_s26 = sadd.s32 1, %s1188_s22 }
   0xc   : > { %s44_s27 = sadd.s32 1, %s1172_s18  ;;  %p51_p1 = scmp.ne.s32.totalorder %s1172_s18, %s1168_s17 }
   0xd   : > { %s1526_s25 = smov (%p29_p0, %s28_s25), 0  ;;  %s1528_s26 = smov (!%p29_p0, %s31_s26), %s1188_s22 }
   0xe   : > { %1501 = sst [smem:[#allocation10_spill]] %s1526_s25  ;;  %s40_s28 = ssub.s32 %s1184_s21, %s1526_s25 }
   0xf   : > { %p52_p2 = scmp.eq.s32.totalorder %s1192_s23, 0  ;;  %p33_p3 = scmp.ge.s32.totalorder %s1528_s26, 9 }
  0x10   : > { %p42_p4 = scmp.eq.s32.totalorder %s40_s28, 0  ;;  %s72_s30 = sadd.s32 1, %s1164_s16 }
  0x11   : > { %p1290_p5 = por %p52_p2, %p51_p1  ;;  %s1530_s26 = smov (%p33_p3, %s1528_s26), 0 }
  0x12   : > { %1503 = sst [smem:[#allocation11_spill]] %s1530_s26  ;;  %s68_s5 = ssub.s32 %s1188_s22, %s1530_s26 }
  0x13   : > { %s1298_s4 = scalar_select %p42_p4, %s1172_s18, %s44_s27  }
  0x14   : > { %p79_p6 = scmp.ne.s32.totalorder %s1164_s16, %s1160_s15  ;;  %s69_s6 = sor.u32 %s68_s5, %s40_s28 }
  0x15   : > { %1504 = sst [smem:[#allocation12_spill]] %s1298_s4  ;;  %p85_p7 = scmp.ne.s32.totalorder %s1160_s15, %s1156_s14 }
  0x16   : > { %p70_p8 = scmp.eq.s32.totalorder %s69_s6, 0  ;;  %p1306_p9 = por %p79_p6, %p52_p2 }
  0x17   : > { %p86_p10 = scmp.eq.s32.totalorder %s767_s24, 0  ;;  %p124_p11 = scmp.eq.s32.totalorder %s68_s5, 0 }
  0x18   : > { %s1313_s8 = scalar_select %p70_p8, %s1164_s16, %s72_s30  }
  0x19   : > { %p1315_p12 = por %p86_p10, %p85_p7  ;;  %s126_s10 = sadd.s32 1, %s1152_s13 }
  0x1a   : > { %1506 = sst [smem:[#allocation13_spill]] %s1313_s8  ;;  %p136_p13 = scmp.ne.s32.totalorder %s1152_s13, %s1148_s12 }
  0x1b   : > { %s1321_s11 = scalar_select %p124_p11, %s1152_s13, %s126_s10  }
  0x1c   : > { %p137_p0 = scmp.eq.s32.totalorder %s767_s24, 26  ;;  %p770_p2 = scmp.ge.s32.totalorder %s1192_s23, 27 }
  0x1d   : > { %1508 = sst [smem:[#allocation14_spill]] %s1321_s11 }
  0x1e   : > { %p1327_p1 = por %p137_p0, %p136_p13  ;;  %159 = sbr.rel (%p770_p2) target bundleno = 55 (0x37), region = 16 }
  0x23   : > { %162 = sbr.rel (!%p1290_p5) target bundleno = 47 (0x2f), region = 20  ;;  %s164_s27 = sand.u32 (%p1290_p5), 1, %s1172_s18  }
  0x24   : > { %s927_s28 = sshll.u32 (%p1290_p5), %s1184_s21, 3  ;;  %s771_s30 = sshll.u32 (%p1290_p5), %s164_s27, 4 }
  0x25   : > { %s1510_s0 = sld [smem:[#allocation15_spill]] (%p1290_p5)  ;;  %s166_s24 = scalar_lea.vmem (%p1290_p5), [#allocation3], %s771_s30 }
  0x2b   : > { %s172_s10 = scalar_lea.vmem %s1510_s0, %s927_s28 }
  0x2c   : > { %v203_v0 = vld [vmem:[%s172_s10] sm:$0xff]  ;;  %v205_v1 = vld [vmem:[%s172_s10 + $0x18] sm:$0xff] }
  0x2d   : > { %204 = vst [vmem:[%s166_s24] sm:$0xff] %v203_v0 }
  0x2e   : > { %206 = vst [vmem:[%s166_s24 + $0x8] sm:$0xff] %v205_v1 }
  0x2f PF: > { %s213_s29 = sand.u32 1, %s1164_s16   ;;  %s776_s26 = sshll.u32 %s1188_s22, 1 }
  0x30   : > { %s774_s25 = sshll.u32 %s213_s29, 8  ;;  %s963_s4 = smul.u32 576, %s1184_s21 }
  0x31   : > { %s217_s18 = scalar_lea.vmem [#allocation4], %s774_s25  ;;  %s214_s24 = scalar_lea.sflag [#allocation5], %s213_s29 }
  0x32   : > { %s228_s27 = sshll.u32 %s217_s18, 4  ;;  %s223_s8 = sadd.s32 %s963_s4, %s776_s26  ;;  %s229_s27 = int_to_ptr.vmem [resolvable:$true] %s228_s27 }
  0x33   : > { %s778_s5 = sshll.u32 %s223_s8, 2  ;;  %s1194_s0 = smov 1152  }
  0x34   : > { %s225_s30 = scalar_lea.hbm %s1491_s1, %s778_s5  ;;  %s1195_s11 = smov 128  }
  0x35   : > { %s226_s10 = sshll.u32 %s225_s30, 4  ;;  %s1196_s13 = smov 8   ;;  %s227_s10 = int_to_ptr.hbm [resolvable:$true] %s226_s10 }
  0x36   : > { %964 = dma.hbm_to_vmem [thread:$0]  (%p1306_p9), %s227_s10, 4096, %s229_s27, %s214_s24, %s1194_s0, %s1195_s11, %s1196_s13  }
  0x37 PF: > { %p779_p3 = scmp.ge.s32.totalorder %s1192_s23, 1  ;;  %p244_p4 = scmp.lt.s32.totalorder %s1192_s23, 28 }
  0x39   : > { %p245_p5 = pnand %p779_p3, %p244_p4 }
  0x3a   : > { %s251_s18 = sand.u32 (!%p245_p5), 1, %s1168_s17   ;;  %s257_s25 = sand.u32 (!%p245_p5), 1, %s1160_s15  }
  0x3b   : > { %248 = sbr.rel (%p245_p5) target bundleno = 280 (0x118), region = 66  ;;  %s780_s26 = sshll.u32 (!%p245_p5), %s251_s18, 4 }
  0x3c   : > { %s781_s4 = sshll.u32 (!%p245_p5), %s257_s25, 8  ;;  %s1351_s8 = scalar_lea.vmem (!%p245_p5), [#allocation3], %s780_s26 }
  0x3d   : > { %s258_s29 = scalar_lea.sflag (!%p245_p5), [#allocation5], %s257_s25  ;;  %s1353_s5 = scalar_lea.vmem (!%p245_p5), [#allocation4], %s781_s4 }
  0x40   : > { %1143 = dma.done.wait (%p1315_p12), %s258_s29, 4096  }
  0x41   : > { %1145 = vsyncadd (%p1315_p12), %s258_s29, 4294963200  ;;  %s289_s0 = sand.u32 1, %s1148_s12   ;;  %s783_s13 = sshll.u32 %s1180_s20, 1 }
  0x42   : > { %s782_s7 = sshll.u32 %s289_s0, 4  ;;  %p297_p6 = scmp.lt.s32.totalorder %s783_s13, 17 }
  0x43   : > { %s1367_s28 = scalar_lea.vmem [#allocation6], %s782_s7  ;;  %p784_p7 = scmp.ne.s32.totalorder %s1176_s19, 0 }
  0x44   : > { %s1532_s13 = smov (!%p297_p6, %s783_s13), 17 }
  0x45   : > { %s299_s27 = scalar_lea.vmem %s1492_s2, %s1532_s13  ;;  %306 = sbr.rel (%p784_p7) target bundleno = 79 (0x4f), region = 78 }
  0x4a   : > { %v1197_v2 = vmov 0.0  }
  0x4b   : > { %307 = vst [vmem:[#allocation2 + $0x10] sm:$0xff] %v1197_v2 }
  0x4c   : > { %308 = vst [vmem:[#allocation2] sm:$0xff] %v1197_v2 }
  0x4d   : > { %309 = vst [vmem:[#allocation2 + $0x18] sm:$0xff] %v1197_v2 }
  0x4e   : > { %310 = vst [vmem:[#allocation2 + $0x8] sm:$0xff] %v1197_v2 }
  0x4f PF: > { %v851_v3 = vld [vmem:[%s1353_s5 + $0x70] sm:$0xf]  ;;  %v945_v4 = vld [vmem:[%s1353_s5 + $0x74] sm:$0xf0]  ;;  %v944_v8 = vld [vmem:[%s1353_s5 + $0x74] sm:$0xf] }
  0x50   : > { %v915_v5 = vld [vmem:[%s1353_s5 + $0xf0] sm:$0xf]  ;;  %v852_v6 = vor.u32 %v945_v4, %v851_v3  ;;  %v961_v7 = vld [vmem:[%s1353_s5 + $0xf4] sm:$0xf0]  ;;  %v853_v9 = vld [vmem:[%s1353_s5 + $0x78] sm:$0xf0] }
  0x51   : > { %v916_v10 = vor.u32 %v961_v7, %v915_v5  ;;  %v856_v11 = vor.u32 %v944_v8, %v853_v9  ;;  %v960_v12 = vld [vmem:[%s1353_s5 + $0xf4] sm:$0xf]  ;;  %v917_v13 = vld [vmem:[%s1353_s5 + $0xf8] sm:$0xf0]  ;;  %v843_v14 = vld [vmem:[%s1353_s5 + $0x60] sm:$0xf] }
  0x52   : > { %519 = vmatpush.bf16.msra.mxu0 %v852_v6  ;;  %v920_v15 = vor.u32 %v960_v12, %v917_v13  ;;  %v943_v16 = vld [vmem:[%s1353_s5 + $0x64] sm:$0xf0]  ;;  %v907_v17 = vld [vmem:[%s1353_s5 + $0xe0] sm:$0xf]  ;;  %v942_v21 = vld [vmem:[%s1353_s5 + $0x64] sm:$0xf] }
  0x53   : > { %v959_v18 = vld [vmem:[%s1353_s5 + $0xe4] sm:$0xf0]  ;;  %533 = vmatpush.bf16.msra.mxu1 %v916_v10  ;;  %547 = vmatpush.bf16.msra.mxu2 %v856_v11  ;;  %v844_v19 = vor.u32 %v943_v16, %v843_v14  ;;  %v845_v22 = vld [vmem:[%s1353_s5 + $0x68] sm:$0xf0]  ;;  %v958_v23 = vld [vmem:[%s1353_s5 + $0xe4] sm:$0xf] }
  0x54   : > { %v908_v20 = vor.u32 %v959_v18, %v907_v17  ;;  %561 = vmatpush.bf16.msra.mxu3 %v920_v15  ;;  %v848_v24 = vor.u32 %v942_v21, %v845_v22  ;;  %v909_v25 = vld [vmem:[%s1353_s5 + $0xe8] sm:$0xf0]  ;;  %v835_v26 = vld [vmem:[%s1353_s5 + $0x50] sm:$0xf]  ;;  %v941_v27 = vld [vmem:[%s1353_s5 + $0x54] sm:$0xf0] }
  0x55   : > { %v912_v28 = vor.u32 %v958_v23, %v909_v25  ;;  %v899_v29 = vld [vmem:[%s1353_s5 + $0xd0] sm:$0xf]  ;;  %v957_v30 = vld [vmem:[%s1353_s5 + $0xd4] sm:$0xf0]  ;;  %v940_v31 = vld [vmem:[%s1353_s5 + $0x54] sm:$0xf]  ;;  %v836_v32 = vor.u32 %v941_v27, %v835_v26 }
  0x56   : > { %520 = vmatpush.bf16.msra.mxu0 %v844_v19  ;;  %v837_v33 = vld [vmem:[%s1353_s5 + $0x58] sm:$0xf0]  ;;  %v956_v34 = vld [vmem:[%s1353_s5 + $0xd4] sm:$0xf]  ;;  %v900_v36 = vor.u32 %v957_v30, %v899_v29  ;;  %v827_v38 = vld [vmem:[%s1353_s5 + $0x40] sm:$0xf] }
  0x57   : > { %v901_v35 = vld [vmem:[%s1353_s5 + $0xd8] sm:$0xf0]  ;;  %534 = vmatpush.bf16.msra.mxu1 %v908_v20  ;;  %548 = vmatpush.bf16.msra.mxu2 %v848_v24  ;;  %v840_v37 = vor.u32 %v940_v31, %v837_v33  ;;  %v939_v39 = vld [vmem:[%s1353_s5 + $0x44] sm:$0xf0]  ;;  %v891_v40 = vld [vmem:[%s1353_s5 + $0xc0] sm:$0xf] }
  0x58   : > { %562 = vmatpush.bf16.msra.mxu3 %v912_v28  ;;  %v904_v41 = vor.u32 %v956_v34, %v901_v35  ;;  %v955_v42 = vld [vmem:[%s1353_s5 + $0xc4] sm:$0xf0]  ;;  %v938_v43 = vld [vmem:[%s1353_s5 + $0x44] sm:$0xf]  ;;  %v829_v44 = vld [vmem:[%s1353_s5 + $0x48] sm:$0xf0]  ;;  %v828_v47 = vor.u32 %v939_v39, %v827_v38 }
  0x59   : > { %v954_v45 = vld [vmem:[%s1353_s5 + $0xc4] sm:$0xf]  ;;  %v893_v46 = vld [vmem:[%s1353_s5 + $0xc8] sm:$0xf0]  ;;  %v892_v48 = vor.u32 %v955_v42, %v891_v40  ;;  %v832_v49 = vor.u32 %v938_v43, %v829_v44  ;;  %v819_v50 = vld [vmem:[%s1353_s5 + $0x30] sm:$0xf] }
  0x5a   : > { %521 = vmatpush.bf16.msra.mxu0 %v836_v32  ;;  %v937_v51 = vld [vmem:[%s1353_s5 + $0x34] sm:$0xf0]  ;;  %v883_v52 = vld [vmem:[%s1353_s5 + $0xb0] sm:$0xf]  ;;  %v896_v53 = vor.u32 %v954_v45, %v893_v46  ;;  %v936_v55 = vld [vmem:[%s1353_s5 + $0x34] sm:$0xf] }
  0x5b   : > { %535 = vmatpush.bf16.msra.mxu1 %v900_v36  ;;  %549 = vmatpush.bf16.msra.mxu2 %v840_v37  ;;  %v953_v54 = vld [vmem:[%s1353_s5 + $0xb4] sm:$0xf0]  ;;  %v821_v56 = vld [vmem:[%s1353_s5 + $0x38] sm:$0xf0]  ;;  %v952_v57 = vld [vmem:[%s1353_s5 + $0xb4] sm:$0xf]  ;;  %v820_v59 = vor.u32 %v937_v51, %v819_v50 }
  0x5c   : > { %563 = vmatpush.bf16.msra.mxu3 %v904_v41  ;;  %v885_v58 = vld [vmem:[%s1353_s5 + $0xb8] sm:$0xf0]  ;;  %v884_v60 = vor.u32 %v953_v54, %v883_v52  ;;  %v824_v61 = vor.u32 %v936_v55, %v821_v56  ;;  %v811_v62 = vld [vmem:[%s1353_s5 + $0x20] sm:$0xf]  ;;  %v935_v63 = vld [vmem:[%s1353_s5 + $0x24] sm:$0xf0] }
  0x5d   : > { %v875_v0 = vld [vmem:[%s1353_s5 + $0xa0] sm:$0xf]  ;;  %v888_v1 = vor.u32 %v952_v57, %v885_v58  ;;  %v951_v2 = vld [vmem:[%s1353_s5 + $0xa4] sm:$0xf0]  ;;  %v934_v3 = vld [vmem:[%s1353_s5 + $0x24] sm:$0xf]  ;;  %v812_v7 = vor.u32 %v935_v63, %v811_v62 }
  0x5e   : > { %522 = vmatpush.bf16.msra.mxu0 %v828_v47  ;;  %v813_v4 = vld [vmem:[%s1353_s5 + $0x28] sm:$0xf0]  ;;  %v950_v5 = vld [vmem:[%s1353_s5 + $0xa4] sm:$0xf]  ;;  %v876_v8 = vor.u32 %v951_v2, %v875_v0  ;;  %v803_v10 = vld [vmem:[%s1353_s5 + $0x10] sm:$0xf] }
  0x5f   : > { %536 = vmatpush.bf16.msra.mxu1 %v892_v48  ;;  %550 = vmatpush.bf16.msra.mxu2 %v832_v49  ;;  %v877_v6 = vld [vmem:[%s1353_s5 + $0xa8] sm:$0xf0]  ;;  %v816_v9 = vor.u32 %v934_v3, %v813_v4  ;;  %v933_v11 = vld [vmem:[%s1353_s5 + $0x14] sm:$0xf0]  ;;  %v867_v12 = vld [vmem:[%s1353_s5 + $0x90] sm:$0xf] }
  0x60   : > { %564 = vmatpush.bf16.msra.mxu3 %v896_v53  ;;  %v880_v13 = vor.u32 %v950_v5, %v877_v6  ;;  %v949_v14 = vld [vmem:[%s1353_s5 + $0x94] sm:$0xf0]  ;;  %v932_v15 = vld [vmem:[%s1353_s5 + $0x14] sm:$0xf]  ;;  %v805_v16 = vld [vmem:[%s1353_s5 + $0x18] sm:$0xf0]  ;;  %v804_v19 = vor.u32 %v933_v11, %v803_v10 }
  0x61   : > { %v948_v17 = vld [vmem:[%s1353_s5 + $0x94] sm:$0xf]  ;;  %v869_v18 = vld [vmem:[%s1353_s5 + $0x98] sm:$0xf0]  ;;  %v868_v20 = vor.u32 %v949_v14, %v867_v12  ;;  %v808_v21 = vor.u32 %v932_v15, %v805_v16  ;;  %v795_v22 = vld [vmem:[%s1353_s5] sm:$0xf] }
  0x62   : > { %523 = vmatpush.bf16.msra.mxu0 %v820_v59  ;;  %v931_v23 = vld [vmem:[%s1353_s5 + $0x4] sm:$0xf0]  ;;  %v859_v24 = vld [vmem:[%s1353_s5 + $0x80] sm:$0xf]  ;;  %v872_v25 = vor.u32 %v948_v17, %v869_v18  ;;  %v930_v27 = vld [vmem:[%s1353_s5 + $0x4] sm:$0xf] }
  0x63   : > { %537 = vmatpush.bf16.msra.mxu1 %v884_v60  ;;  %551 = vmatpush.bf16.msra.mxu2 %v824_v61  ;;  %v947_v26 = vld [vmem:[%s1353_s5 + $0x84] sm:$0xf0]  ;;  %v797_v28 = vld [vmem:[%s1353_s5 + $0x8] sm:$0xf0]  ;;  %v946_v29 = vld [vmem:[%s1353_s5 + $0x84] sm:$0xf]  ;;  %v796_v31 = vor.u32 %v931_v23, %v795_v22 }
  0x64   : > { %565 = vmatpush.bf16.msra.mxu3 %v888_v1  ;;  %v861_v30 = vld [vmem:[%s1353_s5 + $0x88] sm:$0xf0]  ;;  %v787_v32 = vld [vmem:[%s1351_s8] sm:$0xf]  ;;  %v929_v33 = vld [vmem:[%s1351_s8 + $0x4] sm:$0xf0]  ;;  %v860_v34 = vor.u32 %v947_v26, %v859_v24  ;;  %v800_v35 = vor.u32 %v930_v27, %v797_v28 }
  0x65   : > { %v928_v36 = vld [vmem:[%s1351_s8 + $0x4] sm:$0xf]  ;;  %v789_v37 = vld [vmem:[%s1351_s8 + $0x8] sm:$0xf0]  ;;  %v864_v38 = vor.u32 %v946_v29, %v861_v30  ;;  %v788_v39 = vor.u32 %v929_v33, %v787_v32  ;;  %p921_p8 = scmp.ne.s32.totalorder %s1176_s19, 2 }
  0x66   : > { %524 = vmatpush.bf16.msra.mxu0 %v812_v7  ;;  %v792_v40 = vor.u32 %v928_v36, %v789_v37  ;;  %v311_v42 = vld [vmem:[#allocation2 + $0x10] sm:$0xff]  ;;  %v312_v47 = vld [vmem:[#allocation2] sm:$0xff]  ;;  %v313_v51 = vld [vmem:[#allocation2 + $0x18] sm:$0xff] }
  0x67   : > { %538 = vmatpush.bf16.msra.mxu1 %v876_v8  ;;  %552 = vmatpush.bf16.msra.mxu2 %v816_v9  ;;  %v314_v57 = vld [vmem:[#allocation2 + $0x8] sm:$0xff] }
  0x68   : > { %566 = vmatpush.bf16.msra.mxu3 %v880_v13 }
  0x6a   : > { %525 = vmatpush.bf16.msra.mxu0 %v804_v19 }
  0x6b   : > { %539 = vmatpush.bf16.msra.mxu1 %v868_v20  ;;  %553 = vmatpush.bf16.msra.mxu2 %v808_v21 }
  0x6c   : > { %567 = vmatpush.bf16.msra.mxu3 %v872_v25 }
  0x6e   : > { %526 = vmatpush.bf16.msra.mxu0 %v796_v31 }
  0x6f   : > { %540 = vmatpush.bf16.msra.mxu1 %v860_v34  ;;  %554 = vmatpush.bf16.msra.mxu2 %v800_v35 }
  0x70   : > { %568 = vmatpush.bf16.msra.mxu3 %v864_v38 }
  0x71   : > { %527 = vmatmul.bf16.vlgmr.msra.gmra.mxu0 %v788_v39 }
  0x72   : > { %541 = vmatmul.bf16.vlgmr.msra.gmra.mxu1 %v792_v40  ;;  %555 = vmatmul.bf16.vlgmr.msra.gmra.mxu2 %v788_v39 }
  0x73   : > { %569 = vmatmul.bf16.vlgmr.msra.gmra.mxu3 %v792_v40 }
  0xee   : > { %v528_v41 = vpop.f32.mrf.mxu0 }
  0xef   : > { %v542_v43 = vpop.f32.mrf.mxu1 }
  0xf0   : > { %v543_v44 = vadd.f32 %v542_v43, %v528_v41 }
  0xf2   : > { %v575_v45 = vadd.f32 %v543_v44, %v311_v42 }
  0xf4   : > { %579 = vst [vmem:[#allocation2 + $0x10] sm:$0xff] %v575_v45 }
  0xf5   : > { %v556_v46 = vpop.f32.mrf.mxu2 }
  0xf6   : > { %v570_v48 = vpop.f32.mrf.mxu3  ;;  %v530_v49 = vpop.f32.mrf.mxu0 }
  0xf7   : > { %v571_v50 = vadd.f32 %v570_v48, %v556_v46  ;;  %v544_v52 = vpop.f32.mrf.mxu1 }
  0xf8   : > { %v545_v53 = vadd.f32 %v544_v52, %v530_v49 }
  0xf9   : > { %v576_v54 = vadd.f32 %v571_v50, %v312_v47 }
  0xfa   : > { %v577_v55 = vadd.f32 %v545_v53, %v313_v51 }
  0xfb   : > { %580 = vst [vmem:[#allocation2] sm:$0xff] %v576_v54 }
  0xfc   : > { %581 = vst [vmem:[#allocation2 + $0x18] sm:$0xff] %v577_v55 }
  0xfd   : > { %v558_v56 = vpop.f32.mrf.mxu2 }
  0xfe   : > { %v572_v58 = vpop.f32.mrf.mxu3 }
  0xff   : > { %v573_v59 = vadd.f32 %v572_v58, %v558_v56  ;;  %586 = sbr.rel (%p921_p8) target bundleno = 272 (0x110), region = 82 }
 0x101   : > { %v578_v60 = vadd.f32 %v573_v59, %v314_v57 }
 0x103   : > { %582 = vst [vmem:[#allocation2 + $0x8] sm:$0xff] %v578_v60 }
 0x104   : > { %v587_v61 = vld [vmem:[#allocation2 + $0x10] sm:$0xff]  ;;  %v588_v62 = vld [vmem:[#allocation2] sm:$0xff]  ;;  %v589_v2 = vld [vmem:[#allocation2 + $0x18] sm:$0xff] }
 0x105   : > { %v591_v63 = vld [vmem:[%s299_s27] sm:$0x3] }
 0x106   : > { %v593_v0 = vperm.slane %v591_v63, 0  ;;  %v594_v1 = vperm.slane %v591_v63, 1 }
 0x108   : > { %v597_v4 = vadd.f32 %v593_v0, %v587_v61  ;;  %v598_v5 = vadd.f32 %v594_v1, %v588_v62  ;;  %v599_v6 = vadd.f32 %v593_v0, %v589_v2 }
 0x10a   : > { %v590_v3 = vld [vmem:[#allocation2 + $0x8] sm:$0xff]  ;;  %v601_v8 = vpack.c.bf16 %v598_v5, %v597_v4 }
 0x10b   : > { %v600_v7 = vadd.f32 %v594_v1, %v590_v3 }
 0x10c   : > { %603 = vst [vmem:[%s1367_s28] sm:$0xff] %v601_v8 }
 0x10d   : > { %v602_v9 = vpack.c.bf16 %v600_v7, %v599_v6 }
 0x10f   : > { %604 = vst [vmem:[%s1367_s28 + $0x8] sm:$0xff] %v602_v9 }
 0x110 PF: > { %611 = sbr.rel (!%p1327_p1) target bundleno = 280 (0x118), region = 86  ;;  %s962_s19 = sshll.u32 (%p1327_p1), %s1180_s20, 3 }
 0x111   : > { %s617_s10 = scalar_lea.vmem (%p1327_p1), %s1493_s3, %s962_s19 }
 0x113   : > { %v648_v10 = vld [vmem:[%s1367_s28] sm:$0xff] (%p1327_p1) }
 0x114   : > { %649 = vst [vmem:[%s617_s10] sm:$0xff] (%p1327_p1), %v648_v10 }
 0x116   : > { %v650_v11 = vld [vmem:[%s1367_s28 + $0x8] sm:$0xff] }
 0x117   : > { %651 = vst [vmem:[%s617_s10 + $0x48] sm:$0xff] %v650_v11 }
 0x118 PF: > { %s16_s23 = sadd.s32 1, %s1192_s23   ;;  %s1511_s12 = sld [smem:[#allocation8_spill]] }
 0x119   : > { %p13_p9 = scmp.ge.s32.totalorder %s16_s23, 29   ;;  %s1512_s13 = sld [smem:[#allocation14_spill]] }
 0x11a   : > { %s1513_s24 = sld [smem:[#allocation13_spill]]  ;;  %s1518_s14 = smov %s1160_s15 }
 0x11b   : > { %s1514_s17 = sld [smem:[#allocation9_spill]]  ;;  %s1519_s15 = smov %s1164_s16 }
 0x11c   : > { %s1515_s18 = sld [smem:[#allocation12_spill]]  ;;  %s1521_s19 = smov %s1184_s21 }
 0x11d   : > { %s1516_s25 = sld [smem:[#allocation10_spill]]  ;;  %s1522_s20 = smov %s1188_s22 }
 0x11e   : > { %s1517_s26 = sld [smem:[#allocation11_spill]] }
 0x120   : > { %s1520_s16 = smov %s1513_s24  ;;  %15 = sbr.rel (!%p13_p9) target bundleno = 9 (0x9), region = 167 }
 0x123   : > { %s1523_s21 = smov %s1516_s25 }
 0x124   : > { %s1524_s22 = smov %s1517_s26 }
 0x125   :  { %667 = vsyncpa [#allocation5], 1 }
 0x126   :  { %669 = vsyncpa [#allocation5 + $0x1], 1 }

// kernel: base_model_forward.86
= control target key start
LH: loop header
LB: loop body
LE: loop exit
PB: predicated region body
PF: predicated region fallthrough
CT: control target
= control target key end

     0   :  { %v198_v22 = vmov 768.0   ;;  %s355_s0 = inlined_call_operand.vmem [shape: f32[16,768], index: 0, kind: input, shape index: {}]   ;;  %s356_s1 = inlined_call_operand.vmem [shape: f32[1,768], index: 1, kind: input, shape index: {}]   ;;  %s357_s2 = inlined_call_operand.vmem [shape: f32[1,768], index: 2, kind: input, shape index: {}]   ;;  %s358_s3 = inlined_call_operand.vmem [shape: bf16[16,768], index: 3, kind: output, shape index: {}]  }
   0x1   :  { %v14_v0 = vld [vmem:[%s355_s0] sm:$0xff]  ;;  %v15_v1 = vld [vmem:[%s355_s0 + $0x8] sm:$0xff]  ;;  %v16_v2 = vld [vmem:[%s355_s0 + $0x10] sm:$0xff]  ;;  %192 = vrcp.f32 %v198_v22 }
   0x2   :  { %v17_v3 = vld [vmem:[%s355_s0 + $0x18] sm:$0xff]  ;;  %v26_v4 = vadd.f32 %v15_v1, %v14_v0  ;;  %v20_v5 = vld [vmem:[%s355_s0 + $0x30] sm:$0xff]  ;;  %v22_v7 = vld [vmem:[%s355_s0 + $0x40] sm:$0xff] }
   0x3   :  { %v21_v6 = vld [vmem:[%s355_s0 + $0x38] sm:$0xff]  ;;  %v18_v10 = vld [vmem:[%s355_s0 + $0x20] sm:$0xff]  ;;  %v23_v11 = vld [vmem:[%s355_s0 + $0x48] sm:$0xff] }
   0x4   :  { %v27_v8 = vadd.f32 %v26_v4, %v16_v2  ;;  %v33_v9 = vadd.f32 %v21_v6, %v20_v5  ;;  %v19_v14 = vld [vmem:[%s355_s0 + $0x28] sm:$0xff]  ;;  %v24_v17 = vld [vmem:[%s355_s0 + $0x50] sm:$0xff]  ;;  %v25_v20 = vld [vmem:[%s355_s0 + $0x58] sm:$0xff] }
   0x6   :  { %v28_v12 = vadd.f32 %v27_v8, %v17_v3  ;;  %v34_v13 = vadd.f32 %v33_v9, %v22_v7 }
   0x7   :  { %v193_v23 = vpop.eup %192 }
   0x8   :  { %v29_v15 = vadd.f32 %v28_v12, %v18_v10  ;;  %v35_v16 = vadd.f32 %v34_v13, %v23_v11  ;;  %v41_v24 = vmul.f32 768.0, %v193_v23  ;;  %vm45_vm0 = vweird.f32 %v193_v23  ;;  %v306_v12 = vld [vmem:[%s356_s1] sm:$0x3f] }
   0xa   :  { %v30_v18 = vadd.f32 %v29_v15, %v19_v14  ;;  %v36_v19 = vadd.f32 %v35_v16, %v24_v17  ;;  %v42_v25 = vsub.f32 1.0, %v41_v24  ;;  %v130_v24 = vperm.slane %v306_v12, 5 }
   0xc   :  { %31 = vadd.xlane.f32.xlu0 %v30_v18  ;;  %v37_v21 = vadd.f32 %v36_v19, %v25_v20  ;;  %v43_v26 = vmul.f32 %v193_v23, %v42_v25  ;;  %v126_v18 = vperm.slane %v306_v12, 1  ;;  %v127_v19 = vperm.slane %v306_v12, 2 }
   0xe   :  { %v44_v27 = vadd.f32 %v193_v23, %v43_v26 }
  0x10   :  { %v46_v28 = vsel %vm45_vm0, %v193_v23, %v44_v27 }
  0x14   :  { %38 = vadd.xlane.f32.xlu0 %v37_v21  ;;  %v129_v21 = vperm.slane %v306_v12, 4 }
  0x7f   :  { %v32_v29 = vpop.xlane.xlu0 %31 }
  0x80   :  { %v47_v30 = vmul.f32 %v46_v28, %v32_v29 }
  0x82   :  { %v255_v31 = vsub.f32 %v14_v0, %v47_v30  ;;  %v257_v32 = vsub.f32 %v15_v1, %v47_v30  ;;  %v259_v33 = vsub.f32 %v16_v2, %v47_v30  ;;  %v261_v34 = vsub.f32 %v17_v3, %v47_v30 }
  0x83   :  { %v267_v37 = vsub.f32 %v18_v10, %v47_v30  ;;  %v271_v41 = vsub.f32 %v19_v14, %v47_v30  ;;  %v311_v14 = vld [vmem:[%s357_s2] sm:$0x3f] }
  0x84   :  { %v61_v35 = vmul.f32 %v255_v31, %v255_v31  ;;  %v62_v36 = vmul.f32 %v257_v32, %v257_v32  ;;  %v63_v38 = vmul.f32 %v259_v33, %v259_v33  ;;  %v64_v43 = vmul.f32 %v261_v34, %v261_v34 }
  0x85   :  { %v65_v45 = vmul.f32 %v267_v37, %v267_v37  ;;  %v66_v50 = vmul.f32 %v271_v41, %v271_v41  ;;  %v151_v25 = vperm.slane %v311_v14, 0  ;;  %v152_v26 = vperm.slane %v311_v14, 1 }
  0x86   :  { %v73_v39 = vadd.f32 %v62_v36, %v61_v35  ;;  %v153_v27 = vperm.slane %v311_v14, 2  ;;  %v155_v29 = vperm.slane %v311_v14, 4 }
  0x87   :  { %v39_v40 = vpop.xlane.xlu0 %38 }
  0x88   :  { %v48_v42 = vmul.f32 %v46_v28, %v39_v40  ;;  %v74_v44 = vadd.f32 %v73_v39, %v63_v38 }
  0x8a   :  { %v75_v46 = vadd.f32 %v74_v44, %v64_v43  ;;  %v277_v47 = vsub.f32 %v20_v5, %v48_v42  ;;  %v279_v48 = vsub.f32 %v21_v6, %v48_v42  ;;  %v281_v49 = vsub.f32 %v22_v7, %v48_v42 }
  0x8b   :  { %v285_v52 = vsub.f32 %v23_v11, %v48_v42  ;;  %v291_v56 = vsub.f32 %v24_v17, %v48_v42  ;;  %v295_v59 = vsub.f32 %v25_v20, %v48_v42  ;;  %v125_v17 = vperm.slane %v306_v12, 0 }
  0x8c   :  { %v76_v51 = vadd.f32 %v75_v46, %v65_v45  ;;  %v67_v53 = vmul.f32 %v277_v47, %v277_v47  ;;  %v68_v54 = vmul.f32 %v279_v48, %v279_v48  ;;  %v69_v57 = vmul.f32 %v281_v49, %v281_v49 }
  0x8d   :  { %v70_v60 = vmul.f32 %v285_v52, %v285_v52  ;;  %v71_v62 = vmul.f32 %v291_v56, %v291_v56  ;;  %v72_v0 = vmul.f32 %v295_v59, %v295_v59  ;;  %v128_v20 = vperm.slane %v306_v12, 3 }
  0x8e   :  { %v77_v55 = vadd.f32 %v76_v51, %v66_v50  ;;  %v80_v58 = vadd.f32 %v68_v54, %v67_v53  ;;  %v156_v42 = vperm.slane %v311_v14, 5 }
  0x90   :  { %78 = vadd.xlane.f32.xlu1 %v77_v55  ;;  %v81_v61 = vadd.f32 %v80_v58, %v69_v57 }
  0x92   :  { %v82_v63 = vadd.f32 %v81_v61, %v70_v60 }
  0x94   :  { %v83_v1 = vadd.f32 %v82_v63, %v71_v62 }
  0x96   :  { %v84_v2 = vadd.f32 %v83_v1, %v72_v0 }
  0x98   :  { %85 = vadd.xlane.f32.xlu1 %v84_v2 }
 0x103   :  { %v79_v3 = vpop.xlane.xlu1 %78 }
 0x104   :  { %v87_v4 = vmul.f32 %v79_v3, %v46_v28 }
 0x106   :  { %v89_v5 = vadd.f32 1e-12, %v87_v4 }
 0x108   :  { %194 = vrsqrt.f32 %v89_v5  ;;  %vm97_vm2 = vweird.f32 %v89_v5 }
 0x10b   :  { %v86_v6 = vpop.xlane.xlu1 %85 }
 0x10c   :  { %v88_v7 = vmul.f32 %v86_v6, %v46_v28  ;;  %v154_v28 = vperm.slane %v311_v14, 3 }
 0x10e   :  { %v195_v8 = vpop.eup %194  ;;  %v90_v9 = vadd.f32 1e-12, %v88_v7 }
 0x10f   :  { %v92_v10 = vmul.f32 %v195_v8, %v89_v5  ;;  %vm98_vm1 = vweird.f32 %v195_v8 }
 0x110   :  { %196 = vrsqrt.f32 %v90_v9  ;;  %vm99_vm3 = vmor %vm97_vm2, %vm98_vm1  ;;  %vm107_vm5 = vweird.f32 %v90_v9 }
 0x111   :  { %v93_v11 = vmul.f32 %v195_v8, %v92_v10 }
 0x113   :  { %v94_v13 = vmul.f32 0.5, %v93_v11 }
 0x115   :  { %v95_v15 = vsub.f32 1.5, %v94_v13 }
 0x116   :  { %v197_v16 = vpop.eup %196 }
 0x117   :  { %v96_v22 = vmul.f32 %v195_v8, %v95_v15  ;;  %v102_v23 = vmul.f32 %v197_v16, %v90_v9  ;;  %vm108_vm4 = vweird.f32 %v197_v16 }
 0x118   :  { %vm109_vm6 = vmor %vm107_vm5, %vm108_vm4 }
 0x119   :  { %v100_v30 = vsel %vm99_vm3, %v195_v8, %v96_v22  ;;  %v103_v35 = vmul.f32 %v197_v16, %v102_v23 }
 0x11a   :  { %v111_v36 = vmul.f32 %v100_v30, %v255_v31  ;;  %v112_v38 = vmul.f32 %v100_v30, %v257_v32  ;;  %v113_v39 = vmul.f32 %v100_v30, %v259_v33  ;;  %v114_v40 = vmul.f32 %v100_v30, %v261_v34 }
 0x11b   :  { %v115_v43 = vmul.f32 %v100_v30, %v267_v37  ;;  %v116_v44 = vmul.f32 %v100_v30, %v271_v41  ;;  %v104_v45 = vmul.f32 0.5, %v103_v35 }
 0x11c   :  { %v137_v46 = vmul.f32 %v125_v17, %v111_v36  ;;  %v138_v50 = vmul.f32 %v126_v18, %v112_v38  ;;  %v139_v51 = vmul.f32 %v127_v19, %v113_v39  ;;  %v140_v53 = vmul.f32 %v128_v20, %v114_v40 }
 0x11d   :  { %v141_v54 = vmul.f32 %v129_v21, %v115_v43  ;;  %v142_v55 = vmul.f32 %v130_v24, %v116_v44  ;;  %v105_v31 = vsub.f32 1.5, %v104_v45 }
 0x11e   :  { %v163_v32 = vadd.f32 %v151_v25, %v137_v46  ;;  %v164_v57 = vadd.f32 %v152_v26, %v138_v50  ;;  %v165_v33 = vadd.f32 %v153_v27, %v139_v51  ;;  %v166_v58 = vadd.f32 %v154_v28, %v140_v53 }
 0x11f   :  { %v167_v34 = vadd.f32 %v155_v29, %v141_v54  ;;  %v168_v60 = vadd.f32 %v156_v42, %v142_v55  ;;  %v106_v61 = vmul.f32 %v197_v16, %v105_v31 }
 0x120   :  { %v175_v37 = vpack.c.bf16 %v164_v57, %v163_v32  ;;  %v176_v62 = vpack.c.bf16 %v166_v58, %v165_v33 }
 0x121   :  { %v177_v41 = vpack.c.bf16 %v168_v60, %v167_v34  ;;  %v110_v63 = vsel %vm109_vm6, %v197_v16, %v106_v61 }
 0x122   :  { %181 = vst [vmem:[%s358_s3] sm:$0xff] %v175_v37  ;;  %v117_v0 = vmul.f32 %v110_v63, %v277_v47  ;;  %v118_v1 = vmul.f32 %v110_v63, %v279_v48  ;;  %v119_v2 = vmul.f32 %v110_v63, %v281_v49  ;;  %v120_v3 = vmul.f32 %v110_v63, %v285_v52 }
 0x123   :  { %182 = vst [vmem:[%s358_s3 + $0x8] sm:$0xff] %v176_v62  ;;  %v121_v4 = vmul.f32 %v110_v63, %v291_v56  ;;  %v122_v5 = vmul.f32 %v110_v63, %v295_v59 }
 0x124   :  { %183 = vst [vmem:[%s358_s3 + $0x10] sm:$0xff] %v177_v41  ;;  %v143_v6 = vmul.f32 %v125_v17, %v117_v0  ;;  %v144_v47 = vmul.f32 %v126_v18, %v118_v1  ;;  %v145_v7 = vmul.f32 %v127_v19, %v119_v2  ;;  %v146_v48 = vmul.f32 %v128_v20, %v120_v3 }
 0x125   :  { %v147_v8 = vmul.f32 %v129_v21, %v121_v4  ;;  %v148_v49 = vmul.f32 %v130_v24, %v122_v5 }
 0x126   :  { %v169_v9 = vadd.f32 %v151_v25, %v143_v6  ;;  %v170_v52 = vadd.f32 %v152_v26, %v144_v47  ;;  %v171_v10 = vadd.f32 %v153_v27, %v145_v7  ;;  %v172_v11 = vadd.f32 %v154_v28, %v146_v48 }
 0x127   :  { %v173_v12 = vadd.f32 %v155_v29, %v147_v8  ;;  %v174_v13 = vadd.f32 %v156_v42, %v148_v49 }
 0x128   :  { %v178_v14 = vpack.c.bf16 %v170_v52, %v169_v9  ;;  %v179_v56 = vpack.c.bf16 %v172_v11, %v171_v10 }
 0x129   :  { %v180_v15 = vpack.c.bf16 %v174_v13, %v173_v12 }
 0x12a   :  { %184 = vst [vmem:[%s358_s3 + $0x18] sm:$0xff] %v178_v14 }
 0x12b   :  { %185 = vst [vmem:[%s358_s3 + $0x20] sm:$0xff] %v179_v56 }
 0x12c   :  { %186 = vst [vmem:[%s358_s3 + $0x28] sm:$0xff] %v180_v15 }

// kernel: base_model_forward.90
= control target key start
LH: loop header
LB: loop body
LE: loop exit
PB: predicated region body
PF: predicated region fallthrough
CT: control target
= control target key end

     0   :  { %v237_v58 = vmov 768.0   ;;  %s399_s0 = inlined_call_operand.vmem [shape: bf16[16,768], index: 0, kind: input, shape index: {}]   ;;  %s400_s1 = inlined_call_operand.vmem [shape: bf16[16,768], index: 1, kind: input, shape index: {}]   ;;  %s401_s2 = inlined_call_operand.vmem [shape: f32[1,768], index: 2, kind: input, shape index: {}]   ;;  %s402_s3 = inlined_call_operand.vmem [shape: f32[1,768], index: 3, kind: input, shape index: {}]   ;;  %s403_s4 = inlined_call_operand.vmem [shape: bf16[16,768], index: 4, kind: output, shape index: {}]  }
   0x1   :  { %v17_v0 = vld [vmem:[%s399_s0] sm:$0xff]  ;;  %v18_v1 = vld [vmem:[%s399_s0 + $0x8] sm:$0xff]  ;;  %v19_v2 = vld [vmem:[%s399_s0 + $0x10] sm:$0xff]  ;;  %231 = vrcp.f32 %v237_v58 }
   0x2   :  { %v23_v3 = vunpack.c.l.bf16 %v17_v0  ;;  %v24_v4 = vunpack.c.h.bf16 %v17_v0  ;;  %v25_v5 = vunpack.c.l.bf16 %v18_v1  ;;  %v35_v6 = vld [vmem:[%s400_s1] sm:$0xff]  ;;  %v36_v7 = vld [vmem:[%s400_s1 + $0x8] sm:$0xff]  ;;  %v37_v8 = vld [vmem:[%s400_s1 + $0x10] sm:$0xff]  ;;  %v26_v9 = vunpack.c.h.bf16 %v18_v1 }
   0x3   :  { %v41_v10 = vunpack.c.l.bf16 %v35_v6  ;;  %v42_v11 = vunpack.c.h.bf16 %v35_v6  ;;  %v20_v12 = vld [vmem:[%s399_s0 + $0x18] sm:$0xff]  ;;  %v43_v13 = vunpack.c.l.bf16 %v36_v7  ;;  %v44_v14 = vunpack.c.h.bf16 %v36_v7  ;;  %v21_v15 = vld [vmem:[%s399_s0 + $0x20] sm:$0xff]  ;;  %v22_v24 = vld [vmem:[%s399_s0 + $0x28] sm:$0xff] }
   0x4   :  { %v27_v16 = vunpack.c.l.bf16 %v19_v2  ;;  %v45_v17 = vunpack.c.l.bf16 %v37_v8  ;;  %v38_v20 = vld [vmem:[%s400_s1 + $0x18] sm:$0xff]  ;;  %v39_v21 = vld [vmem:[%s400_s1 + $0x20] sm:$0xff]  ;;  %v28_v22 = vunpack.c.h.bf16 %v19_v2  ;;  %v29_v25 = vunpack.c.l.bf16 %v20_v12  ;;  %v40_v31 = vld [vmem:[%s400_s1 + $0x28] sm:$0xff] }
   0x5   :  { %v53_v18 = vadd.f32 %v41_v10, %v23_v3  ;;  %v54_v19 = vadd.f32 %v42_v11, %v24_v4  ;;  %v55_v23 = vadd.f32 %v43_v13, %v25_v5  ;;  %v30_v26 = vunpack.c.h.bf16 %v20_v12 }
   0x6   :  { %v46_v27 = vunpack.c.h.bf16 %v37_v8  ;;  %v56_v28 = vadd.f32 %v44_v14, %v26_v9  ;;  %v31_v30 = vunpack.c.l.bf16 %v21_v15  ;;  %v32_v32 = vunpack.c.h.bf16 %v21_v15 }
   0x7   :  { %v65_v29 = vadd.f32 %v54_v19, %v53_v18  ;;  %v47_v33 = vunpack.c.l.bf16 %v38_v20  ;;  %v48_v34 = vunpack.c.h.bf16 %v38_v20  ;;  %v49_v35 = vunpack.c.l.bf16 %v39_v21  ;;  %v232_v59 = vpop.eup %231 }
   0x8   :  { %v57_v36 = vadd.f32 %v45_v17, %v27_v16  ;;  %v33_v38 = vunpack.c.l.bf16 %v22_v24  ;;  %v50_v39 = vunpack.c.h.bf16 %v39_v21  ;;  %v51_v40 = vunpack.c.l.bf16 %v40_v31 }
   0x9   :  { %v66_v37 = vadd.f32 %v65_v29, %v55_v23  ;;  %v59_v41 = vadd.f32 %v47_v33, %v29_v25  ;;  %v60_v42 = vadd.f32 %v48_v34, %v30_v26  ;;  %v61_v43 = vadd.f32 %v49_v35, %v31_v30 }
   0xa   :  { %v58_v44 = vadd.f32 %v46_v27, %v28_v22  ;;  %v62_v46 = vadd.f32 %v50_v39, %v32_v32  ;;  %v34_v49 = vunpack.c.h.bf16 %v22_v24  ;;  %v52_v50 = vunpack.c.h.bf16 %v40_v31 }
   0xb   :  { %v67_v45 = vadd.f32 %v66_v37, %v56_v28  ;;  %v72_v47 = vadd.f32 %v60_v42, %v59_v41  ;;  %v63_v51 = vadd.f32 %v51_v40, %v33_v38  ;;  %v80_v60 = vmul.f32 768.0, %v232_v59 }
   0xc   :  { %v64_v55 = vadd.f32 %v52_v50, %v34_v49  ;;  %vm84_vm0 = vweird.f32 %v232_v59  ;;  %v355_v50 = vld [vmem:[%s402_s3] sm:$0x3f] }
   0xd   :  { %v68_v48 = vadd.f32 %v67_v45, %v57_v36  ;;  %v73_v52 = vadd.f32 %v72_v47, %v61_v43  ;;  %v81_v61 = vsub.f32 1.0, %v80_v60 }
   0xf   :  { %v69_v53 = vadd.f32 %v68_v48, %v58_v44  ;;  %v74_v54 = vadd.f32 %v73_v52, %v62_v46  ;;  %v82_v62 = vmul.f32 %v232_v59, %v81_v61  ;;  %v350_v48 = vld [vmem:[%s401_s2] sm:$0x3f]  ;;  %v190_v61 = vperm.slane %v355_v50, 0 }
  0x10   :  { %v169_v60 = vperm.slane %v350_v48, 5 }
  0x11   :  { %70 = vadd.xlane.f32.xlu0 %v69_v53  ;;  %v75_v56 = vadd.f32 %v74_v54, %v63_v51  ;;  %v83_v63 = vadd.f32 %v232_v59, %v82_v62  ;;  %v164_v53 = vperm.slane %v350_v48, 0  ;;  %v165_v54 = vperm.slane %v350_v48, 1 }
  0x12   :  { %v191_v62 = vperm.slane %v355_v50, 1 }
  0x13   :  { %v76_v57 = vadd.f32 %v75_v56, %v64_v55  ;;  %v85_v0 = vsel %vm84_vm0, %v232_v59, %v83_v63  ;;  %v167_v56 = vperm.slane %v350_v48, 3  ;;  %v192_v63 = vperm.slane %v355_v50, 2 }
  0x19   :  { %77 = vadd.xlane.f32.xlu0 %v76_v57  ;;  %v168_v57 = vperm.slane %v350_v48, 4 }
  0x84   :  { %v71_v1 = vpop.xlane.xlu0 %70 }
  0x85   :  { %v86_v2 = vmul.f32 %v85_v0, %v71_v1  ;;  %v194_v1 = vperm.slane %v355_v50, 4 }
  0x87   :  { %v299_v3 = vsub.f32 %v53_v18, %v86_v2  ;;  %v301_v4 = vsub.f32 %v54_v19, %v86_v2  ;;  %v303_v5 = vsub.f32 %v55_v23, %v86_v2  ;;  %v305_v6 = vsub.f32 %v56_v28, %v86_v2 }
  0x88   :  { %v311_v9 = vsub.f32 %v57_v36, %v86_v2  ;;  %v315_v13 = vsub.f32 %v58_v44, %v86_v2 }
  0x89   :  { %v100_v7 = vmul.f32 %v299_v3, %v299_v3  ;;  %v101_v8 = vmul.f32 %v301_v4, %v301_v4  ;;  %v102_v10 = vmul.f32 %v303_v5, %v303_v5  ;;  %v103_v15 = vmul.f32 %v305_v6, %v305_v6 }
  0x8a   :  { %v104_v17 = vmul.f32 %v311_v9, %v311_v9  ;;  %v105_v22 = vmul.f32 %v315_v13, %v315_v13 }
  0x8b   :  { %v112_v11 = vadd.f32 %v101_v8, %v100_v7 }
  0x8c   :  { %v78_v12 = vpop.xlane.xlu0 %77 }
  0x8d   :  { %v87_v14 = vmul.f32 %v85_v0, %v78_v12  ;;  %v113_v16 = vadd.f32 %v112_v11, %v102_v10 }
  0x8f   :  { %v114_v18 = vadd.f32 %v113_v16, %v103_v15  ;;  %v321_v19 = vsub.f32 %v59_v41, %v87_v14  ;;  %v323_v20 = vsub.f32 %v60_v42, %v87_v14  ;;  %v325_v21 = vsub.f32 %v61_v43, %v87_v14 }
  0x90   :  { %v329_v24 = vsub.f32 %v62_v46, %v87_v14  ;;  %v335_v28 = vsub.f32 %v63_v51, %v87_v14  ;;  %v339_v31 = vsub.f32 %v64_v55, %v87_v14  ;;  %v166_v55 = vperm.slane %v350_v48, 2 }
  0x91   :  { %v115_v23 = vadd.f32 %v114_v18, %v104_v17  ;;  %v106_v25 = vmul.f32 %v321_v19, %v321_v19  ;;  %v107_v26 = vmul.f32 %v323_v20, %v323_v20  ;;  %v108_v29 = vmul.f32 %v325_v21, %v325_v21 }
  0x92   :  { %v109_v32 = vmul.f32 %v329_v24, %v329_v24  ;;  %v110_v34 = vmul.f32 %v335_v28, %v335_v28  ;;  %v111_v36 = vmul.f32 %v339_v31, %v339_v31  ;;  %v195_v14 = vperm.slane %v355_v50, 5 }
  0x93   :  { %v116_v27 = vadd.f32 %v115_v23, %v105_v22  ;;  %v119_v30 = vadd.f32 %v107_v26, %v106_v25 }
  0x95   :  { %117 = vadd.xlane.f32.xlu1 %v116_v27  ;;  %v120_v33 = vadd.f32 %v119_v30, %v108_v29 }
  0x97   :  { %v121_v35 = vadd.f32 %v120_v33, %v109_v32 }
  0x99   :  { %v122_v37 = vadd.f32 %v121_v35, %v110_v34 }
  0x9b   :  { %v123_v38 = vadd.f32 %v122_v37, %v111_v36 }
  0x9d   :  { %124 = vadd.xlane.f32.xlu1 %v123_v38 }
 0x108   :  { %v118_v39 = vpop.xlane.xlu1 %117 }
 0x109   :  { %v126_v40 = vmul.f32 %v118_v39, %v85_v0 }
 0x10b   :  { %v128_v41 = vadd.f32 1e-12, %v126_v40 }
 0x10d   :  { %233 = vrsqrt.f32 %v128_v41  ;;  %vm136_vm2 = vweird.f32 %v128_v41 }
 0x110   :  { %v125_v42 = vpop.xlane.xlu1 %124 }
 0x111   :  { %v127_v43 = vmul.f32 %v125_v42, %v85_v0  ;;  %v193_v0 = vperm.slane %v355_v50, 3 }
 0x113   :  { %v234_v44 = vpop.eup %233  ;;  %v129_v45 = vadd.f32 1e-12, %v127_v43 }
 0x114   :  { %v131_v46 = vmul.f32 %v234_v44, %v128_v41  ;;  %vm137_vm1 = vweird.f32 %v234_v44 }
 0x115   :  { %235 = vrsqrt.f32 %v129_v45  ;;  %vm138_vm3 = vmor %vm136_vm2, %vm137_vm1  ;;  %vm146_vm5 = vweird.f32 %v129_v45 }
 0x116   :  { %v132_v47 = vmul.f32 %v234_v44, %v131_v46 }
 0x118   :  { %v133_v49 = vmul.f32 0.5, %v132_v47 }
 0x11a   :  { %v134_v51 = vsub.f32 1.5, %v133_v49 }
 0x11b   :  { %v236_v52 = vpop.eup %235 }
 0x11c   :  { %v135_v58 = vmul.f32 %v234_v44, %v134_v51  ;;  %v141_v59 = vmul.f32 %v236_v52, %v129_v45  ;;  %vm147_vm4 = vweird.f32 %v236_v52 }
 0x11d   :  { %vm148_vm6 = vmor %vm146_vm5, %vm147_vm4 }
 0x11e   :  { %v139_v2 = vsel %vm138_vm3, %v234_v44, %v135_v58  ;;  %v142_v7 = vmul.f32 %v236_v52, %v141_v59 }
 0x11f   :  { %v150_v8 = vmul.f32 %v139_v2, %v299_v3  ;;  %v151_v10 = vmul.f32 %v139_v2, %v301_v4  ;;  %v152_v11 = vmul.f32 %v139_v2, %v303_v5  ;;  %v153_v12 = vmul.f32 %v139_v2, %v305_v6 }
 0x120   :  { %v154_v15 = vmul.f32 %v139_v2, %v311_v9  ;;  %v155_v16 = vmul.f32 %v139_v2, %v315_v13  ;;  %v143_v17 = vmul.f32 0.5, %v142_v7 }
 0x121   :  { %v176_v18 = vmul.f32 %v164_v53, %v150_v8  ;;  %v177_v22 = vmul.f32 %v165_v54, %v151_v10  ;;  %v178_v23 = vmul.f32 %v166_v55, %v152_v11  ;;  %v179_v25 = vmul.f32 %v167_v56, %v153_v12 }
 0x122   :  { %v180_v26 = vmul.f32 %v168_v57, %v154_v15  ;;  %v181_v27 = vmul.f32 %v169_v60, %v155_v16  ;;  %v144_v3 = vsub.f32 1.5, %v143_v17 }
 0x123   :  { %v202_v4 = vadd.f32 %v190_v61, %v176_v18  ;;  %v203_v29 = vadd.f32 %v191_v62, %v177_v22  ;;  %v204_v5 = vadd.f32 %v192_v63, %v178_v23  ;;  %v205_v30 = vadd.f32 %v193_v0, %v179_v25 }
 0x124   :  { %v206_v6 = vadd.f32 %v194_v1, %v180_v26  ;;  %v207_v32 = vadd.f32 %v195_v14, %v181_v27  ;;  %v145_v33 = vmul.f32 %v236_v52, %v144_v3 }
 0x125   :  { %v214_v9 = vpack.c.bf16 %v203_v29, %v202_v4  ;;  %v215_v34 = vpack.c.bf16 %v205_v30, %v204_v5 }
 0x126   :  { %v216_v13 = vpack.c.bf16 %v207_v32, %v206_v6  ;;  %v149_v35 = vsel %vm148_vm6, %v236_v52, %v145_v33 }
 0x127   :  { %220 = vst [vmem:[%s403_s4] sm:$0xff] %v214_v9  ;;  %v156_v36 = vmul.f32 %v149_v35, %v321_v19  ;;  %v157_v37 = vmul.f32 %v149_v35, %v323_v20  ;;  %v158_v38 = vmul.f32 %v149_v35, %v325_v21  ;;  %v159_v39 = vmul.f32 %v149_v35, %v329_v24 }
 0x128   :  { %221 = vst [vmem:[%s403_s4 + $0x8] sm:$0xff] %v215_v34  ;;  %v160_v40 = vmul.f32 %v149_v35, %v335_v28  ;;  %v161_v41 = vmul.f32 %v149_v35, %v339_v31 }
 0x129   :  { %222 = vst [vmem:[%s403_s4 + $0x10] sm:$0xff] %v216_v13  ;;  %v182_v42 = vmul.f32 %v164_v53, %v156_v36  ;;  %v183_v19 = vmul.f32 %v165_v54, %v157_v37  ;;  %v184_v43 = vmul.f32 %v166_v55, %v158_v38  ;;  %v185_v20 = vmul.f32 %v167_v56, %v159_v39 }
 0x12a   :  { %v186_v44 = vmul.f32 %v168_v57, %v160_v40  ;;  %v187_v21 = vmul.f32 %v169_v60, %v161_v41 }
 0x12b   :  { %v208_v45 = vadd.f32 %v190_v61, %v182_v42  ;;  %v209_v24 = vadd.f32 %v191_v62, %v183_v19  ;;  %v210_v46 = vadd.f32 %v192_v63, %v184_v43  ;;  %v211_v47 = vadd.f32 %v193_v0, %v185_v20 }
 0x12c   :  { %v212_v48 = vadd.f32 %v194_v1, %v186_v44  ;;  %v213_v49 = vadd.f32 %v195_v14, %v187_v21 }
 0x12d   :  { %v217_v50 = vpack.c.bf16 %v209_v24, %v208_v45  ;;  %v218_v28 = vpack.c.bf16 %v211_v47, %v210_v46 }
 0x12e   :  { %v219_v51 = vpack.c.bf16 %v213_v49, %v212_v48 }
 0x12f   :  { %223 = vst [vmem:[%s403_s4 + $0x18] sm:$0xff] %v217_v50 }
 0x130   :  { %224 = vst [vmem:[%s403_s4 + $0x20] sm:$0xff] %v218_v28 }
 0x131   :  { %225 = vst [vmem:[%s403_s4 + $0x28] sm:$0xff] %v219_v51 }

// kernel: base_model_forward.92
= control target key start
LH: loop header
LB: loop body
LE: loop exit
PB: predicated region body
PF: predicated region fallthrough
CT: control target
= control target key end

     0   :  { %s1490_s0 = inlined_call_operand.vmem [shape: bf16[16,3072], index: 0, kind: input, shape index: {}]   ;;  %s1491_s1 = inlined_call_operand.hbm [shape: bf16[3072,768], index: 1, kind: input, shape index: {}]   ;;  %s1492_s2 = inlined_call_operand.vmem [shape: f32[1,768], index: 2, kind: input, shape index: {}]   ;;  %s1493_s3 = inlined_call_operand.vmem [shape: bf16[16,768], index: 3, kind: output, shape index: {}]  }
   0x1   :  { %1498 = sst [smem:[#allocation15_spill]] %s1490_s0 }
   0x2   :  { %8 = vsyncpa [#allocation5], 0 }
   0x3   :  { %10 = vsyncpa [#allocation5 + $0x1], 0  ;;  %s1218_s12 = smov 0   ;;  %s1220_s13 = smov 0  }
   0x4   :  { %s1222_s14 = smov 0   ;;  %s1224_s15 = smov 0  }
   0x5   :  { %s1226_s16 = smov 0   ;;  %s1228_s17 = smov 0  }
   0x6   :  { %s1230_s18 = smov 0   ;;  %s1232_s19 = smov 0  }
   0x7   :  { %s1234_s20 = smov 0   ;;  %s1236_s21 = smov 0  }
   0x8   :  { %s1238_s22 = smov 0   ;;  %s1240_s23 = smov 0  }
   0x9 LB: > { %1499 = sst [smem:[#allocation8_spill]] %s1152_s13  ;;  %s767_s24 = sadd.s32 4294967295, %s1192_s23   ;;  %s1192_s23 = sphi %s1240_s23, %s16_s23   ;;  %s1188_s22 = sphi %s1238_s22, %s1524_s22   ;;  %s1184_s21 = sphi %s1236_s21, %s1523_s21   ;;  %s1180_s20 = sphi %s1234_s20, %s1522_s20   ;;  %s1176_s19 = sphi %s1232_s19, %s1521_s19   ;;  %s1172_s18 = sphi %s1230_s18, %s1515_s18   ;;  %s1168_s17 = sphi %s1228_s17, %s1514_s17   ;;  %s1164_s16 = sphi %s1226_s16, %s1520_s16   ;;  %s1160_s15 = sphi %s1224_s15, %s1519_s15   ;;  %s1156_s14 = sphi %s1222_s14, %s1518_s14   ;;  %s1152_s13 = sphi %s1220_s13, %s1512_s13   ;;  %s1148_s12 = sphi %s1218_s12, %s1511_s12  }
   0xa   : > { %1500 = sst [smem:[#allocation9_spill]] %s1172_s18  ;;  %s28_s25 = sadd.s32 1, %s1184_s21 }
   0xb   : > { %p29_p0 = scmp.ge.s32.totalorder %s28_s25, 12  ;;  %s31_s26 = sadd.s32 1, %s1188_s22 }
   0xc   : > { %s44_s27 = sadd.s32 1, %s1172_s18  ;;  %p51_p1 = scmp.ne.s32.totalorder %s1172_s18, %s1168_s17 }
   0xd   : > { %s1526_s25 = smov (%p29_p0, %s28_s25), 0  ;;  %s1528_s26 = smov (!%p29_p0, %s31_s26), %s1188_s22 }
   0xe   : > { %1501 = sst [smem:[#allocation10_spill]] %s1526_s25  ;;  %s40_s28 = ssub.s32 %s1184_s21, %s1526_s25 }
   0xf   : > { %p52_p2 = scmp.eq.s32.totalorder %s1192_s23, 0  ;;  %p33_p3 = scmp.ge.s32.totalorder %s1528_s26, 3 }
  0x10   : > { %p42_p4 = scmp.eq.s32.totalorder %s40_s28, 0  ;;  %s72_s30 = sadd.s32 1, %s1164_s16 }
  0x11   : > { %p1290_p5 = por %p52_p2, %p51_p1  ;;  %s1530_s26 = smov (%p33_p3, %s1528_s26), 0 }
  0x12   : > { %1503 = sst [smem:[#allocation11_spill]] %s1530_s26  ;;  %s68_s5 = ssub.s32 %s1188_s22, %s1530_s26 }
  0x13   : > { %s1298_s4 = scalar_select %p42_p4, %s1172_s18, %s44_s27  }
  0x14   : > { %p79_p6 = scmp.ne.s32.totalorder %s1164_s16, %s1160_s15  ;;  %s69_s6 = sor.u32 %s68_s5, %s40_s28 }
  0x15   : > { %1504 = sst [smem:[#allocation12_spill]] %s1298_s4  ;;  %p85_p7 = scmp.ne.s32.totalorder %s1160_s15, %s1156_s14 }
  0x16   : > { %p70_p8 = scmp.eq.s32.totalorder %s69_s6, 0  ;;  %p1306_p9 = por %p79_p6, %p52_p2 }
  0x17   : > { %p86_p10 = scmp.eq.s32.totalorder %s767_s24, 0  ;;  %p124_p11 = scmp.eq.s32.totalorder %s68_s5, 0 }
  0x18   : > { %s1313_s8 = scalar_select %p70_p8, %s1164_s16, %s72_s30  }
  0x19   : > { %p1315_p12 = por %p86_p10, %p85_p7  ;;  %s126_s10 = sadd.s32 1, %s1152_s13 }
  0x1a   : > { %1506 = sst [smem:[#allocation13_spill]] %s1313_s8  ;;  %p136_p13 = scmp.ne.s32.totalorder %s1152_s13, %s1148_s12 }
  0x1b   : > { %s1321_s11 = scalar_select %p124_p11, %s1152_s13, %s126_s10  }
  0x1c   : > { %p137_p0 = scmp.eq.s32.totalorder %s767_s24, 35  ;;  %p770_p2 = scmp.ge.s32.totalorder %s1192_s23, 36 }
  0x1d   : > { %1508 = sst [smem:[#allocation14_spill]] %s1321_s11 }
  0x1e   : > { %p1327_p1 = por %p137_p0, %p136_p13  ;;  %159 = sbr.rel (%p770_p2) target bundleno = 55 (0x37), region = 16 }
  0x23   : > { %162 = sbr.rel (!%p1290_p5) target bundleno = 47 (0x2f), region = 20  ;;  %s164_s27 = sand.u32 (%p1290_p5), 1, %s1172_s18  }
  0x24   : > { %s927_s28 = sshll.u32 (%p1290_p5), %s1184_s21, 3  ;;  %s771_s30 = sshll.u32 (%p1290_p5), %s164_s27, 4 }
  0x25   : > { %s1510_s0 = sld [smem:[#allocation15_spill]] (%p1290_p5)  ;;  %s166_s24 = scalar_lea.vmem (%p1290_p5), [#allocation3], %s771_s30 }
  0x2b   : > { %s172_s10 = scalar_lea.vmem %s1510_s0, %s927_s28 }
  0x2c   : > { %v203_v0 = vld [vmem:[%s172_s10] sm:$0xff] }
  0x2d   : > { %v205_v1 = vld [vmem:[%s172_s10 + $0x60] sm:$0xff]  ;;  %204 = vst [vmem:[%s166_s24] sm:$0xff] %v203_v0 }
  0x2e   : > { %206 = vst [vmem:[%s166_s24 + $0x8] sm:$0xff] %v205_v1 }
  0x2f PF: > { %s213_s29 = sand.u32 1, %s1164_s16   ;;  %s776_s26 = sshll.u32 %s1188_s22, 1 }
  0x30   : > { %s774_s25 = sshll.u32 %s213_s29, 8  ;;  %s963_s4 = smul.u32 192, %s1184_s21 }
  0x31   : > { %s217_s18 = scalar_lea.vmem [#allocation4], %s774_s25  ;;  %s214_s24 = scalar_lea.sflag [#allocation5], %s213_s29 }
  0x32   : > { %s228_s27 = sshll.u32 %s217_s18, 4  ;;  %s223_s8 = sadd.s32 %s963_s4, %s776_s26  ;;  %s229_s27 = int_to_ptr.vmem [resolvable:$true] %s228_s27 }
  0x33   : > { %s778_s5 = sshll.u32 %s223_s8, 2  ;;  %s1194_s0 = smov 384  }
  0x34   : > { %s225_s30 = scalar_lea.hbm %s1491_s1, %s778_s5  ;;  %s1195_s11 = smov 128  }
  0x35   : > { %s226_s10 = sshll.u32 %s225_s30, 4  ;;  %s1196_s13 = smov 8   ;;  %s227_s10 = int_to_ptr.hbm [resolvable:$true] %s226_s10 }
  0x36   : > { %964 = dma.hbm_to_vmem [thread:$0]  (%p1306_p9), %s227_s10, 4096, %s229_s27, %s214_s24, %s1194_s0, %s1195_s11, %s1196_s13  }
  0x37 PF: > { %p779_p3 = scmp.ge.s32.totalorder %s1192_s23, 1  ;;  %p244_p4 = scmp.lt.s32.totalorder %s1192_s23, 37 }
  0x39   : > { %p245_p5 = pnand %p779_p3, %p244_p4 }
  0x3a   : > { %s251_s18 = sand.u32 (!%p245_p5), 1, %s1168_s17   ;;  %s257_s25 = sand.u32 (!%p245_p5), 1, %s1160_s15  }
  0x3b   : > { %248 = sbr.rel (%p245_p5) target bundleno = 280 (0x118), region = 66  ;;  %s780_s26 = sshll.u32 (!%p245_p5), %s251_s18, 4 }
  0x3c   : > { %s781_s4 = sshll.u32 (!%p245_p5), %s257_s25, 8  ;;  %s1351_s8 = scalar_lea.vmem (!%p245_p5), [#allocation3], %s780_s26 }
  0x3d   : > { %s258_s29 = scalar_lea.sflag (!%p245_p5), [#allocation5], %s257_s25  ;;  %s1353_s5 = scalar_lea.vmem (!%p245_p5), [#allocation4], %s781_s4 }
  0x40   : > { %1143 = dma.done.wait (%p1315_p12), %s258_s29, 4096  }
  0x41   : > { %1145 = vsyncadd (%p1315_p12), %s258_s29, 4294963200  ;;  %s289_s0 = sand.u32 1, %s1148_s12   ;;  %s783_s13 = sshll.u32 %s1180_s20, 1 }
  0x42   : > { %s782_s7 = sshll.u32 %s289_s0, 4  ;;  %p297_p6 = scmp.lt.s32.totalorder %s783_s13, 5 }
  0x43   : > { %s1367_s28 = scalar_lea.vmem [#allocation6], %s782_s7  ;;  %p784_p7 = scmp.ne.s32.totalorder %s1176_s19, 0 }
  0x44   : > { %s1532_s13 = smov (!%p297_p6, %s783_s13), 5 }
  0x45   : > { %s299_s27 = scalar_lea.vmem %s1492_s2, %s1532_s13  ;;  %306 = sbr.rel (%p784_p7) target bundleno = 79 (0x4f), region = 78 }
  0x4a   : > { %v1197_v2 = vmov 0.0  }
  0x4b   : > { %307 = vst [vmem:[#allocation2 + $0x10] sm:$0xff] %v1197_v2 }
  0x4c   : > { %308 = vst [vmem:[#allocation2] sm:$0xff] %v1197_v2 }
  0x4d   : > { %309 = vst [vmem:[#allocation2 + $0x18] sm:$0xff] %v1197_v2 }
  0x4e   : > { %310 = vst [vmem:[#allocation2 + $0x8] sm:$0xff] %v1197_v2 }
  0x4f PF: > { %v851_v3 = vld [vmem:[%s1353_s5 + $0x70] sm:$0xf]  ;;  %v945_v4 = vld [vmem:[%s1353_s5 + $0x74] sm:$0xf0]  ;;  %v944_v8 = vld [vmem:[%s1353_s5 + $0x74] sm:$0xf] }
  0x50   : > { %v915_v5 = vld [vmem:[%s1353_s5 + $0xf0] sm:$0xf]  ;;  %v852_v6 = vor.u32 %v945_v4, %v851_v3  ;;  %v961_v7 = vld [vmem:[%s1353_s5 + $0xf4] sm:$0xf0]  ;;  %v853_v9 = vld [vmem:[%s1353_s5 + $0x78] sm:$0xf0] }
  0x51   : > { %v916_v10 = vor.u32 %v961_v7, %v915_v5  ;;  %v856_v11 = vor.u32 %v944_v8, %v853_v9  ;;  %v960_v12 = vld [vmem:[%s1353_s5 + $0xf4] sm:$0xf]  ;;  %v917_v13 = vld [vmem:[%s1353_s5 + $0xf8] sm:$0xf0]  ;;  %v843_v14 = vld [vmem:[%s1353_s5 + $0x60] sm:$0xf] }
  0x52   : > { %519 = vmatpush.bf16.msra.mxu0 %v852_v6  ;;  %v920_v15 = vor.u32 %v960_v12, %v917_v13  ;;  %v943_v16 = vld [vmem:[%s1353_s5 + $0x64] sm:$0xf0]  ;;  %v907_v17 = vld [vmem:[%s1353_s5 + $0xe0] sm:$0xf]  ;;  %v942_v21 = vld [vmem:[%s1353_s5 + $0x64] sm:$0xf] }
  0x53   : > { %v959_v18 = vld [vmem:[%s1353_s5 + $0xe4] sm:$0xf0]  ;;  %533 = vmatpush.bf16.msra.mxu1 %v916_v10  ;;  %547 = vmatpush.bf16.msra.mxu2 %v856_v11  ;;  %v844_v19 = vor.u32 %v943_v16, %v843_v14  ;;  %v845_v22 = vld [vmem:[%s1353_s5 + $0x68] sm:$0xf0]  ;;  %v958_v23 = vld [vmem:[%s1353_s5 + $0xe4] sm:$0xf] }
  0x54   : > { %v908_v20 = vor.u32 %v959_v18, %v907_v17  ;;  %561 = vmatpush.bf16.msra.mxu3 %v920_v15  ;;  %v848_v24 = vor.u32 %v942_v21, %v845_v22  ;;  %v909_v25 = vld [vmem:[%s1353_s5 + $0xe8] sm:$0xf0]  ;;  %v835_v26 = vld [vmem:[%s1353_s5 + $0x50] sm:$0xf]  ;;  %v941_v27 = vld [vmem:[%s1353_s5 + $0x54] sm:$0xf0] }
  0x55   : > { %v912_v28 = vor.u32 %v958_v23, %v909_v25  ;;  %v899_v29 = vld [vmem:[%s1353_s5 + $0xd0] sm:$0xf]  ;;  %v957_v30 = vld [vmem:[%s1353_s5 + $0xd4] sm:$0xf0]  ;;  %v940_v31 = vld [vmem:[%s1353_s5 + $0x54] sm:$0xf]  ;;  %v836_v32 = vor.u32 %v941_v27, %v835_v26 }
  0x56   : > { %520 = vmatpush.bf16.msra.mxu0 %v844_v19  ;;  %v837_v33 = vld [vmem:[%s1353_s5 + $0x58] sm:$0xf0]  ;;  %v956_v34 = vld [vmem:[%s1353_s5 + $0xd4] sm:$0xf]  ;;  %v900_v36 = vor.u32 %v957_v30, %v899_v29  ;;  %v827_v38 = vld [vmem:[%s1353_s5 + $0x40] sm:$0xf] }
  0x57   : > { %v901_v35 = vld [vmem:[%s1353_s5 + $0xd8] sm:$0xf0]  ;;  %534 = vmatpush.bf16.msra.mxu1 %v908_v20  ;;  %548 = vmatpush.bf16.msra.mxu2 %v848_v24  ;;  %v840_v37 = vor.u32 %v940_v31, %v837_v33  ;;  %v939_v39 = vld [vmem:[%s1353_s5 + $0x44] sm:$0xf0]  ;;  %v891_v40 = vld [vmem:[%s1353_s5 + $0xc0] sm:$0xf] }
  0x58   : > { %562 = vmatpush.bf16.msra.mxu3 %v912_v28  ;;  %v904_v41 = vor.u32 %v956_v34, %v901_v35  ;;  %v955_v42 = vld [vmem:[%s1353_s5 + $0xc4] sm:$0xf0]  ;;  %v938_v43 = vld [vmem:[%s1353_s5 + $0x44] sm:$0xf]  ;;  %v829_v44 = vld [vmem:[%s1353_s5 + $0x48] sm:$0xf0]  ;;  %v828_v47 = vor.u32 %v939_v39, %v827_v38 }
  0x59   : > { %v954_v45 = vld [vmem:[%s1353_s5 + $0xc4] sm:$0xf]  ;;  %v893_v46 = vld [vmem:[%s1353_s5 + $0xc8] sm:$0xf0]  ;;  %v892_v48 = vor.u32 %v955_v42, %v891_v40  ;;  %v832_v49 = vor.u32 %v938_v43, %v829_v44  ;;  %v819_v50 = vld [vmem:[%s1353_s5 + $0x30] sm:$0xf] }
  0x5a   : > { %521 = vmatpush.bf16.msra.mxu0 %v836_v32  ;;  %v937_v51 = vld [vmem:[%s1353_s5 + $0x34] sm:$0xf0]  ;;  %v883_v52 = vld [vmem:[%s1353_s5 + $0xb0] sm:$0xf]  ;;  %v896_v53 = vor.u32 %v954_v45, %v893_v46  ;;  %v936_v55 = vld [vmem:[%s1353_s5 + $0x34] sm:$0xf] }
  0x5b   : > { %535 = vmatpush.bf16.msra.mxu1 %v900_v36  ;;  %549 = vmatpush.bf16.msra.mxu2 %v840_v37  ;;  %v953_v54 = vld [vmem:[%s1353_s5 + $0xb4] sm:$0xf0]  ;;  %v821_v56 = vld [vmem:[%s1353_s5 + $0x38] sm:$0xf0]  ;;  %v952_v57 = vld [vmem:[%s1353_s5 + $0xb4] sm:$0xf]  ;;  %v820_v59 = vor.u32 %v937_v51, %v819_v50 }
  0x5c   : > { %563 = vmatpush.bf16.msra.mxu3 %v904_v41  ;;  %v885_v58 = vld [vmem:[%s1353_s5 + $0xb8] sm:$0xf0]  ;;  %v884_v60 = vor.u32 %v953_v54, %v883_v52  ;;  %v824_v61 = vor.u32 %v936_v55, %v821_v56  ;;  %v811_v62 = vld [vmem:[%s1353_s5 + $0x20] sm:$0xf]  ;;  %v935_v63 = vld [vmem:[%s1353_s5 + $0x24] sm:$0xf0] }
  0x5d   : > { %v875_v0 = vld [vmem:[%s1353_s5 + $0xa0] sm:$0xf]  ;;  %v888_v1 = vor.u32 %v952_v57, %v885_v58  ;;  %v951_v2 = vld [vmem:[%s1353_s5 + $0xa4] sm:$0xf0]  ;;  %v934_v3 = vld [vmem:[%s1353_s5 + $0x24] sm:$0xf]  ;;  %v812_v7 = vor.u32 %v935_v63, %v811_v62 }
  0x5e   : > { %522 = vmatpush.bf16.msra.mxu0 %v828_v47  ;;  %v813_v4 = vld [vmem:[%s1353_s5 + $0x28] sm:$0xf0]  ;;  %v950_v5 = vld [vmem:[%s1353_s5 + $0xa4] sm:$0xf]  ;;  %v876_v8 = vor.u32 %v951_v2, %v875_v0  ;;  %v803_v10 = vld [vmem:[%s1353_s5 + $0x10] sm:$0xf] }
  0x5f   : > { %536 = vmatpush.bf16.msra.mxu1 %v892_v48  ;;  %550 = vmatpush.bf16.msra.mxu2 %v832_v49  ;;  %v877_v6 = vld [vmem:[%s1353_s5 + $0xa8] sm:$0xf0]  ;;  %v816_v9 = vor.u32 %v934_v3, %v813_v4  ;;  %v933_v11 = vld [vmem:[%s1353_s5 + $0x14] sm:$0xf0]  ;;  %v867_v12 = vld [vmem:[%s1353_s5 + $0x90] sm:$0xf] }
  0x60   : > { %564 = vmatpush.bf16.msra.mxu3 %v896_v53  ;;  %v880_v13 = vor.u32 %v950_v5, %v877_v6  ;;  %v949_v14 = vld [vmem:[%s1353_s5 + $0x94] sm:$0xf0]  ;;  %v932_v15 = vld [vmem:[%s1353_s5 + $0x14] sm:$0xf]  ;;  %v805_v16 = vld [vmem:[%s1353_s5 + $0x18] sm:$0xf0]  ;;  %v804_v19 = vor.u32 %v933_v11, %v803_v10 }
  0x61   : > { %v948_v17 = vld [vmem:[%s1353_s5 + $0x94] sm:$0xf]  ;;  %v869_v18 = vld [vmem:[%s1353_s5 + $0x98] sm:$0xf0]  ;;  %v868_v20 = vor.u32 %v949_v14, %v867_v12  ;;  %v808_v21 = vor.u32 %v932_v15, %v805_v16  ;;  %v795_v22 = vld [vmem:[%s1353_s5] sm:$0xf] }
  0x62   : > { %523 = vmatpush.bf16.msra.mxu0 %v820_v59  ;;  %v931_v23 = vld [vmem:[%s1353_s5 + $0x4] sm:$0xf0]  ;;  %v859_v24 = vld [vmem:[%s1353_s5 + $0x80] sm:$0xf]  ;;  %v872_v25 = vor.u32 %v948_v17, %v869_v18  ;;  %v930_v27 = vld [vmem:[%s1353_s5 + $0x4] sm:$0xf] }
  0x63   : > { %537 = vmatpush.bf16.msra.mxu1 %v884_v60  ;;  %551 = vmatpush.bf16.msra.mxu2 %v824_v61  ;;  %v947_v26 = vld [vmem:[%s1353_s5 + $0x84] sm:$0xf0]  ;;  %v797_v28 = vld [vmem:[%s1353_s5 + $0x8] sm:$0xf0]  ;;  %v946_v29 = vld [vmem:[%s1353_s5 + $0x84] sm:$0xf]  ;;  %v796_v31 = vor.u32 %v931_v23, %v795_v22 }
  0x64   : > { %565 = vmatpush.bf16.msra.mxu3 %v888_v1  ;;  %v861_v30 = vld [vmem:[%s1353_s5 + $0x88] sm:$0xf0]  ;;  %v787_v32 = vld [vmem:[%s1351_s8] sm:$0xf]  ;;  %v929_v33 = vld [vmem:[%s1351_s8 + $0x4] sm:$0xf0]  ;;  %v860_v34 = vor.u32 %v947_v26, %v859_v24  ;;  %v800_v35 = vor.u32 %v930_v27, %v797_v28 }
  0x65   : > { %v928_v36 = vld [vmem:[%s1351_s8 + $0x4] sm:$0xf]  ;;  %v789_v37 = vld [vmem:[%s1351_s8 + $0x8] sm:$0xf0]  ;;  %v864_v38 = vor.u32 %v946_v29, %v861_v30  ;;  %v788_v39 = vor.u32 %v929_v33, %v787_v32  ;;  %p921_p8 = scmp.ne.s32.totalorder %s1176_s19, 11 }
  0x66   : > { %524 = vmatpush.bf16.msra.mxu0 %v812_v7  ;;  %v792_v40 = vor.u32 %v928_v36, %v789_v37  ;;  %v311_v42 = vld [vmem:[#allocation2 + $0x10] sm:$0xff]  ;;  %v312_v47 = vld [vmem:[#allocation2] sm:$0xff]  ;;  %v313_v51 = vld [vmem:[#allocation2 + $0x18] sm:$0xff] }
  0x67   : > { %538 = vmatpush.bf16.msra.mxu1 %v876_v8  ;;  %552 = vmatpush.bf16.msra.mxu2 %v816_v9  ;;  %v314_v57 = vld [vmem:[#allocation2 + $0x8] sm:$0xff] }
  0x68   : > { %566 = vmatpush.bf16.msra.mxu3 %v880_v13 }
  0x6a   : > { %525 = vmatpush.bf16.msra.mxu0 %v804_v19 }
  0x6b   : > { %539 = vmatpush.bf16.msra.mxu1 %v868_v20  ;;  %553 = vmatpush.bf16.msra.mxu2 %v808_v21 }
  0x6c   : > { %567 = vmatpush.bf16.msra.mxu3 %v872_v25 }
  0x6e   : > { %526 = vmatpush.bf16.msra.mxu0 %v796_v31 }
  0x6f   : > { %540 = vmatpush.bf16.msra.mxu1 %v860_v34  ;;  %554 = vmatpush.bf16.msra.mxu2 %v800_v35 }
  0x70   : > { %568 = vmatpush.bf16.msra.mxu3 %v864_v38 }
  0x71   : > { %527 = vmatmul.bf16.vlgmr.msra.gmra.mxu0 %v788_v39 }
  0x72   : > { %541 = vmatmul.bf16.vlgmr.msra.gmra.mxu1 %v792_v40  ;;  %555 = vmatmul.bf16.vlgmr.msra.gmra.mxu2 %v788_v39 }
  0x73   : > { %569 = vmatmul.bf16.vlgmr.msra.gmra.mxu3 %v792_v40 }
  0xee   : > { %v528_v41 = vpop.f32.mrf.mxu0 }
  0xef   : > { %v542_v43 = vpop.f32.mrf.mxu1 }
  0xf0   : > { %v543_v44 = vadd.f32 %v542_v43, %v528_v41 }
  0xf2   : > { %v575_v45 = vadd.f32 %v543_v44, %v311_v42 }
  0xf4   : > { %579 = vst [vmem:[#allocation2 + $0x10] sm:$0xff] %v575_v45 }
  0xf5   : > { %v556_v46 = vpop.f32.mrf.mxu2 }
  0xf6   : > { %v570_v48 = vpop.f32.mrf.mxu3  ;;  %v530_v49 = vpop.f32.mrf.mxu0 }
  0xf7   : > { %v571_v50 = vadd.f32 %v570_v48, %v556_v46  ;;  %v544_v52 = vpop.f32.mrf.mxu1 }
  0xf8   : > { %v545_v53 = vadd.f32 %v544_v52, %v530_v49 }
  0xf9   : > { %v576_v54 = vadd.f32 %v571_v50, %v312_v47 }
  0xfa   : > { %v577_v55 = vadd.f32 %v545_v53, %v313_v51 }
  0xfb   : > { %580 = vst [vmem:[#allocation2] sm:$0xff] %v576_v54 }
  0xfc   : > { %581 = vst [vmem:[#allocation2 + $0x18] sm:$0xff] %v577_v55 }
  0xfd   : > { %v558_v56 = vpop.f32.mrf.mxu2 }
  0xfe   : > { %v572_v58 = vpop.f32.mrf.mxu3 }
  0xff   : > { %v573_v59 = vadd.f32 %v572_v58, %v558_v56  ;;  %586 = sbr.rel (%p921_p8) target bundleno = 272 (0x110), region = 82 }
 0x101   : > { %v578_v60 = vadd.f32 %v573_v59, %v314_v57 }
 0x103   : > { %582 = vst [vmem:[#allocation2 + $0x8] sm:$0xff] %v578_v60 }
 0x104   : > { %v587_v61 = vld [vmem:[#allocation2 + $0x10] sm:$0xff]  ;;  %v588_v62 = vld [vmem:[#allocation2] sm:$0xff]  ;;  %v589_v2 = vld [vmem:[#allocation2 + $0x18] sm:$0xff] }
 0x105   : > { %v591_v63 = vld [vmem:[%s299_s27] sm:$0x3] }
 0x106   : > { %v593_v0 = vperm.slane %v591_v63, 0  ;;  %v594_v1 = vperm.slane %v591_v63, 1 }
 0x108   : > { %v597_v4 = vadd.f32 %v593_v0, %v587_v61  ;;  %v598_v5 = vadd.f32 %v594_v1, %v588_v62  ;;  %v599_v6 = vadd.f32 %v593_v0, %v589_v2 }
 0x10a   : > { %v590_v3 = vld [vmem:[#allocation2 + $0x8] sm:$0xff]  ;;  %v601_v8 = vpack.c.bf16 %v598_v5, %v597_v4 }
 0x10b   : > { %v600_v7 = vadd.f32 %v594_v1, %v590_v3 }
 0x10c   : > { %603 = vst [vmem:[%s1367_s28] sm:$0xff] %v601_v8 }
 0x10d   : > { %v602_v9 = vpack.c.bf16 %v600_v7, %v599_v6 }
 0x10f   : > { %604 = vst [vmem:[%s1367_s28 + $0x8] sm:$0xff] %v602_v9 }
 0x110 PF: > { %611 = sbr.rel (!%p1327_p1) target bundleno = 280 (0x118), region = 86  ;;  %s962_s19 = sshll.u32 (%p1327_p1), %s1180_s20, 3 }
 0x111   : > { %s617_s10 = scalar_lea.vmem (%p1327_p1), %s1493_s3, %s962_s19 }
 0x113   : > { %v648_v10 = vld [vmem:[%s1367_s28] sm:$0xff] (%p1327_p1) }
 0x114   : > { %649 = vst [vmem:[%s617_s10] sm:$0xff] (%p1327_p1), %v648_v10 }
 0x116   : > { %v650_v11 = vld [vmem:[%s1367_s28 + $0x8] sm:$0xff] }
 0x117   : > { %651 = vst [vmem:[%s617_s10 + $0x18] sm:$0xff] %v650_v11 }
 0x118 PF: > { %s16_s23 = sadd.s32 1, %s1192_s23   ;;  %s1511_s12 = sld [smem:[#allocation8_spill]] }
 0x119   : > { %p13_p9 = scmp.ge.s32.totalorder %s16_s23, 38   ;;  %s1512_s13 = sld [smem:[#allocation14_spill]] }
 0x11a   : > { %s1513_s24 = sld [smem:[#allocation13_spill]]  ;;  %s1518_s14 = smov %s1160_s15 }
 0x11b   : > { %s1514_s17 = sld [smem:[#allocation9_spill]]  ;;  %s1519_s15 = smov %s1164_s16 }
 0x11c   : > { %s1515_s18 = sld [smem:[#allocation12_spill]]  ;;  %s1521_s19 = smov %s1184_s21 }
 0x11d   : > { %s1516_s25 = sld [smem:[#allocation10_spill]]  ;;  %s1522_s20 = smov %s1188_s22 }
 0x11e   : > { %s1517_s26 = sld [smem:[#allocation11_spill]] }
 0x120   : > { %s1520_s16 = smov %s1513_s24  ;;  %15 = sbr.rel (!%p13_p9) target bundleno = 9 (0x9), region = 167 }
 0x123   : > { %s1523_s21 = smov %s1516_s25 }
 0x124   : > { %s1524_s22 = smov %s1517_s26 }
 0x125   :  { %667 = vsyncpa [#allocation5], 1 }
 0x126   :  { %669 = vsyncpa [#allocation5 + $0x1], 1 }

// kernel: base_model_forward.91
= control target key start
LH: loop header
LB: loop body
LE: loop exit
PB: predicated region body
PF: predicated region fallthrough
CT: control target
= control target key end

     0   :  { %s1652_s0 = inlined_call_operand.vmem [shape: bf16[16,768], index: 0, kind: input, shape index: {}]   ;;  %s1653_s1 = inlined_call_operand.hbm [shape: bf16[768,3072], index: 1, kind: input, shape index: {}]   ;;  %s1654_s2 = inlined_call_operand.hbm [shape: f32[1,3072], index: 2, kind: input, shape index: {}]   ;;  %s1655_s3 = inlined_call_operand.vmem [shape: bf16[16,3072], index: 3, kind: output, shape index: {}]  }
   0x1   :  { %1663 = sst [smem:[#allocation22_spill]] %s1652_s0 }
   0x2   :  { %1664 = sst [smem:[#allocation23_spill]] %s1655_s3 }
   0x3   :  { %8 = vsyncpa [#allocation5], 0 }
   0x4   :  { %10 = vsyncpa [#allocation5 + $0x1], 0 }
   0x5   :  { %11 = vsyncpa [#allocation7], 0 }
   0x6   :  { %13 = vsyncpa [#allocation7 + $0x1], 0  ;;  %s1349_s12 = smov 0   ;;  %s1351_s13 = smov 0  }
   0x7   :  { %s1353_s14 = smov 0   ;;  %s1355_s15 = smov 0  }
   0x8   :  { %s1357_s16 = smov 0   ;;  %s1359_s17 = smov 0  }
   0x9   :  { %s1361_s18 = smov 0   ;;  %s1363_s19 = smov 0  }
   0xa   :  { %s1365_s20 = smov 0   ;;  %s1367_s21 = smov 0  }
   0xb   :  { %s1369_s22 = smov 0   ;;  %s1371_s23 = smov 0  }
   0xc   :  { %s1373_s24 = smov 0  }
   0xd LB: > { %1665 = sst [smem:[#allocation11_spill]] %s1295_s17  ;;  %s838_s25 = sadd.s32 4294967295, %s1323_s24   ;;  %s1323_s24 = sphi %s1373_s24, %s19_s24   ;;  %s1319_s23 = sphi %s1371_s23, %s1695_s23   ;;  %s1315_s22 = sphi %s1369_s22, %s1694_s22   ;;  %s1311_s21 = sphi %s1367_s21, %s1693_s21   ;;  %s1307_s20 = sphi %s1365_s20, %s1692_s20   ;;  %s1303_s19 = sphi %s1363_s19, %s1691_s19   ;;  %s1299_s18 = sphi %s1361_s18, %s1690_s18   ;;  %s1295_s17 = sphi %s1359_s17, %s1689_s17   ;;  %s1291_s16 = sphi %s1357_s16, %s1701_s16   ;;  %s1287_s15 = sphi %s1355_s15, %s1700_s15   ;;  %s1283_s14 = sphi %s1353_s14, %s1699_s14   ;;  %s1279_s13 = sphi %s1351_s13, %s1698_s13   ;;  %s1275_s12 = sphi %s1349_s12, %s1697_s12  }
   0xe   : > { %1666 = sst [smem:[#allocation12_spill]] %s1303_s19  ;;  %s31_s26 = sadd.s32 1, %s1315_s22 }
   0xf   : > { %1667 = sst [smem:[#allocation13_spill]] %s1311_s21  ;;  %p32_p0 = scmp.ge.s32.totalorder %s31_s26, 3 }
  0x10   : > { %1668 = sst [smem:[#allocation14_spill]] %s1315_s22  ;;  %s34_s27 = sadd.s32 1, %s1319_s23 }
  0x11   : > { %1669 = sst [smem:[#allocation15_spill]] %s1319_s23  ;;  %s47_s28 = sadd.s32 1, %s1303_s19 }
  0x12   : > { %p54_p1 = scmp.ne.s32.totalorder %s1303_s19, %s1299_s18  ;;  %s1703_s26 = smov (%p32_p0, %s31_s26), 0 }
  0x13   : > { %1670 = sst [smem:[#allocation16_spill]] %s1703_s26  ;;  %s1705_s27 = smov (!%p32_p0, %s34_s27), %s1319_s23 }
  0x14   : > { %s43_s29 = ssub.s32 %s1315_s22, %s1703_s26  ;;  %p55_p2 = scmp.eq.s32.totalorder %s1323_s24, 0 }
  0x15   : > { %p36_p3 = scmp.ge.s32.totalorder %s1705_s27, 12  ;;  %p45_p4 = scmp.eq.s32.totalorder %s43_s29, 0 }
  0x16   : > { %p1428_p5 = por %p55_p2, %p54_p1  ;;  %s75_s4 = sadd.s32 1, %s1295_s17 }
  0x17   : > { %s1707_s27 = smov (%p36_p3, %s1705_s27), 0  ;;  %p82_p6 = scmp.ne.s32.totalorder %s1295_s17, %s1291_s16 }
  0x18   : > { %1672 = sst [smem:[#allocation17_spill]] %s1707_s27  ;;  %s71_s6 = ssub.s32 %s1319_s23, %s1707_s27 }
  0x19   : > { %s1436_s5 = scalar_select %p45_p4, %s1303_s19, %s47_s28  }
  0x1a   : > { %s72_s7 = sor.u32 %s71_s6, %s43_s29  ;;  %p88_p7 = scmp.ne.s32.totalorder %s1291_s16, %s1287_s15 }
  0x1b   : > { %1673 = sst [smem:[#allocation18_spill]] %s1436_s5  ;;  %p73_p8 = scmp.eq.s32.totalorder %s72_s7, 0 }
  0x1c   : > { %p1446_p9 = por %p82_p6, %p55_p2  ;;  %p89_p10 = scmp.eq.s32.totalorder %s838_s25, 0 }
  0x1d   : > { %p99_p11 = scmp.eq.s32.totalorder %s71_s6, 0  ;;  %s101_s11 = sadd.s32 1, %s1283_s14 }
  0x1e   : > { %s1453_s9 = scalar_select %p73_p8, %s1295_s17, %s75_s4  }
  0x1f   : > { %p1455_p12 = por %p89_p10, %p88_p7  ;;  %p108_p13 = scmp.ne.s32.totalorder %s1283_s14, %s1279_s13 }
  0x20   : > { %1675 = sst [smem:[#allocation19_spill]] %s1453_s9  ;;  %p114_p0 = scmp.ne.s32.totalorder %s1279_s13, %s1275_s12 }
  0x21   : > { %s1461_s28 = scalar_select %p99_p11, %s1283_s14, %s101_s11  }
  0x22   : > { %p140_p1 = scmp.eq.s32.totalorder %s838_s25, 35  ;;  %p1471_p3 = por %p108_p13, %p55_p2 }
  0x23   : > { %1677 = sst [smem:[#allocation20_spill]] %s1461_s28  ;;  %p1475_p4 = por %p114_p0, %p89_p10 }
  0x24   : > { %p1479_p6 = por %p140_p1, %p108_p13  ;;  %p841_p7 = scmp.ge.s32.totalorder %s1323_s24, 36 }
  0x26   : > { %s1680_s4 = scalar_select %p1479_p6, 1, 0 }
  0x27   : > { %162 = sbr.rel (%p841_p7) target bundleno = 69 (0x45), region = 16 }
  0x28   : > { %1681 = sst [smem:[#allocation21_spill]] %s1680_s4 }
  0x2c   : > { %165 = sbr.rel (!%p1428_p5) target bundleno = 56 (0x38), region = 20  ;;  %s167_s12 = sand.u32 (%p1428_p5), 1, %s1303_s19  }
  0x2d   : > { %s1000_s25 = sshll.u32 (%p1428_p5), %s1315_s22, 3  ;;  %s842_s6 = sshll.u32 (%p1428_p5), %s167_s12, 4 }
  0x2e   : > { %s1682_s0 = sld [smem:[#allocation22_spill]] (%p1428_p5)  ;;  %s169_s26 = scalar_lea.vmem (%p1428_p5), [#allocation3], %s842_s6 }
  0x34   : > { %s175_s27 = scalar_lea.vmem %s1682_s0, %s1000_s25 }
  0x35   : > { %v206_v0 = vld [vmem:[%s175_s27] sm:$0xff]  ;;  %v208_v1 = vld [vmem:[%s175_s27 + $0x18] sm:$0xff] }
  0x36   : > { %207 = vst [vmem:[%s169_s26] sm:$0xff] %v206_v0 }
  0x37   : > { %209 = vst [vmem:[%s169_s26 + $0x8] sm:$0xff] %v208_v1 }
  0x38 PF: > { %s216_s30 = sand.u32 1, %s1295_s17   ;;  %s847_s5 = sshll.u32 %s1319_s23, 1 }
  0x39   : > { %s845_s19 = sshll.u32 %s216_s30, 8  ;;  %s1036_s9 = smul.u32 768, %s1315_s22 }
  0x3a   : > { %s220_s12 = scalar_lea.vmem [#allocation4], %s845_s19  ;;  %s241_s11 = sand.u32 1, %s1283_s14  }
  0x3b   : > { %s231_s28 = sshll.u32 %s220_s12, 4  ;;  %s226_s3 = sadd.s32 %s1036_s9, %s847_s5  ;;  %s232_s28 = int_to_ptr.vmem [resolvable:$true] %s231_s28 }
  0x3c   : > { %s849_s25 = sshll.u32 %s226_s3, 2  ;;  %s217_s0 = scalar_lea.sflag [#allocation5], %s216_s30 }
  0x3d   : > { %s228_s6 = scalar_lea.hbm %s1653_s1, %s849_s25  ;;  %s1325_s21 = smov 1536  }
  0x3e   : > { %s229_s26 = sshll.u32 %s228_s6, 4  ;;  %s1326_s17 = smov 128   ;;  %s230_s26 = int_to_ptr.hbm [resolvable:$true] %s229_s26 }
  0x3f   : > { %s1327_s23 = smov 8   ;;  %s850_s22 = sshll.u32 %s241_s11, 1 }
  0x40   : > { %1037 = dma.hbm_to_vmem [thread:$0]  (%p1446_p9), %s230_s26, 4096, %s232_s28, %s217_s0, %s1325_s21, %s1326_s17, %s1327_s23  }
  0x41   : > { %s249_s9 = scalar_lea.hbm %s1654_s2, %s847_s5  ;;  %s245_s4 = scalar_lea.vmem [#allocation6], %s850_s22 }
  0x42   : > { %s251_s3 = sshll.u32 %s249_s9, 4  ;;  %s253_s7 = sshll.u32 %s245_s4, 4  ;;  %s252_s3 = int_to_ptr.hbm [resolvable:$true] %s251_s3  ;;  %s254_s7 = int_to_ptr.vmem [resolvable:$true] %s253_s7 }
  0x43   : > { %s242_s25 = scalar_lea.sflag [#allocation7], %s241_s11 }
  0x44   : > { %1038 = dma.hbm_to_vmem [thread:$0]  (%p1471_p3), %s252_s3, 32, %s254_s7, %s242_s25  }
  0x45 PF: > { %p852_p2 = scmp.ge.s32.totalorder %s1323_s24, 1  ;;  %p258_p5 = scmp.lt.s32.totalorder %s1323_s24, 37 }
  0x47   : > { %p259_p8 = pnand %p852_p2, %p258_p5 }
  0x48   : > { %s265_s0 = sand.u32 (!%p259_p8), 1, %s1299_s18   ;;  %s271_s17 = sand.u32 (!%p259_p8), 1, %s1291_s16  }
  0x49   : > { %262 = sbr.rel (%p259_p8) target bundleno = 321 (0x141), region = 66  ;;  %s853_s21 = sshll.u32 (!%p259_p8), %s265_s0, 4 }
  0x4a   : > { %s854_s23 = sshll.u32 (!%p259_p8), %s271_s17, 8  ;;  %s1509_s22 = scalar_lea.vmem (!%p259_p8), [#allocation3], %s853_s21 }
  0x4b   : > { %s272_s5 = scalar_lea.sflag (!%p259_p8), [#allocation5], %s271_s17  ;;  %s1511_s8 = scalar_lea.vmem (!%p259_p8), [#allocation4], %s854_s23 }
  0x4e   : > { %1266 = dma.done.wait (%p1455_p12), %s272_s5, 4096  }
  0x4f   : > { %1268 = vsyncadd (%p1455_p12), %s272_s5, 4294963200  ;;  %s281_s28 = sand.u32 1, %s1279_s13  }
  0x50   : > { %s855_s15 = sshll.u32 %s281_s28, 1  ;;  %s282_s4 = scalar_lea.sflag [#allocation7], %s281_s28 }
  0x51   : > { %s1518_s30 = scalar_lea.vmem [#allocation6], %s855_s15 }
  0x52   : > { %1270 = dma.done.wait (%p1475_p4), %s282_s4, 32  }
  0x53   : > { %1272 = vsyncadd (%p1475_p4), %s282_s4, 4294967264  ;;  %s856_s18 = sshll.u32 %s281_s28, 4  ;;  %p857_p9 = scmp.ne.s32.totalorder %s1307_s20, 0 }
  0x54   : > { %s1524_s27 = scalar_lea.vmem [#allocation8], %s856_s18 }
  0x55   : > { %327 = sbr.rel (%p857_p9) target bundleno = 95 (0x5f), region = 82 }
  0x5a   : > { %v1328_v2 = vmov 0.0  }
  0x5b   : > { %328 = vst [vmem:[#allocation2 + $0x10] sm:$0xff] %v1328_v2 }
  0x5c   : > { %329 = vst [vmem:[#allocation2] sm:$0xff] %v1328_v2 }
  0x5d   : > { %330 = vst [vmem:[#allocation2 + $0x18] sm:$0xff] %v1328_v2 }
  0x5e   : > { %331 = vst [vmem:[#allocation2 + $0x8] sm:$0xff] %v1328_v2 }
  0x5f PF: > { %v924_v3 = vld [vmem:[%s1511_s8 + $0x70] sm:$0xf]  ;;  %v1018_v4 = vld [vmem:[%s1511_s8 + $0x74] sm:$0xf0]  ;;  %v1017_v8 = vld [vmem:[%s1511_s8 + $0x74] sm:$0xf] }
  0x60   : > { %v988_v5 = vld [vmem:[%s1511_s8 + $0xf0] sm:$0xf]  ;;  %v925_v6 = vor.u32 %v1018_v4, %v924_v3  ;;  %v1034_v7 = vld [vmem:[%s1511_s8 + $0xf4] sm:$0xf0]  ;;  %v926_v9 = vld [vmem:[%s1511_s8 + $0x78] sm:$0xf0] }
  0x61   : > { %v989_v10 = vor.u32 %v1034_v7, %v988_v5  ;;  %v929_v11 = vor.u32 %v1017_v8, %v926_v9  ;;  %v1033_v12 = vld [vmem:[%s1511_s8 + $0xf4] sm:$0xf]  ;;  %v990_v13 = vld [vmem:[%s1511_s8 + $0xf8] sm:$0xf0]  ;;  %v916_v14 = vld [vmem:[%s1511_s8 + $0x60] sm:$0xf] }
  0x62   : > { %540 = vmatpush.bf16.msra.mxu0 %v925_v6  ;;  %v993_v15 = vor.u32 %v1033_v12, %v990_v13  ;;  %v1016_v16 = vld [vmem:[%s1511_s8 + $0x64] sm:$0xf0]  ;;  %v980_v17 = vld [vmem:[%s1511_s8 + $0xe0] sm:$0xf]  ;;  %v1015_v21 = vld [vmem:[%s1511_s8 + $0x64] sm:$0xf] }
  0x63   : > { %v1032_v18 = vld [vmem:[%s1511_s8 + $0xe4] sm:$0xf0]  ;;  %554 = vmatpush.bf16.msra.mxu1 %v989_v10  ;;  %568 = vmatpush.bf16.msra.mxu2 %v929_v11  ;;  %v917_v19 = vor.u32 %v1016_v16, %v916_v14  ;;  %v918_v22 = vld [vmem:[%s1511_s8 + $0x68] sm:$0xf0]  ;;  %v1031_v23 = vld [vmem:[%s1511_s8 + $0xe4] sm:$0xf] }
  0x64   : > { %v981_v20 = vor.u32 %v1032_v18, %v980_v17  ;;  %582 = vmatpush.bf16.msra.mxu3 %v993_v15  ;;  %v921_v24 = vor.u32 %v1015_v21, %v918_v22  ;;  %v982_v25 = vld [vmem:[%s1511_s8 + $0xe8] sm:$0xf0]  ;;  %v908_v26 = vld [vmem:[%s1511_s8 + $0x50] sm:$0xf]  ;;  %v1014_v27 = vld [vmem:[%s1511_s8 + $0x54] sm:$0xf0] }
  0x65   : > { %v985_v28 = vor.u32 %v1031_v23, %v982_v25  ;;  %v972_v29 = vld [vmem:[%s1511_s8 + $0xd0] sm:$0xf]  ;;  %v1030_v30 = vld [vmem:[%s1511_s8 + $0xd4] sm:$0xf0]  ;;  %v1013_v31 = vld [vmem:[%s1511_s8 + $0x54] sm:$0xf]  ;;  %v909_v32 = vor.u32 %v1014_v27, %v908_v26 }
  0x66   : > { %541 = vmatpush.bf16.msra.mxu0 %v917_v19  ;;  %v910_v33 = vld [vmem:[%s1511_s8 + $0x58] sm:$0xf0]  ;;  %v1029_v34 = vld [vmem:[%s1511_s8 + $0xd4] sm:$0xf]  ;;  %v973_v36 = vor.u32 %v1030_v30, %v972_v29  ;;  %v900_v38 = vld [vmem:[%s1511_s8 + $0x40] sm:$0xf] }
  0x67   : > { %v974_v35 = vld [vmem:[%s1511_s8 + $0xd8] sm:$0xf0]  ;;  %555 = vmatpush.bf16.msra.mxu1 %v981_v20  ;;  %569 = vmatpush.bf16.msra.mxu2 %v921_v24  ;;  %v913_v37 = vor.u32 %v1013_v31, %v910_v33  ;;  %v1012_v39 = vld [vmem:[%s1511_s8 + $0x44] sm:$0xf0]  ;;  %v964_v40 = vld [vmem:[%s1511_s8 + $0xc0] sm:$0xf] }
  0x68   : > { %583 = vmatpush.bf16.msra.mxu3 %v985_v28  ;;  %v977_v41 = vor.u32 %v1029_v34, %v974_v35  ;;  %v1028_v42 = vld [vmem:[%s1511_s8 + $0xc4] sm:$0xf0]  ;;  %v1011_v43 = vld [vmem:[%s1511_s8 + $0x44] sm:$0xf]  ;;  %v902_v44 = vld [vmem:[%s1511_s8 + $0x48] sm:$0xf0]  ;;  %v901_v47 = vor.u32 %v1012_v39, %v900_v38 }
  0x69   : > { %v1027_v45 = vld [vmem:[%s1511_s8 + $0xc4] sm:$0xf]  ;;  %v966_v46 = vld [vmem:[%s1511_s8 + $0xc8] sm:$0xf0]  ;;  %v965_v48 = vor.u32 %v1028_v42, %v964_v40  ;;  %v905_v49 = vor.u32 %v1011_v43, %v902_v44  ;;  %v892_v50 = vld [vmem:[%s1511_s8 + $0x30] sm:$0xf] }
  0x6a   : > { %542 = vmatpush.bf16.msra.mxu0 %v909_v32  ;;  %v1010_v51 = vld [vmem:[%s1511_s8 + $0x34] sm:$0xf0]  ;;  %v956_v52 = vld [vmem:[%s1511_s8 + $0xb0] sm:$0xf]  ;;  %v969_v53 = vor.u32 %v1027_v45, %v966_v46  ;;  %v1009_v55 = vld [vmem:[%s1511_s8 + $0x34] sm:$0xf] }
  0x6b   : > { %556 = vmatpush.bf16.msra.mxu1 %v973_v36  ;;  %570 = vmatpush.bf16.msra.mxu2 %v913_v37  ;;  %v1026_v54 = vld [vmem:[%s1511_s8 + $0xb4] sm:$0xf0]  ;;  %v894_v56 = vld [vmem:[%s1511_s8 + $0x38] sm:$0xf0]  ;;  %v1025_v57 = vld [vmem:[%s1511_s8 + $0xb4] sm:$0xf]  ;;  %v893_v59 = vor.u32 %v1010_v51, %v892_v50 }
  0x6c   : > { %584 = vmatpush.bf16.msra.mxu3 %v977_v41  ;;  %v958_v58 = vld [vmem:[%s1511_s8 + $0xb8] sm:$0xf0]  ;;  %v957_v60 = vor.u32 %v1026_v54, %v956_v52  ;;  %v897_v61 = vor.u32 %v1009_v55, %v894_v56  ;;  %v884_v62 = vld [vmem:[%s1511_s8 + $0x20] sm:$0xf]  ;;  %v1008_v63 = vld [vmem:[%s1511_s8 + $0x24] sm:$0xf0] }
  0x6d   : > { %v948_v0 = vld [vmem:[%s1511_s8 + $0xa0] sm:$0xf]  ;;  %v961_v1 = vor.u32 %v1025_v57, %v958_v58  ;;  %v1024_v2 = vld [vmem:[%s1511_s8 + $0xa4] sm:$0xf0]  ;;  %v1007_v3 = vld [vmem:[%s1511_s8 + $0x24] sm:$0xf]  ;;  %v885_v7 = vor.u32 %v1008_v63, %v884_v62 }
  0x6e   : > { %543 = vmatpush.bf16.msra.mxu0 %v901_v47  ;;  %v886_v4 = vld [vmem:[%s1511_s8 + $0x28] sm:$0xf0]  ;;  %v1023_v5 = vld [vmem:[%s1511_s8 + $0xa4] sm:$0xf]  ;;  %v949_v8 = vor.u32 %v1024_v2, %v948_v0  ;;  %v876_v10 = vld [vmem:[%s1511_s8 + $0x10] sm:$0xf] }
  0x6f   : > { %557 = vmatpush.bf16.msra.mxu1 %v965_v48  ;;  %571 = vmatpush.bf16.msra.mxu2 %v905_v49  ;;  %v950_v6 = vld [vmem:[%s1511_s8 + $0xa8] sm:$0xf0]  ;;  %v889_v9 = vor.u32 %v1007_v3, %v886_v4  ;;  %v1006_v11 = vld [vmem:[%s1511_s8 + $0x14] sm:$0xf0]  ;;  %v940_v12 = vld [vmem:[%s1511_s8 + $0x90] sm:$0xf] }
  0x70   : > { %585 = vmatpush.bf16.msra.mxu3 %v969_v53  ;;  %v953_v13 = vor.u32 %v1023_v5, %v950_v6  ;;  %v1022_v14 = vld [vmem:[%s1511_s8 + $0x94] sm:$0xf0]  ;;  %v1005_v15 = vld [vmem:[%s1511_s8 + $0x14] sm:$0xf]  ;;  %v878_v16 = vld [vmem:[%s1511_s8 + $0x18] sm:$0xf0]  ;;  %v877_v19 = vor.u32 %v1006_v11, %v876_v10 }
  0x71   : > { %v1021_v17 = vld [vmem:[%s1511_s8 + $0x94] sm:$0xf]  ;;  %v942_v18 = vld [vmem:[%s1511_s8 + $0x98] sm:$0xf0]  ;;  %v941_v20 = vor.u32 %v1022_v14, %v940_v12  ;;  %v881_v21 = vor.u32 %v1005_v15, %v878_v16  ;;  %v868_v22 = vld [vmem:[%s1511_s8] sm:$0xf] }
  0x72   : > { %544 = vmatpush.bf16.msra.mxu0 %v893_v59  ;;  %v1004_v23 = vld [vmem:[%s1511_s8 + $0x4] sm:$0xf0]  ;;  %v932_v24 = vld [vmem:[%s1511_s8 + $0x80] sm:$0xf]  ;;  %v945_v25 = vor.u32 %v1021_v17, %v942_v18  ;;  %v1003_v27 = vld [vmem:[%s1511_s8 + $0x4] sm:$0xf] }
  0x73   : > { %558 = vmatpush.bf16.msra.mxu1 %v957_v60  ;;  %572 = vmatpush.bf16.msra.mxu2 %v897_v61  ;;  %v1020_v26 = vld [vmem:[%s1511_s8 + $0x84] sm:$0xf0]  ;;  %v870_v28 = vld [vmem:[%s1511_s8 + $0x8] sm:$0xf0]  ;;  %v1019_v29 = vld [vmem:[%s1511_s8 + $0x84] sm:$0xf]  ;;  %v869_v31 = vor.u32 %v1004_v23, %v868_v22 }
  0x74   : > { %586 = vmatpush.bf16.msra.mxu3 %v961_v1  ;;  %v934_v30 = vld [vmem:[%s1511_s8 + $0x88] sm:$0xf0]  ;;  %v860_v32 = vld [vmem:[%s1509_s22] sm:$0xf]  ;;  %v1002_v33 = vld [vmem:[%s1509_s22 + $0x4] sm:$0xf0]  ;;  %v933_v34 = vor.u32 %v1020_v26, %v932_v24  ;;  %v873_v35 = vor.u32 %v1003_v27, %v870_v28 }
  0x75   : > { %v1001_v36 = vld [vmem:[%s1509_s22 + $0x4] sm:$0xf]  ;;  %v862_v37 = vld [vmem:[%s1509_s22 + $0x8] sm:$0xf0]  ;;  %v937_v38 = vor.u32 %v1019_v29, %v934_v30  ;;  %v861_v39 = vor.u32 %v1002_v33, %v860_v32  ;;  %p994_p10 = scmp.ne.s32.totalorder %s1307_s20, 2 }
  0x76   : > { %545 = vmatpush.bf16.msra.mxu0 %v885_v7  ;;  %v865_v40 = vor.u32 %v1001_v36, %v862_v37  ;;  %v332_v42 = vld [vmem:[#allocation2 + $0x10] sm:$0xff]  ;;  %v333_v47 = vld [vmem:[#allocation2] sm:$0xff]  ;;  %v334_v51 = vld [vmem:[#allocation2 + $0x18] sm:$0xff] }
  0x77   : > { %559 = vmatpush.bf16.msra.mxu1 %v949_v8  ;;  %573 = vmatpush.bf16.msra.mxu2 %v889_v9  ;;  %v335_v57 = vld [vmem:[#allocation2 + $0x8] sm:$0xff] }
  0x78   : > { %587 = vmatpush.bf16.msra.mxu3 %v953_v13 }
  0x7a   : > { %546 = vmatpush.bf16.msra.mxu0 %v877_v19 }
  0x7b   : > { %560 = vmatpush.bf16.msra.mxu1 %v941_v20  ;;  %574 = vmatpush.bf16.msra.mxu2 %v881_v21 }
  0x7c   : > { %588 = vmatpush.bf16.msra.mxu3 %v945_v25 }
  0x7e   : > { %547 = vmatpush.bf16.msra.mxu0 %v869_v31 }
  0x7f   : > { %561 = vmatpush.bf16.msra.mxu1 %v933_v34  ;;  %575 = vmatpush.bf16.msra.mxu2 %v873_v35 }
  0x80   : > { %589 = vmatpush.bf16.msra.mxu3 %v937_v38 }
  0x81   : > { %548 = vmatmul.bf16.vlgmr.msra.gmra.mxu0 %v861_v39 }
  0x82   : > { %562 = vmatmul.bf16.vlgmr.msra.gmra.mxu1 %v865_v40  ;;  %576 = vmatmul.bf16.vlgmr.msra.gmra.mxu2 %v861_v39 }
  0x83   : > { %590 = vmatmul.bf16.vlgmr.msra.gmra.mxu3 %v865_v40 }
  0xfe   : > { %v549_v41 = vpop.f32.mrf.mxu0 }
  0xff   : > { %v563_v43 = vpop.f32.mrf.mxu1 }
 0x100   : > { %v564_v44 = vadd.f32 %v563_v43, %v549_v41 }
 0x102   : > { %v596_v45 = vadd.f32 %v564_v44, %v332_v42 }
 0x104   : > { %600 = vst [vmem:[#allocation2 + $0x10] sm:$0xff] %v596_v45 }
 0x105   : > { %v577_v46 = vpop.f32.mrf.mxu2 }
 0x106   : > { %v591_v48 = vpop.f32.mrf.mxu3  ;;  %v551_v49 = vpop.f32.mrf.mxu0 }
 0x107   : > { %v592_v50 = vadd.f32 %v591_v48, %v577_v46  ;;  %v565_v52 = vpop.f32.mrf.mxu1 }
 0x108   : > { %v566_v53 = vadd.f32 %v565_v52, %v551_v49 }
 0x109   : > { %v597_v54 = vadd.f32 %v592_v50, %v333_v47 }
 0x10a   : > { %v598_v55 = vadd.f32 %v566_v53, %v334_v51 }
 0x10b   : > { %601 = vst [vmem:[#allocation2] sm:$0xff] %v597_v54 }
 0x10c   : > { %602 = vst [vmem:[#allocation2 + $0x18] sm:$0xff] %v598_v55 }
 0x10d   : > { %v579_v56 = vpop.f32.mrf.mxu2 }
 0x10e   : > { %v593_v58 = vpop.f32.mrf.mxu3 }
 0x10f   : > { %v594_v59 = vadd.f32 %v593_v58, %v579_v56  ;;  %607 = sbr.rel (%p994_p10) target bundleno = 311 (0x137), region = 86 }
 0x111   : > { %v599_v60 = vadd.f32 %v594_v59, %v335_v57 }
 0x113   : > { %603 = vst [vmem:[#allocation2 + $0x8] sm:$0xff] %v599_v60 }
 0x114   : > { %v608_v61 = vld [vmem:[#allocation2 + $0x10] sm:$0xff]  ;;  %v609_v62 = vld [vmem:[#allocation2] sm:$0xff]  ;;  %v610_v2 = vld [vmem:[#allocation2 + $0x18] sm:$0xff] }
 0x115   : > { %v612_v63 = vld [vmem:[%s1518_s30] sm:$0x3] }
 0x116   : > { %v614_v0 = vperm.slane %v612_v63, 0  ;;  %v615_v1 = vperm.slane %v612_v63, 1 }
 0x118   : > { %v618_v4 = vadd.f32 %v614_v0, %v608_v61  ;;  %v619_v5 = vadd.f32 %v615_v1, %v609_v62  ;;  %v620_v6 = vadd.f32 %v614_v0, %v610_v2 }
 0x11a   : > { %v611_v3 = vld [vmem:[#allocation2 + $0x8] sm:$0xff]  ;;  %v622_v8 = vmul.f32 %v618_v4, %v618_v4  ;;  %v623_v9 = vmul.f32 %v619_v5, %v619_v5  ;;  %v624_v10 = vmul.f32 %v620_v6, %v620_v6 }
 0x11b   : > { %v621_v7 = vadd.f32 %v615_v1, %v611_v3 }
 0x11c   : > { %v626_v12 = vmul.f32 %v622_v8, %v618_v4  ;;  %v627_v13 = vmul.f32 %v623_v9, %v619_v5  ;;  %v628_v14 = vmul.f32 %v624_v10, %v620_v6 }
 0x11d   : > { %v625_v11 = vmul.f32 %v621_v7, %v621_v7 }
 0x11e   : > { %v630_v16 = vmul.f32 0.044715, %v626_v12  ;;  %v631_v17 = vmul.f32 0.044715, %v627_v13  ;;  %v632_v18 = vmul.f32 0.044715, %v628_v14 }
 0x11f   : > { %v629_v15 = vmul.f32 %v625_v11, %v621_v7 }
 0x120   : > { %v634_v20 = vadd.f32 %v630_v16, %v618_v4  ;;  %v635_v21 = vadd.f32 %v631_v17, %v619_v5  ;;  %v636_v22 = vadd.f32 %v632_v18, %v620_v6 }
 0x121   : > { %v633_v19 = vmul.f32 0.044715, %v629_v15 }
 0x122   : > { %v638_v24 = vmul.f32 0.7978846, %v634_v20  ;;  %v639_v25 = vmul.f32 0.7978846, %v635_v21  ;;  %v640_v26 = vmul.f32 0.7978846, %v636_v22 }
 0x123   : > { %v637_v23 = vadd.f32 %v633_v19, %v621_v7 }
 0x124   : > { %1149 = vtanh.f32 %v638_v24 }
 0x125   : > { %v641_v27 = vmul.f32 0.7978846, %v637_v23  ;;  %1151 = vtanh.f32 %v639_v25 }
 0x126   : > { %1153 = vtanh.f32 %v640_v26 }
 0x127   : > { %1155 = vtanh.f32 %v641_v27 }
 0x12a   : > { %v1150_v28 = vpop.eup %1149 }
 0x12b   : > { %v1152_v29 = vpop.eup %1151  ;;  %v646_v30 = vadd.f32 1.0, %v1150_v28 }
 0x12c   : > { %v1154_v31 = vpop.eup %1153  ;;  %v647_v32 = vadd.f32 1.0, %v1152_v29 }
 0x12d   : > { %v1156_v33 = vpop.eup %1155  ;;  %v650_v34 = vmul.f32 0.5, %v646_v30  ;;  %v648_v35 = vadd.f32 1.0, %v1154_v31 }
 0x12e   : > { %v651_v36 = vmul.f32 0.5, %v647_v32  ;;  %v649_v37 = vadd.f32 1.0, %v1156_v33 }
 0x12f   : > { %v654_v38 = vmul.f32 %v650_v34, %v618_v4  ;;  %v652_v39 = vmul.f32 0.5, %v648_v35 }
 0x130   : > { %v655_v40 = vmul.f32 %v651_v36, %v619_v5  ;;  %v653_v41 = vmul.f32 0.5, %v649_v37 }
 0x131   : > { %v656_v42 = vmul.f32 %v652_v39, %v620_v6 }
 0x132   : > { %v658_v43 = vpack.c.bf16 %v655_v40, %v654_v38  ;;  %v657_v44 = vmul.f32 %v653_v41, %v621_v7 }
 0x134   : > { %660 = vst [vmem:[%s1524_s27] sm:$0xff] %v658_v43  ;;  %v659_v45 = vpack.c.bf16 %v657_v44, %v656_v42 }
 0x136   : > { %661 = vst [vmem:[%s1524_s27 + $0x8] sm:$0xff] %v659_v45 }
 0x137 PF: > { %668 = sbr.rel (!%p1479_p6) target bundleno = 321 (0x141), region = 90  ;;  %s1684_s10 = sld [smem:[#allocation13_spill]] (%p1479_p6) }
 0x138   : > { %s1685_s11 = sld [smem:[#allocation23_spill]] (%p1479_p6) }
 0x13b   : > { %v705_v46 = vld [vmem:[%s1524_s27] sm:$0xff] (%p1479_p6) }
 0x13d   : > { %s1035_s29 = sshll.u32 %s1684_s10, 3  ;;  %v707_v47 = vld [vmem:[%s1524_s27 + $0x8] sm:$0xff] }
 0x13e   : > { %s674_s19 = scalar_lea.vmem %s1685_s11, %s1035_s29 }
 0x13f   : > { %706 = vst [vmem:[%s674_s19] sm:$0xff] %v705_v46 }
 0x140   : > { %708 = vst [vmem:[%s674_s19 + $0x60] sm:$0xff] %v707_v47 }
 0x141 PF: > { %s19_s24 = sadd.s32 1, %s1323_s24   ;;  %s1687_s9 = sld [smem:[#allocation20_spill]] }
 0x142   : > { %p1608_p11 = scmp.ge.s32.totalorder %s19_s24, 38   ;;  %s1688_s3 = sld [smem:[#allocation11_spill]] }
 0x143   : > { %s1689_s17 = sld [smem:[#allocation19_spill]]  ;;  %s1697_s12 = smov %s1279_s13 }
 0x144   : > { %s1690_s18 = sld [smem:[#allocation12_spill]]  ;;  %s1698_s13 = smov %s1283_s14 }
 0x145   : > { %s1691_s19 = sld [smem:[#allocation18_spill]]  ;;  %s1700_s15 = smov %s1291_s16 }
 0x146   : > { %s1692_s20 = sld [smem:[#allocation14_spill]]  ;;  %18 = sbr.rel (!%p1608_p11) target bundleno = 13 (0xd), region = 177 }
 0x147   : > { %s1693_s21 = sld [smem:[#allocation15_spill]]  ;;  %s1699_s14 = smov %s1687_s9 }
 0x148   : > { %s1694_s22 = sld [smem:[#allocation16_spill]]  ;;  %s1701_s16 = smov %s1688_s3 }
 0x149   : > { %s1695_s23 = sld [smem:[#allocation17_spill]] }
 0x14b   :  { %724 = vsyncpa [#allocation5], 1 }
 0x14c   :  { %726 = vsyncpa [#allocation5 + $0x1], 1 }
 0x14d   :  { %727 = vsyncpa [#allocation7], 1 }
 0x14e   :  { %729 = vsyncpa [#allocation7 + $0x1], 1 }

// kernel: base_model_forward.171
= control target key start
LH: loop header
LB: loop body
LE: loop exit
PB: predicated region body
PF: predicated region fallthrough
CT: control target
= control target key end

     0   :  { %8 = vsyncpa [#allocation3], 0  ;;  %s1077_s0 = inlined_call_operand.vmem [shape: bf16[2,8,768], index: 0, kind: input, shape index: {}]   ;;  %s1078_s1 = inlined_call_operand.hbm [shape: bf16[768,128], index: 1, kind: input, shape index: {}]   ;;  %s1079_s2 = inlined_call_operand.hbm [shape: f32[1,128], index: 2, kind: input, shape index: {}]   ;;  %s1080_s3 = inlined_call_operand.hbm [shape: f32[2,128], index: 3, kind: output, shape index: {}]  }
   0x1   :  { %9 = vsyncpa [#allocation6], 0 }
   0x2   :  { %10 = vsyncpa [#allocation4], 0  ;;  %s17_s14 = sshll.u32 %s1078_s1, 4  ;;  %s1011_s15 = smov [#allocation2]   ;;  %s18_s14 = int_to_ptr.hbm [resolvable:$true] %s17_s14 }
   0x3   :  { %s19_s16 = sshll.u32 %s1011_s15, 4  ;;  %s31_s19 = sshll.u32 %s1079_s2, 4  ;;  %s20_s16 = int_to_ptr.vmem [resolvable:$true] %s19_s16  ;;  %s32_s19 = int_to_ptr.hbm [resolvable:$true] %s31_s19 }
   0x4   :  { %s1012_s20 = smov 64   ;;  %s1013_s21 = smov 4  }
   0x5   :  { %25 = dma.hbm_to_vmem [thread:$0]  %s18_s14, 6144, %s20_s16, [#allocation3], %s1012_s20, %s1012_s20, %s1013_s21  }
   0x6   :  { %s1014_s22 = smov [#allocation5]  }
   0x7   :  { %s33_s23 = sshll.u32 %s1014_s22, 4  ;;  %s34_s23 = int_to_ptr.vmem [resolvable:$true] %s33_s23 }
   0x8   :  { %36 = dma.hbm_to_vmem [thread:$0]  %s32_s19, 16, %s34_s23, [#allocation6]  }
   0x9   :  { %1005 = dma.done.wait [#allocation3], 6144  }
   0xa   :  { %1006 = vsyncadd [#allocation3], 4294961152 }
   0xb   :  { %1007 = dma.done.wait [#allocation6], 16  }
   0xc   :  { %1008 = vsyncadd [#allocation6], 4294967280  ;;  %v886_v0 = vld [vmem:[#allocation2 + $0x38] sm:$0xff]  ;;  %v885_v2 = vld [vmem:[#allocation2 + $0x30] sm:$0xff]  ;;  %vm283_vm0 = vcmask 1041409   ;;  %s676_s10 = sshll.u32 %s1080_s3, 4  ;;  %s677_s10 = int_to_ptr.hbm [resolvable:$true] %s676_s10 }
   0xd   :  { %v894_v1 = vld [vmem:[#allocation2 + $0x78] sm:$0xff]  ;;  %590 = vmatpush.bf16.msra.mxu0 %v886_v0  ;;  %v893_v3 = vld [vmem:[#allocation2 + $0x70] sm:$0xff]  ;;  %v884_v8 = vld [vmem:[#allocation2 + $0x28] sm:$0xff] }
   0xe   :  { %603 = vmatpush.bf16.msra.mxu1 %v894_v1  ;;  %v902_v4 = vld [vmem:[#allocation2 + $0xb8] sm:$0xff]  ;;  %v901_v6 = vld [vmem:[#allocation2 + $0xb0] sm:$0xff]  ;;  %v892_v9 = vld [vmem:[#allocation2 + $0x68] sm:$0xff] }
   0xf   :  { %v910_v5 = vld [vmem:[#allocation2 + $0xf8] sm:$0xff]  ;;  %616 = vmatpush.bf16.msra.mxu2 %v902_v4  ;;  %v909_v7 = vld [vmem:[#allocation2 + $0xf0] sm:$0xff]  ;;  %v900_v10 = vld [vmem:[#allocation2 + $0xa8] sm:$0xff] }
  0x10   :  { %629 = vmatpush.bf16.msra.mxu3 %v910_v5  ;;  %v908_v11 = vld [vmem:[#allocation2 + $0xe8] sm:$0xff]  ;;  %v883_v12 = vld [vmem:[#allocation2 + $0x20] sm:$0xff]  ;;  %v48_v15 = vld [vmem:[%s1077_s0 + $0x18] sm:$0xff] }
  0x11   :  { %591 = vmatpush.bf16.msra.mxu0 %v885_v2  ;;  %v891_v13 = vld [vmem:[#allocation2 + $0x60] sm:$0xff]  ;;  %v57_v19 = vunpack.c.l.bf16 %v48_v15  ;;  %v58_v21 = vunpack.c.h.bf16 %v48_v15  ;;  %v46_v22 = vld [vmem:[%s1077_s0 + $0x8] sm:$0xff]  ;;  %v882_v24 = vld [vmem:[#allocation2 + $0x18] sm:$0xff] }
  0x12   :  { %604 = vmatpush.bf16.msra.mxu1 %v893_v3  ;;  %v45_v14 = vld [vmem:[%s1077_s0] sm:$0xff]  ;;  %v890_v25 = vld [vmem:[#allocation2 + $0x58] sm:$0xff]  ;;  %v53_v30 = vunpack.c.l.bf16 %v46_v22  ;;  %v54_v32 = vunpack.c.h.bf16 %v46_v22  ;;  %v1057_v43 = vld [vmem:[%s1077_s0 + $0x10] sm:$0xff] }
  0x13   :  { %617 = vmatpush.bf16.msra.mxu2 %v901_v6  ;;  %v899_v16 = vld [vmem:[#allocation2 + $0xa0] sm:$0xff]  ;;  %v51_v18 = vunpack.c.l.bf16 %v45_v14  ;;  %v52_v20 = vunpack.c.h.bf16 %v45_v14  ;;  %v99_v27 = vrot.slane %v57_v19, 4  ;;  %v105_v29 = vrot.slane %v58_v21, 4  ;;  %v898_v34 = vld [vmem:[#allocation2 + $0x98] sm:$0xff]  ;;  %v881_v44 = vld [vmem:[#allocation2 + $0x10] sm:$0xff] }
  0x14   :  { %630 = vmatpush.bf16.msra.mxu3 %v909_v7  ;;  %v907_v17 = vld [vmem:[#allocation2 + $0xe0] sm:$0xff]  ;;  %v906_v35 = vld [vmem:[#allocation2 + $0xd8] sm:$0xff]  ;;  %v75_v40 = vrot.slane %v53_v30, 4  ;;  %v81_v42 = vrot.slane %v54_v32, 4  ;;  %v889_v45 = vld [vmem:[#allocation2 + $0x50] sm:$0xff]  ;;  %v55_v59 = vunpack.c.l.bf16 %v1057_v43 }
  0x15   :  { %592 = vmatpush.bf16.msra.mxu0 %v884_v8  ;;  %v49_v23 = vld [vmem:[%s1077_s0 + $0x20] sm:$0xff]  ;;  %v63_v26 = vrot.slane %v51_v18, 4  ;;  %v69_v28 = vrot.slane %v52_v20, 4  ;;  %v100_v37 = vadd.f32 %v99_v27, %v57_v19  ;;  %v106_v39 = vadd.f32 %v105_v29, %v58_v21  ;;  %v897_v54 = vld [vmem:[#allocation2 + $0x90] sm:$0xff]  ;;  %v880_v0 = vld [vmem:[#allocation2 + $0x8] sm:$0xff] }
  0x16   :  { %605 = vmatpush.bf16.msra.mxu1 %v892_v9  ;;  %v59_v31 = vunpack.c.l.bf16 %v49_v23  ;;  %v60_v33 = vunpack.c.h.bf16 %v49_v23  ;;  %v76_v51 = vadd.f32 %v75_v40, %v53_v30  ;;  %v82_v53 = vadd.f32 %v81_v42, %v54_v32  ;;  %v905_v55 = vld [vmem:[#allocation2 + $0xd0] sm:$0xff]  ;;  %v888_v1 = vld [vmem:[#allocation2 + $0x48] sm:$0xff]  ;;  %v887_v21 = vld [vmem:[#allocation2 + $0x40] sm:$0xff] }
  0x17   :  { %618 = vmatpush.bf16.msra.mxu2 %v900_v10  ;;  %v64_v36 = vadd.f32 %v63_v26, %v51_v18  ;;  %v70_v38 = vadd.f32 %v69_v28, %v52_v20  ;;  %v101_v47 = vrot.slane %v100_v37, 2  ;;  %v107_v50 = vrot.slane %v106_v39, 2  ;;  %v896_v10 = vld [vmem:[#allocation2 + $0x88] sm:$0xff]  ;;  %v879_v20 = vld [vmem:[#allocation2] sm:$0xff]  ;;  %v918_v26 = vld [vmem:[#allocation2 + $0x138] sm:$0xff] }
  0x18   :  { %631 = vmatpush.bf16.msra.mxu3 %v908_v11  ;;  %v111_v41 = vrot.slane %v59_v31, 4  ;;  %v117_v49 = vrot.slane %v60_v33, 4  ;;  %v77_v61 = vrot.slane %v76_v51, 2  ;;  %v83_v63 = vrot.slane %v82_v53, 2  ;;  %v904_v11 = vld [vmem:[#allocation2 + $0xc8] sm:$0xff]  ;;  %v926_v27 = vld [vmem:[#allocation2 + $0x178] sm:$0xff] }
  0x19   :  { %593 = vmatpush.bf16.msra.mxu0 %v883_v12  ;;  %v65_v46 = vrot.slane %v64_v36, 2  ;;  %v71_v48 = vrot.slane %v70_v38, 2  ;;  %v102_v57 = vadd.f32 %v101_v47, %v100_v37  ;;  %v108_v60 = vadd.f32 %v107_v50, %v106_v39  ;;  %v50_v42 = vld [vmem:[%s1077_s0 + $0x28] sm:$0xff]  ;;  %s1015_s0 = smov [#allocation7]  }
  0x1a   :  { %606 = vmatpush.bf16.msra.mxu1 %v891_v13  ;;  %v112_v52 = vadd.f32 %v111_v41, %v59_v31  ;;  %v118_v5 = vadd.f32 %v117_v49, %v60_v33  ;;  %v78_v7 = vadd.f32 %v77_v61, %v76_v51  ;;  %v84_v9 = vadd.f32 %v83_v63, %v82_v53  ;;  %v925_v49 = vld [vmem:[#allocation2 + $0x170] sm:$0xff]  ;;  %s674_s7 = sshll.u32 %s1015_s0, 4  ;;  %s675_s7 = int_to_ptr.vmem [resolvable:$true] %s674_s7 }
  0x1b   :  { %619 = vmatpush.bf16.msra.mxu2 %v899_v16  ;;  %v66_v56 = vadd.f32 %v65_v46, %v64_v36  ;;  %v72_v58 = vadd.f32 %v71_v48, %v70_v38  ;;  %v103_v3 = vrot.slane %v102_v57, 1  ;;  %v109_v6 = vrot.slane %v108_v60, 1  ;;  %v903_v36 = vld [vmem:[#allocation2 + $0xc0] sm:$0xff]  ;;  %v917_v48 = vld [vmem:[#allocation2 + $0x130] sm:$0xff] }
  0x1c   :  { %632 = vmatpush.bf16.msra.mxu3 %v907_v17  ;;  %v113_v62 = vrot.slane %v112_v52, 2  ;;  %v119_v15 = vrot.slane %v118_v5, 2  ;;  %v79_v17 = vrot.slane %v78_v7, 1  ;;  %v85_v19 = vrot.slane %v84_v9, 1 }
  0x1d   :  { %594 = vmatpush.bf16.msra.mxu0 %v882_v24  ;;  %v67_v2 = vrot.slane %v66_v56, 1  ;;  %v73_v4 = vrot.slane %v72_v58, 1  ;;  %v104_v13 = vadd.f32 %v103_v3, %v102_v57  ;;  %v110_v16 = vadd.f32 %v109_v6, %v108_v60  ;;  %v916_v3 = vld [vmem:[#allocation2 + $0x128] sm:$0xff] }
  0x1e   :  { %607 = vmatpush.bf16.msra.mxu1 %v890_v25  ;;  %v114_v8 = vadd.f32 %v113_v62, %v112_v52  ;;  %v120_v25 = vadd.f32 %v119_v15, %v118_v5  ;;  %v80_v29 = vadd.f32 %v79_v17, %v78_v7  ;;  %v86_v31 = vadd.f32 %v85_v19, %v84_v9  ;;  %v923_v17 = vld [vmem:[#allocation2 + $0x160] sm:$0xff] }
  0x1f   :  { %620 = vmatpush.bf16.msra.mxu2 %v898_v34  ;;  %v68_v12 = vadd.f32 %v67_v2, %v66_v56  ;;  %v74_v14 = vadd.f32 %v73_v4, %v72_v58  ;;  %v141_v23 = vmul.f32 0.125, %v104_v13  ;;  %v142_v28 = vmul.f32 0.125, %v110_v16  ;;  %v924_v4 = vld [vmem:[#allocation2 + $0x168] sm:$0xff]  ;;  %v915_v16 = vld [vmem:[#allocation2 + $0x120] sm:$0xff] }
  0x20   :  { %633 = vmatpush.bf16.msra.mxu3 %v906_v35  ;;  %v115_v18 = vrot.slane %v114_v8, 1  ;;  %v895_v35 = vld [vmem:[#allocation2 + $0x80] sm:$0xff]  ;;  %v121_v37 = vrot.slane %v120_v25, 1  ;;  %v137_v39 = vmul.f32 0.125, %v80_v29  ;;  %v138_v41 = vmul.f32 0.125, %v86_v31 }
  0x21   :  { %595 = vmatpush.bf16.msra.mxu0 %v881_v44  ;;  %v135_v22 = vmul.f32 0.125, %v68_v12  ;;  %v136_v24 = vmul.f32 0.125, %v74_v14  ;;  %v153_v33 = vpack.c.bf16 %v141_v23, %v141_v23  ;;  %v154_v38 = vpack.c.bf16 %v142_v28, %v142_v28 }
  0x22   :  { %608 = vmatpush.bf16.msra.mxu1 %v889_v45  ;;  %v116_v30 = vadd.f32 %v115_v18, %v114_v8  ;;  %v122_v47 = vadd.f32 %v121_v37, %v120_v25  ;;  %v149_v51 = vpack.c.bf16 %v137_v39, %v137_v39  ;;  %v150_v53 = vpack.c.bf16 %v138_v41, %v138_v41 }
  0x23   :  { %621 = vmatpush.bf16.msra.mxu2 %v897_v54  ;;  %v147_v32 = vpack.c.bf16 %v135_v22, %v135_v22  ;;  %v148_v34 = vpack.c.bf16 %v136_v24, %v136_v24  ;;  %v277_v45 = vunpack.c.l.b16 %v153_v33  ;;  %v278_v50 = vunpack.c.l.b16 %v154_v38 }
  0x24   :  { %634 = vmatpush.bf16.msra.mxu3 %v905_v55  ;;  %v143_v40 = vmul.f32 0.125, %v116_v30  ;;  %v144_v55 = vmul.f32 0.125, %v122_v47  ;;  %v61_v56 = vunpack.c.l.bf16 %v50_v42  ;;  %v87_v57 = vrot.slane %v55_v59, 4 }
  0x25   :  { %596 = vmatpush.bf16.msra.mxu0 %v880_v0  ;;  %v271_v44 = vunpack.c.l.b16 %v147_v32  ;;  %v272_v46 = vunpack.c.l.b16 %v148_v34  ;;  %v273_v61 = vunpack.c.l.b16 %v149_v51  ;;  %v56_v7 = vunpack.c.h.bf16 %v1057_v43 }
  0x26   :  { %609 = vmatpush.bf16.msra.mxu1 %v888_v1  ;;  %v155_v52 = vpack.c.bf16 %v143_v40, %v143_v40  ;;  %v156_v0 = vpack.c.bf16 %v144_v55, %v144_v55  ;;  %v274_v1 = vunpack.c.l.b16 %v150_v53  ;;  %v88_v2 = vadd.f32 %v87_v57, %v55_v59  ;;  %v911_v53 = vld [vmem:[#allocation2 + $0x100] sm:$0xff] }
  0x27   :  { %622 = vmatpush.bf16.msra.mxu2 %v896_v10  ;;  %v284_v54 = vsel %vm283_vm0, %v277_v45, %v271_v44  ;;  %v285_v60 = vsel %vm283_vm0, %v278_v50, %v272_v46  ;;  %v123_v6 = vrot.slane %v61_v56, 4  ;;  %v62_v8 = vunpack.c.h.bf16 %v50_v42  ;;  %v912_v45 = vld [vmem:[#allocation2 + $0x108] sm:$0xff] }
  0x28   :  { %635 = vmatpush.bf16.msra.mxu3 %v904_v11  ;;  %v290_v58 = vpack.c.b16 %v284_v54, %v284_v54  ;;  %v279_v62 = vunpack.c.l.b16 %v155_v52  ;;  %v291_v63 = vpack.c.b16 %v285_v60, %v285_v60  ;;  %v280_v10 = vunpack.c.l.b16 %v156_v0  ;;  %v920_v46 = vld [vmem:[#allocation2 + $0x148] sm:$0xff]  ;;  %v919_v54 = vld [vmem:[#allocation2 + $0x140] sm:$0xff] }
  0x29   :  { %597 = vmatpush.bf16.msra.mxu0 %v879_v20  ;;  %v89_v11 = vrot.slane %v88_v2, 2  ;;  %v124_v12 = vadd.f32 %v123_v6, %v61_v56  ;;  %v93_v13 = vrot.slane %v56_v7, 4  ;;  %v129_v14 = vrot.slane %v62_v8, 4  ;;  %v932_v0 = vld [vmem:[#allocation5] ss:$0 sm:$0xff] }
  0x2a   :  { %610 = vmatpush.bf16.msra.mxu1 %v887_v21  ;;  %v286_v5 = vsel %vm283_vm0, %v279_v62, %v273_v61  ;;  %v287_v59 = vsel %vm283_vm0, %v280_v10, %v274_v1 }
  0x2b   :  { %623 = vmatpush.bf16.msra.mxu2 %v895_v35  ;;  %v292_v9 = vpack.c.b16 %v286_v5, %v286_v5  ;;  %v90_v15 = vadd.f32 %v89_v11, %v88_v2  ;;  %v293_v18 = vpack.c.b16 %v287_v59, %v287_v59  ;;  %v125_v19 = vrot.slane %v124_v12, 2  ;;  %v913_v35 = vld [vmem:[#allocation2 + $0x110] sm:$0xff] }
  0x2c   :  { %636 = vmatpush.bf16.msra.mxu3 %v903_v36  ;;  %598 = vmatmul.bf16.vlgmr.msra.gmra.mxu0 %v290_v58  ;;  %v94_v43 = vadd.f32 %v93_v13, %v56_v7  ;;  %v130_v20 = vadd.f32 %v129_v14, %v62_v8  ;;  %v921_v36 = vld [vmem:[#allocation2 + $0x150] sm:$0xff] }
  0x2d   :  { %642 = vmatpush.bf16.msrb.mxu0 %v918_v26  ;;  %611 = vmatmul.bf16.vlgmr.msra.gmra.mxu1 %v291_v63  ;;  %v91_v21 = vrot.slane %v90_v15, 1  ;;  %v126_v22 = vadd.f32 %v125_v19, %v124_v12  ;;  %v914_v26 = vld [vmem:[#allocation2 + $0x118] sm:$0xff] }
  0x2e   :  { %655 = vmatpush.bf16.msrb.mxu1 %v926_v27  ;;  %624 = vmatmul.bf16.vlgmr.msra.gmra.mxu2 %v292_v9  ;;  %v95_v23 = vrot.slane %v94_v43, 2  ;;  %v131_v24 = vrot.slane %v130_v20, 2  ;;  %v922_v27 = vld [vmem:[#allocation2 + $0x158] sm:$0xff] }
  0x2f   :  { %637 = vmatmul.bf16.vlgmr.msra.gmra.mxu3 %v293_v18  ;;  %v92_v25 = vadd.f32 %v91_v21, %v90_v15  ;;  %v127_v28 = vrot.slane %v126_v22, 1 }
  0x30   :  { %v96_v29 = vadd.f32 %v95_v23, %v94_v43  ;;  %v132_v30 = vadd.f32 %v131_v24, %v130_v20 }
  0x31   :  { %643 = vmatpush.bf16.msrb.mxu0 %v917_v48  ;;  %v139_v31 = vmul.f32 0.125, %v92_v25  ;;  %v128_v32 = vadd.f32 %v127_v28, %v126_v22 }
  0x32   :  { %656 = vmatpush.bf16.msrb.mxu1 %v925_v49  ;;  %v97_v33 = vrot.slane %v96_v29, 1  ;;  %v133_v34 = vrot.slane %v132_v30, 1 }
  0x33   :  { %v145_v37 = vmul.f32 0.125, %v128_v32  ;;  %v151_v38 = vpack.c.bf16 %v139_v31, %v139_v31 }
  0x34   :  { %v98_v39 = vadd.f32 %v97_v33, %v96_v29  ;;  %v134_v40 = vadd.f32 %v133_v34, %v132_v30 }
  0x35   :  { %644 = vmatpush.bf16.msrb.mxu0 %v916_v3  ;;  %v157_v41 = vpack.c.bf16 %v145_v37, %v145_v37  ;;  %v275_v47 = vunpack.c.l.b16 %v151_v38 }
  0x36   :  { %657 = vmatpush.bf16.msrb.mxu1 %v924_v4  ;;  %v140_v42 = vmul.f32 0.125, %v98_v39  ;;  %v146_v44 = vmul.f32 0.125, %v134_v40 }
  0x37   :  { %v281_v48 = vunpack.c.l.b16 %v157_v41 }
  0x38   :  { %v152_v49 = vpack.c.bf16 %v140_v42, %v140_v42  ;;  %v158_v50 = vpack.c.bf16 %v146_v44, %v146_v44 }
  0x39   :  { %645 = vmatpush.bf16.msrb.mxu0 %v915_v16  ;;  %v288_v55 = vsel %vm283_vm0, %v281_v48, %v275_v47 }
  0x3a   :  { %658 = vmatpush.bf16.msrb.mxu1 %v923_v17  ;;  %v276_v51 = vunpack.c.l.b16 %v152_v49  ;;  %v282_v52 = vunpack.c.l.b16 %v158_v50  ;;  %v294_v57 = vpack.c.b16 %v288_v55, %v288_v55 }
  0x3c   :  { %v289_v56 = vsel %vm283_vm0, %v282_v52, %v276_v51 }
  0x3d   :  { %646 = vmatpush.bf16.msrb.mxu0 %v914_v26  ;;  %v295_v58 = vpack.c.b16 %v289_v56, %v289_v56 }
  0x3e   :  { %659 = vmatpush.bf16.msrb.mxu1 %v922_v27 }
  0x41   :  { %647 = vmatpush.bf16.msrb.mxu0 %v913_v35 }
  0x42   :  { %660 = vmatpush.bf16.msrb.mxu1 %v921_v36 }
  0x45   :  { %648 = vmatpush.bf16.msrb.mxu0 %v912_v45 }
  0x46   :  { %661 = vmatpush.bf16.msrb.mxu1 %v920_v46 }
  0x49   :  { %649 = vmatpush.bf16.msrb.mxu0 %v911_v53 }
  0x4a   :  { %662 = vmatpush.bf16.msrb.mxu1 %v919_v54 }
  0x4c   :  { %650 = vmatmul.bf16.vlgmr.msrb.gmra.mxu0 %v294_v57 }
  0x4d   :  { %663 = vmatmul.bf16.vlgmr.msrb.gmra.mxu1 %v295_v58 }
  0xa9   :  { %v599_v60 = vpop.f32.mrf.mxu0 }
  0xaa   :  { %v612_v61 = vpop.f32.mrf.mxu1  ;;  %v600_v3 = vadd.f32 %v932_v0, %v599_v60 }
  0xac   :  { %v613_v4 = vadd.f32 %v612_v61, %v600_v3 }
  0xb1   :  { %v601_v62 = vpop.f32.mrf.mxu0  ;;  %v625_v1 = vpop.f32.mrf.mxu2 }
  0xb2   :  { %v614_v63 = vpop.f32.mrf.mxu1  ;;  %v638_v2 = vpop.f32.mrf.mxu3  ;;  %v626_v7 = vadd.f32 %v625_v1, %v613_v4 }
  0xb4   :  { %v639_v8 = vadd.f32 %v638_v2, %v626_v7 }
  0xb9   :  { %v627_v5 = vpop.f32.mrf.mxu2 }
  0xba   :  { %v640_v6 = vpop.f32.mrf.mxu3 }
  0xc9   :  { %v651_v9 = vpop.f32.mrf.mxu0 }
  0xca   :  { %v664_v10 = vpop.f32.mrf.mxu1  ;;  %v652_v11 = vadd.f32 %v651_v9, %v639_v8 }
  0xcc   :  { %v665_v12 = vadd.f32 %v664_v10, %v652_v11 }
  0xce   :  { %668 = vst [vmem:[#allocation7] sm:$0x3] %v665_v12 }
  0xcf   :  { %679 = dma.vmem_to_hbm [thread:$0]  %s675_s7, 32, %s677_s10, [#allocation4]  }
  0xd1   :  { %v653_v13 = vpop.f32.mrf.mxu0 }
  0xd2   :  { %v666_v14 = vpop.f32.mrf.mxu1 }
  0xd3   :  { %1009 = dma.done.wait [#allocation4], 32  }
  0xd4   :  { %1010 = vsyncadd [#allocation4], 4294967264 }
  0xd5   :  { %684 = vsyncpa [#allocation3], 1 }
  0xd6   :  { %685 = vsyncpa [#allocation6], 1 }
  0xd7   :  { %686 = vsyncpa [#allocation4], 1 }

</bundles_post_ra>
